<compile_context>
chip_gen: v5e
topology: v5e:2x2
jax: 0.10.0
libtpu: 0.0.40
codegen_flags: <defaults>
</compile_context>

<pallas_src>
import functools
import math

import jax
import jax.numpy as jnp
from jax.experimental import pallas as pl
from jax.experimental.pallas import tpu as pltpu

EMBED_DIM = 300  # fixed by the PyTorch module (GRU input_size=300)


# ---------------------------------------------------------------------------
# Generic row-block matmul kernel:  out_o = sum_k feats[k] @ W[o][k] + b[o]
# Used for (a) the per-layer gate pre-activation ("input projection") for both
# directions at once and (b) the final Linear over all timesteps.
# ---------------------------------------------------------------------------
def _rowblock_matmul_kernel(n_feats, n_outs, *refs):
    xs = refs[:n_feats]
    pos = n_feats
    wsets = []
    for _ in range(n_outs):
        ws = refs[pos:pos + n_feats]
        b = refs[pos + n_feats]
        pos += n_feats + 1
        wsets.append((ws, b))
    outs = refs[pos:pos + n_outs]

    x_vals = [x[...] for x in xs]            # load each feature block once
    for (ws, b), o_ref in zip(wsets, outs):
        acc = jnp.dot(x_vals[0], ws[0][...], preferred_element_type=jnp.float32)
        for k in range(1, n_feats):
            acc = acc + jnp.dot(x_vals[k], ws[k][...],
                                preferred_element_type=jnp.float32)
        o_ref[...] = (acc + b[...]).astype(o_ref.dtype)


def _rowblock_matmul(feats, weight_sets, out_dtypes, block_rows=512):
    """feats: list of (R, K_k) bf16; weight_sets: list of ([ (K_k, N) bf16 ...],
    (1, N) f32); returns list of (R, N_o) arrays."""
    R = feats[0].shape[0]
    RB = R if R <= block_rows else block_rows   # RB==R or RB%8==0
    grid = (pl.cdiv(R, RB),)

    in_specs, args = [], []
    for f in feats:
        in_specs.append(pl.BlockSpec((RB, f.shape[1]), lambda i: (i, 0)))
        args.append(f)
    out_shapes, out_specs = [], []
    for (ws, b), dt in zip(weight_sets, out_dtypes):
        for w in ws:
            in_specs.append(pl.BlockSpec(w.shape, lambda i: (0, 0)))
            args.append(w)
        in_specs.append(pl.BlockSpec(b.shape, lambda i: (0, 0)))
        args.append(b)
        N = ws[0].shape[1]
        out_shapes.append(jax.ShapeDtypeStruct((R, N), dt))
        out_specs.append(pl.BlockSpec((RB, N), lambda i: (i, 0)))

    kernel = functools.partial(_rowblock_matmul_kernel, len(feats),
                               len(weight_sets))
    return pl.pallas_call(
        kernel,
        grid=grid,
        in_specs=in_specs,
        out_specs=out_specs,
        out_shape=out_shapes,
        compiler_params=pltpu.CompilerParams(
            dimension_semantics=("parallel",)),
    )(*args)


# ---------------------------------------------------------------------------
# Fused bidirectional GRU recurrence, streamed over time chunks.
# gx_* hold the precomputed  W_ih x + b_ih (+ b_hh for r,z)  per direction.
# ---------------------------------------------------------------------------
def _bigru_kernel(B, H, TC, gxf_ref, gxr_ref, whf_ref, whr_ref, bnf_ref,
                  bnr_ref, outf_ref, outr_ref, hf_ref, hr_ref):
    @pl.when(pl.program_id(0) == 0)
    def _():
        hf_ref[...] = jnp.zeros_like(hf_ref)
        hr_ref[...] = jnp.zeros_like(hr_ref)

    whf = whf_ref[...]                                   # (H, 3H) bf16, resident
    whr = whr_ref[...]
    bnf = jnp.broadcast_to(bnf_ref[...], (B, 3 * H))     # hoisted broadcasts
    bnr = jnp.broadcast_to(bnr_ref[...], (B, 3 * H))
    hf = hf_ref[...]                                     # carried in vregs
    hr = hr_ref[...]

    def cell(gx, gh, h_prev):
        r = jax.nn.sigmoid(gx[:, 0:H] + gh[:, 0:H])
        z = jax.nn.sigmoid(gx[:, H:2 * H] + gh[:, H:2 * H])
        # PyTorch GRU: n = tanh(W_in x + b_in + r * (W_hn h + b_hn))
        n = jnp.tanh(gx[:, 2 * H:3 * H] + r * gh[:, 2 * H:3 * H])
        return (1.0 - z) * n + z * h_prev

    # Fully unrolled static chunk loop (TC small): static slices / stores.
    for lt in range(TC):
        rf = lt * B                      # forward: local time lt
        rr = (TC - 1 - lt) * B           # reverse: local time TC-1-lt
        ghf = jnp.dot(hf.astype(jnp.bfloat16), whf,
                      preferred_element_type=jnp.float32) + bnf
        ghr = jnp.dot(hr.astype(jnp.bfloat16), whr,
                      preferred_element_type=jnp.float32) + bnr
        gxf = gxf_ref[pl.ds(rf, B), :]
        gxr = gxr_ref[pl.ds(rr, B), :]
        hf = cell(gxf, ghf, hf)
        hr = cell(gxr, ghr, hr)
        outf_ref[pl.ds(rf, B), :] = hf.astype(outf_ref.dtype)
        outr_ref[pl.ds(rr, B), :] = hr.astype(outr_ref.dtype)

    hf_ref[...] = hf
    hr_ref[...] = hr


def _pick_chunk(T, B, H):
    """Timesteps per grid step: divides T, keeps non-final blocks 8-sublane
    aligned, and bounds streamed VMEM regardless of sequence length."""
    bytes_per_step = B * H * (2 * 3 * 4 * 2 + 2 * 2 * 2)   # gx f32 + out bf16, 2 dirs, 2 bufs
    cap = max(1, min(16, (4 * 1024 * 1024) // max(1, bytes_per_step)))
    for tc in range(min(cap, T), 0, -1):
        if T % tc == 0 and ((tc * B) % 8 == 0 or tc == T):
            return tc
    return T


def bigru_layer(feats, p, T, B, H):
    """feats: list of (T*B, K) bf16 time-major row slabs whose concat is the
    layer input.  Returns (out_fwd, out_rev), each (T*B, H) bf16."""
    # 1) Hoisted input projection for BOTH directions (pipelined, parallel).
    gx_f, gx_r = _rowblock_matmul(
        feats,
        [(p['w_ih_f'], p['b_proj_f']), (p['w_ih_r'], p['b_proj_r'])],
        [jnp.float32, jnp.float32])

    # 2) Streamed fused bidirectional recurrence.
    TC = _pick_chunk(T, B, H)
    Nc = T // TC
    R = T * B
    kernel = functools.partial(_bigru_kernel, B, H, TC)
    out_f, out_r = pl.pallas_call(
        kernel,
        grid=(Nc,),
        in_specs=[
            pl.BlockSpec((TC * B, 3 * H), lambda i: (i, 0)),           # gx fwd
            pl.BlockSpec((TC * B, 3 * H), lambda i: (Nc - 1 - i, 0)),  # gx rev (reversed stream)
            pl.BlockSpec((H, 3 * H), lambda i: (0, 0)),                # W_hh fwd (resident)
            pl.BlockSpec((H, 3 * H), lambda i: (0, 0)),                # W_hh rev (resident)
            pl.BlockSpec((1, 3 * H), lambda i: (0, 0)),                # b_hn fwd
            pl.BlockSpec((1, 3 * H), lambda i: (0, 0)),                # b_hn rev
        ],
        out_specs=[
            pl.BlockSpec((TC * B, H), lambda i: (i, 0)),
            pl.BlockSpec((TC * B, H), lambda i: (Nc - 1 - i, 0)),
        ],
        out_shape=[
            jax.ShapeDtypeStruct((R, H), jnp.bfloat16),
            jax.ShapeDtypeStruct((R, H), jnp.bfloat16),
        ],
        scratch_shapes=[pltpu.VMEM((B, H), jnp.float32),
                        pltpu.VMEM((B, H), jnp.float32)],
        compiler_params=pltpu.CompilerParams(
            dimension_semantics=("arbitrary",)),
    )(gx_f, gx_r, p['w_hh_f'], p['w_hh_r'], p['b_hn_f'], p['b_hn_r'])
    return out_f, out_r


# ---------------------------------------------------------------------------
# Model
# ---------------------------------------------------------------------------
class SeqSlot:
    """JAX/Pallas re-implementation of the PyTorch SeqSlot forward pass."""

    def __init__(self, embeddings, hidden_size, num_layers, dropout,
                 bidirectional, num_class, rnn_type='GRU', *, key):
        if rnn_type != 'GRU':
            # TODO(synk): LSTM branch of the reference module not implemented.
            raise NotImplementedError('Only the GRU branch is implemented.')
        if not bidirectional:
            # TODO(synk): unidirectional path not ported (test uses bidirectional).
            raise NotImplementedError('Only bidirectional=True is implemented.')

        self.hidden_size = hidden_size
        self.num_layers = num_layers
        self.dropout = dropout            # inter-layer dropout: no-op at inference
        self.num_class = num_class
        self.embeddings = embeddings.astype(jnp.bfloat16)   # (vocab, 300)

        H = hidden_size
        k = 1.0 / math.sqrt(H)
        self.layers = []
        for layer in range(num_layers):
            in_splits = [EMBED_DIM] if layer == 0 else [H, H]
            in_size = sum(in_splits)
            p = {}
            for dname in ('f', 'r'):
                key, k1, k2, k3, k4 = jax.random.split(key, 5)
                w_ih = jax.random.uniform(k1, (3 * H, in_size), jnp.float32, -k, k)
                w_hh = jax.random.uniform(k2, (3 * H, H), jnp.float32, -k, k)
                b_ih = jax.random.uniform(k3, (3 * H,), jnp.float32, -k, k)
                b_hh = jax.random.uniform(k4, (3 * H,), jnp.float32, -k, k)

                w_ih_t = w_ih.T.astype(jnp.bfloat16)          # (in_size, 3H)
                splits, off = [], 0
                for s in in_splits:                           # per input-feature slab
                    splits.append(w_ih_t[off:off + s])
                    off += s
                # Fold b_ih and the r/z parts of b_hh into the precomputed gx;
                # keep b_hn separate (it sits inside the r * (...) term).
                b_proj = b_ih + jnp.concatenate(
                    [b_hh[:2 * H], jnp.zeros((H,), jnp.float32)])
                b_hn = jnp.concatenate(
                    [jnp.zeros((2 * H,), jnp.float32), b_hh[2 * H:]])

                p['w_ih_' + dname] = splits
                p['b_proj_' + dname] = b_proj.reshape(1, 3 * H)
                p['w_hh_' + dname] = w_hh.T.astype(jnp.bfloat16)   # (H, 3H)
                p['b_hn_' + dname] = b_hn.reshape(1, 3 * H)
            self.layers.append(p)

        enc = 2 * H
        kf = 1.0 / math.sqrt(enc)
        key, k1, k2 = jax.random.split(key, 3)
        w_p = jax.random.uniform(k1, (num_class, enc), jnp.float32, -kf, kf)
        w_p_t = w_p.T.astype(jnp.bfloat16)                     # (2H, C)
        self.proj_w = [w_p_t[:H], w_p_t[H:]]                   # fwd / rev halves
        self.proj_b = jax.random.uniform(k2, (1, num_class), jnp.float32,
                                         -kf, kf)

    def __call__(self, batch):
        # batch: int32 token ids, shape (B, T)  (batch_first convention)
        B, T = batch.shape
        H = self.hidden_size

        # Embedding lookup, time-major rows (t, b).  [XLA glue]
        tok_tm = batch.T.reshape(-1)                           # (T*B,)
        x = jnp.take(self.embeddings, tok_tm, axis=0)          # (T*B, 300) bf16

        feats = [x]
        for p in self.layers:
            # TODO(synk): training-mode inter-layer dropout not applied (inference).
            out_f, out_r = bigru_layer(feats, p, T, B, H)
            feats = [out_f, out_r]

        # Final Linear over ALL timesteps (matches output.reshape(-1, 2H) @ W.T).
        (logits_tm,) = _rowblock_matmul(feats, [(self.proj_w, self.proj_b)],
                                        [jnp.float32])          # (T*B, C)

        # Reorder rows from time-major (t, b) to PyTorch's (b, t), then flatten.
        C = self.num_class
        logits = logits_tm.reshape(T, B, C).transpose(1, 0, 2).reshape(B * T, C)
        return logits


if __name__ == "__main__":
    key = jax.random.PRNGKey(0)
    k_emb, k_model, k_tok = jax.random.split(key, 3)

    vocab_size = 32
    batch_size = 2
    seq_len = 8
    hidden_size = 32
    num_layers = 2
    num_class = 8

    embeddings = jax.random.normal(k_emb, (vocab_size, EMBED_DIM), jnp.float32)
    model = SeqSlot(embeddings, hidden_size, num_layers, dropout=0.0,
                    bidirectional=True, num_class=num_class,
                    rnn_type='GRU', key=k_model)

    tokens = jax.random.randint(k_tok, (batch_size, seq_len), 0, vocab_size,
                                dtype=jnp.int32)
    logits = jax.jit(model.__call__)(tokens)
    jax.block_until_ready(logits)
    assert logits.shape == (batch_size * seq_len, num_class), logits.shape
    assert bool(jnp.all(jnp.isfinite(logits)))
    print("KERNEL_OK")
</pallas_src>

<mosaic_0001>
module attributes {stable_mosaic.version = 11 : i64} {
  func.func @_bigru_kernel(%arg0: i32, %arg1: memref<16x96xf32, #tpu.memory_space<vmem>>, %arg2: memref<16x96xf32, #tpu.memory_space<vmem>>, %arg3: memref<32x96xbf16, #tpu.memory_space<vmem>>, %arg4: memref<32x96xbf16, #tpu.memory_space<vmem>>, %arg5: memref<1x96xf32, #tpu.memory_space<vmem>>, %arg6: memref<1x96xf32, #tpu.memory_space<vmem>>, %arg7: memref<16x32xbf16, #tpu.memory_space<vmem>>, %arg8: memref<16x32xbf16, #tpu.memory_space<vmem>>, %arg9: memref<2x32xf32, #tpu.memory_space<vmem>>, %arg10: memref<2x32xf32, #tpu.memory_space<vmem>>) attributes {dimension_semantics = [#tpu.dimension_semantics<arbitrary>], iteration_bounds = array<i64: 1>, scalar_prefetch = 0 : i64, scratch_operands = 2 : i64, tpu.core_type = #tpu.core_type<tc>, window_params = [{transform_indices = @transform_0, window_bounds = array<i64: 16, 96>}, {transform_indices = @transform_1, window_bounds = array<i64: 16, 96>}, {pipeline_mode = #tpu.pipeline_mode<synchronous>, transform_indices = @transform_2, window_bounds = array<i64: 32, 96>}, {pipeline_mode = #tpu.pipeline_mode<synchronous>, transform_indices = @transform_3, window_bounds = array<i64: 32, 96>}, {pipeline_mode = #tpu.pipeline_mode<synchronous>, transform_indices = @transform_4, window_bounds = array<i64: 1, 96>}, {pipeline_mode = #tpu.pipeline_mode<synchronous>, transform_indices = @transform_5, window_bounds = array<i64: 1, 96>}, {transform_indices = @transform_6, window_bounds = array<i64: 16, 32>}, {transform_indices = @transform_7, window_bounds = array<i64: 16, 32>}]} {
    %c0_i32 = arith.constant 0 : i32
    %0 = arith.cmpi eq, %arg0, %c0_i32 : i32
    %1 = arith.extui %0 : i1 to i32
    %c0_i32_0 = arith.constant 0 : i32
    %2 = arith.cmpi ne, %1, %c0_i32_0 : i32
    scf.if %2 {
      %cst_136 = arith.constant 0.000000e+00 : f32
      %527 = vector.broadcast %cst_136 : f32 to vector<2x32xf32>
      %c0_137 = arith.constant 0 : index
      %c0_138 = arith.constant 0 : index
      %528 = vector.load %arg9[%c0_137, %c0_138] : memref<2x32xf32, #tpu.memory_space<vmem>>, vector<2x32xf32>
      tpu.vector_store %arg9[%c0_137, %c0_138], %527 {strides = array<i32>} : memref<2x32xf32, #tpu.memory_space<vmem>>, vector<2x32xf32>,
      %cst_139 = arith.constant 0.000000e+00 : f32
      %529 = vector.broadcast %cst_139 : f32 to vector<2x32xf32>
      %c0_140 = arith.constant 0 : index
      %c0_141 = arith.constant 0 : index
      %530 = vector.load %arg10[%c0_140, %c0_141] : memref<2x32xf32, #tpu.memory_space<vmem>>, vector<2x32xf32>
      tpu.vector_store %arg10[%c0_140, %c0_141], %529 {strides = array<i32>} : memref<2x32xf32, #tpu.memory_space<vmem>>, vector<2x32xf32>,
    } else {
    }
    %c0 = arith.constant 0 : index
    %c0_1 = arith.constant 0 : index
    %3 = vector.load %arg3[%c0, %c0_1] : memref<32x96xbf16, #tpu.memory_space<vmem>>, vector<32x96xbf16>
    %c0_2 = arith.constant 0 : index
    %c0_3 = arith.constant 0 : index
    %4 = vector.load %arg4[%c0_2, %c0_3] : memref<32x96xbf16, #tpu.memory_space<vmem>>, vector<32x96xbf16>
    %c0_4 = arith.constant 0 : index
    %c0_5 = arith.constant 0 : index
    %5 = vector.load %arg5[%c0_4, %c0_5] : memref<1x96xf32, #tpu.memory_space<vmem>>, vector<1x96xf32>
    %6 = vector.shape_cast %5 : vector<1x96xf32> to vector<1x96xf32>
    %7 = vector.broadcast %6 : vector<1x96xf32> to vector<2x96xf32>
    %c0_6 = arith.constant 0 : index
    %c0_7 = arith.constant 0 : index
    %8 = vector.load %arg6[%c0_6, %c0_7] : memref<1x96xf32, #tpu.memory_space<vmem>>, vector<1x96xf32>
    %9 = vector.shape_cast %8 : vector<1x96xf32> to vector<1x96xf32>
    %10 = vector.broadcast %9 : vector<1x96xf32> to vector<2x96xf32>
    %c0_8 = arith.constant 0 : index
    %c0_9 = arith.constant 0 : index
    %11 = vector.load %arg9[%c0_8, %c0_9] : memref<2x32xf32, #tpu.memory_space<vmem>>, vector<2x32xf32>
    %c0_10 = arith.constant 0 : index
    %c0_11 = arith.constant 0 : index
    %12 = vector.load %arg10[%c0_10, %c0_11] : memref<2x32xf32, #tpu.memory_space<vmem>>, vector<2x32xf32>
    %13 = arith.truncf %11 : vector<2x32xf32> to vector<2x32xbf16>
    %cst = arith.constant dense<0.000000e+00> : vector<2x96xf32>
    %14 = tpu.matmul %13, %3, %cst {dimension_numbers = #tpu.dot_dimension_numbers<[1], [0], [0], [1], [0, 0, 1, 1], [], []>} : vector<2x32xbf16>, vector<32x96xbf16>, vector<2x96xf32> -> vector<2x96xf32>
    %15 = arith.addf %14, %7 : vector<2x96xf32>
    %16 = arith.truncf %12 : vector<2x32xf32> to vector<2x32xbf16>
    %cst_12 = arith.constant dense<0.000000e+00> : vector<2x96xf32>
    %17 = tpu.matmul %16, %4, %cst_12 {dimension_numbers = #tpu.dot_dimension_numbers<[1], [0], [0], [1], [0, 0, 1, 1], [], []>} : vector<2x32xbf16>, vector<32x96xbf16>, vector<2x96xf32> -> vector<2x96xf32>
    %18 = arith.addf %17, %10 : vector<2x96xf32>
    %c0_13 = arith.constant 0 : index
    %c0_14 = arith.constant 0 : index
    %19 = vector.load %arg1[%c0_13, %c0_14] : memref<16x96xf32, #tpu.memory_space<vmem>>, vector<2x96xf32>
    %c14 = arith.constant 14 : index
    %c0_15 = arith.constant 0 : index
    %20 = vector.load %arg2[%c14, %c0_15] : memref<16x96xf32, #tpu.memory_space<vmem>>, vector<2x96xf32>
    %21 = vector.extract_strided_slice %19 {offsets = [0, 0], sizes = [2, 32], strides = [1, 1]} : vector<2x96xf32> to vector<2x32xf32>
    %22 = vector.extract_strided_slice %15 {offsets = [0, 0], sizes = [2, 32], strides = [1, 1]} : vector<2x96xf32> to vector<2x32xf32>
    %23 = arith.addf %21, %22 : vector<2x32xf32>
    %24 = arith.negf %23 : vector<2x32xf32>
    %25 = math.exp %24 : vector<2x32xf32>
    %cst_16 = arith.constant 1.000000e+00 : f32
    %26 = vector.broadcast %cst_16 : f32 to vector<2x32xf32>
    %27 = arith.addf %26, %25 : vector<2x32xf32>
    %28 = arith.divf %26, %27 : vector<2x32xf32>
    %29 = vector.extract_strided_slice %19 {offsets = [0, 32], sizes = [2, 32], strides = [1, 1]} : vector<2x96xf32> to vector<2x32xf32>
    %30 = vector.extract_strided_slice %15 {offsets = [0, 32], sizes = [2, 32], strides = [1, 1]} : vector<2x96xf32> to vector<2x32xf32>
    %31 = arith.addf %29, %30 : vector<2x32xf32>
    %32 = arith.negf %31 : vector<2x32xf32>
    %33 = math.exp %32 : vector<2x32xf32>
    %cst_17 = arith.constant 1.000000e+00 : f32
    %34 = vector.broadcast %cst_17 : f32 to vector<2x32xf32>
    %35 = arith.addf %34, %33 : vector<2x32xf32>
    %36 = arith.divf %34, %35 : vector<2x32xf32>
    %37 = vector.extract_strided_slice %19 {offsets = [0, 64], sizes = [2, 32], strides = [1, 1]} : vector<2x96xf32> to vector<2x32xf32>
    %38 = vector.extract_strided_slice %15 {offsets = [0, 64], sizes = [2, 32], strides = [1, 1]} : vector<2x96xf32> to vector<2x32xf32>
    %39 = arith.mulf %28, %38 : vector<2x32xf32>
    %40 = arith.addf %37, %39 : vector<2x32xf32>
    %41 = math.tanh %40 : vector<2x32xf32>
    %cst_18 = arith.constant 1.000000e+00 : f32
    %42 = vector.broadcast %cst_18 : f32 to vector<2x32xf32>
    %43 = arith.subf %42, %36 : vector<2x32xf32>
    %44 = arith.mulf %43, %41 : vector<2x32xf32>
    %45 = arith.mulf %36, %11 : vector<2x32xf32>
    %46 = arith.addf %44, %45 : vector<2x32xf32>
    %47 = vector.extract_strided_slice %20 {offsets = [0, 0], sizes = [2, 32], strides = [1, 1]} : vector<2x96xf32> to vector<2x32xf32>
    %48 = vector.extract_strided_slice %18 {offsets = [0, 0], sizes = [2, 32], strides = [1, 1]} : vector<2x96xf32> to vector<2x32xf32>
    %49 = arith.addf %47, %48 : vector<2x32xf32>
    %50 = arith.negf %49 : vector<2x32xf32>
    %51 = math.exp %50 : vector<2x32xf32>
    %cst_19 = arith.constant 1.000000e+00 : f32
    %52 = vector.broadcast %cst_19 : f32 to vector<2x32xf32>
    %53 = arith.addf %52, %51 : vector<2x32xf32>
    %54 = arith.divf %52, %53 : vector<2x32xf32>
    %55 = vector.extract_strided_slice %20 {offsets = [0, 32], sizes = [2, 32], strides = [1, 1]} : vector<2x96xf32> to vector<2x32xf32>
    %56 = vector.extract_strided_slice %18 {offsets = [0, 32], sizes = [2, 32], strides = [1, 1]} : vector<2x96xf32> to vector<2x32xf32>
    %57 = arith.addf %55, %56 : vector<2x32xf32>
    %58 = arith.negf %57 : vector<2x32xf32>
    %59 = math.exp %58 : vector<2x32xf32>
    %cst_20 = arith.constant 1.000000e+00 : f32
    %60 = vector.broadcast %cst_20 : f32 to vector<2x32xf32>
    %61 = arith.addf %60, %59 : vector<2x32xf32>
    %62 = arith.divf %60, %61 : vector<2x32xf32>
    %63 = vector.extract_strided_slice %20 {offsets = [0, 64], sizes = [2, 32], strides = [1, 1]} : vector<2x96xf32> to vector<2x32xf32>
    %64 = vector.extract_strided_slice %18 {offsets = [0, 64], sizes = [2, 32], strides = [1, 1]} : vector<2x96xf32> to vector<2x32xf32>
    %65 = arith.mulf %54, %64 : vector<2x32xf32>
    %66 = arith.addf %63, %65 : vector<2x32xf32>
    %67 = math.tanh %66 : vector<2x32xf32>
    %cst_21 = arith.constant 1.000000e+00 : f32
    %68 = vector.broadcast %cst_21 : f32 to vector<2x32xf32>
    %69 = arith.subf %68, %62 : vector<2x32xf32>
    %70 = arith.mulf %69, %67 : vector<2x32xf32>
    %71 = arith.mulf %62, %12 : vector<2x32xf32>
    %72 = arith.addf %70, %71 : vector<2x32xf32>
    %73 = arith.truncf %46 : vector<2x32xf32> to vector<2x32xbf16>
    %c0_22 = arith.constant 0 : index
    %c0_23 = arith.constant 0 : index
    %74 = vector.load %arg7[%c0_22, %c0_23] : memref<16x32xbf16, #tpu.memory_space<vmem>>, vector<2x32xbf16>
    tpu.vector_store %arg7[%c0_22, %c0_23], %73 {strides = array<i32>} : memref<16x32xbf16, #tpu.memory_space<vmem>>, vector<2x32xbf16>,
    %75 = arith.truncf %72 : vector<2x32xf32> to vector<2x32xbf16>
    %c14_24 = arith.constant 14 : index
    %c0_25 = arith.constant 0 : index
    %76 = vector.load %arg8[%c14_24, %c0_25] : memref<16x32xbf16, #tpu.memory_space<vmem>>, vector<2x32xbf16>
    tpu.vector_store %arg8[%c14_24, %c0_25], %75 {strides = array<i32>} : memref<16x32xbf16, #tpu.memory_space<vmem>>, vector<2x32xbf16>,
    %77 = arith.truncf %46 : vector<2x32xf32> to vector<2x32xbf16>
    %cst_26 = arith.constant dense<0.000000e+00> : vector<2x96xf32>
    %78 = tpu.matmul %77, %3, %cst_26 {dimension_numbers = #tpu.dot_dimension_numbers<[1], [0], [0], [1], [0, 0, 1, 1], [], []>} : vector<2x32xbf16>, vector<32x96xbf16>, vector<2x96xf32> -> vector<2x96xf32>
    %79 = arith.addf %78, %7 : vector<2x96xf32>
    %80 = arith.truncf %72 : vector<2x32xf32> to vector<2x32xbf16>
    %cst_27 = arith.constant dense<0.000000e+00> : vector<2x96xf32>
    %81 = tpu.matmul %80, %4, %cst_27 {dimension_numbers = #tpu.dot_dimension_numbers<[1], [0], [0], [1], [0, 0, 1, 1], [], []>} : vector<2x32xbf16>, vector<32x96xbf16>, vector<2x96xf32> -> vector<2x96xf32>
    %82 = arith.addf %81, %10 : vector<2x96xf32>
    %c2 = arith.constant 2 : index
    %c0_28 = arith.constant 0 : index
    %83 = vector.load %arg1[%c2, %c0_28] : memref<16x96xf32, #tpu.memory_space<vmem>>, vector<2x96xf32>
    %c12 = arith.constant 12 : index
    %c0_29 = arith.constant 0 : index
    %84 = vector.load %arg2[%c12, %c0_29] : memref<16x96xf32, #tpu.memory_space<vmem>>, vector<2x96xf32>
    %85 = vector.extract_strided_slice %83 {offsets = [0, 0], sizes = [2, 32], strides = [1, 1]} : vector<2x96xf32> to vector<2x32xf32>
    %86 = vector.extract_strided_slice %79 {offsets = [0, 0], sizes = [2, 32], strides = [1, 1]} : vector<2x96xf32> to vector<2x32xf32>
    %87 = arith.addf %85, %86 : vector<2x32xf32>
    %88 = arith.negf %87 : vector<2x32xf32>
    %89 = math.exp %88 : vector<2x32xf32>
    %cst_30 = arith.constant 1.000000e+00 : f32
    %90 = vector.broadcast %cst_30 : f32 to vector<2x32xf32>
    %91 = arith.addf %90, %89 : vector<2x32xf32>
    %92 = arith.divf %90, %91 : vector<2x32xf32>
    %93 = vector.extract_strided_slice %83 {offsets = [0, 32], sizes = [2, 32], strides = [1, 1]} : vector<2x96xf32> to vector<2x32xf32>
    %94 = vector.extract_strided_slice %79 {offsets = [0, 32], sizes = [2, 32], strides = [1, 1]} : vector<2x96xf32> to vector<2x32xf32>
    %95 = arith.addf %93, %94 : vector<2x32xf32>
    %96 = arith.negf %95 : vector<2x32xf32>
    %97 = math.exp %96 : vector<2x32xf32>
    %cst_31 = arith.constant 1.000000e+00 : f32
    %98 = vector.broadcast %cst_31 : f32 to vector<2x32xf32>
    %99 = arith.addf %98, %97 : vector<2x32xf32>
    %100 = arith.divf %98, %99 : vector<2x32xf32>
    %101 = vector.extract_strided_slice %83 {offsets = [0, 64], sizes = [2, 32], strides = [1, 1]} : vector<2x96xf32> to vector<2x32xf32>
    %102 = vector.extract_strided_slice %79 {offsets = [0, 64], sizes = [2, 32], strides = [1, 1]} : vector<2x96xf32> to vector<2x32xf32>
    %103 = arith.mulf %92, %102 : vector<2x32xf32>
    %104 = arith.addf %101, %103 : vector<2x32xf32>
    %105 = math.tanh %104 : vector<2x32xf32>
    %cst_32 = arith.constant 1.000000e+00 : f32
    %106 = vector.broadcast %cst_32 : f32 to vector<2x32xf32>
    %107 = arith.subf %106, %100 : vector<2x32xf32>
    %108 = arith.mulf %107, %105 : vector<2x32xf32>
    %109 = arith.mulf %100, %46 : vector<2x32xf32>
    %110 = arith.addf %108, %109 : vector<2x32xf32>
    %111 = vector.extract_strided_slice %84 {offsets = [0, 0], sizes = [2, 32], strides = [1, 1]} : vector<2x96xf32> to vector<2x32xf32>
    %112 = vector.extract_strided_slice %82 {offsets = [0, 0], sizes = [2, 32], strides = [1, 1]} : vector<2x96xf32> to vector<2x32xf32>
    %113 = arith.addf %111, %112 : vector<2x32xf32>
    %114 = arith.negf %113 : vector<2x32xf32>
    %115 = math.exp %114 : vector<2x32xf32>
    %cst_33 = arith.constant 1.000000e+00 : f32
    %116 = vector.broadcast %cst_33 : f32 to vector<2x32xf32>
    %117 = arith.addf %116, %115 : vector<2x32xf32>
    %118 = arith.divf %116, %117 : vector<2x32xf32>
    %119 = vector.extract_strided_slice %84 {offsets = [0, 32], sizes = [2, 32], strides = [1, 1]} : vector<2x96xf32> to vector<2x32xf32>
    %120 = vector.extract_strided_slice %82 {offsets = [0, 32], sizes = [2, 32], strides = [1, 1]} : vector<2x96xf32> to vector<2x32xf32>
    %121 = arith.addf %119, %120 : vector<2x32xf32>
    %122 = arith.negf %121 : vector<2x32xf32>
    %123 = math.exp %122 : vector<2x32xf32>
    %cst_34 = arith.constant 1.000000e+00 : f32
    %124 = vector.broadcast %cst_34 : f32 to vector<2x32xf32>
    %125 = arith.addf %124, %123 : vector<2x32xf32>
    %126 = arith.divf %124, %125 : vector<2x32xf32>
    %127 = vector.extract_strided_slice %84 {offsets = [0, 64], sizes = [2, 32], strides = [1, 1]} : vector<2x96xf32> to vector<2x32xf32>
    %128 = vector.extract_strided_slice %82 {offsets = [0, 64], sizes = [2, 32], strides = [1, 1]} : vector<2x96xf32> to vector<2x32xf32>
    %129 = arith.mulf %118, %128 : vector<2x32xf32>
    %130 = arith.addf %127, %129 : vector<2x32xf32>
    %131 = math.tanh %130 : vector<2x32xf32>
    %cst_35 = arith.constant 1.000000e+00 : f32
    %132 = vector.broadcast %cst_35 : f32 to vector<2x32xf32>
    %133 = arith.subf %132, %126 : vector<2x32xf32>
    %134 = arith.mulf %133, %131 : vector<2x32xf32>
    %135 = arith.mulf %126, %72 : vector<2x32xf32>
    %136 = arith.addf %134, %135 : vector<2x32xf32>
    %137 = arith.truncf %110 : vector<2x32xf32> to vector<2x32xbf16>
    %c2_36 = arith.constant 2 : index
    %c0_37 = arith.constant 0 : index
    %138 = vector.load %arg7[%c2_36, %c0_37] : memref<16x32xbf16, #tpu.memory_space<vmem>>, vector<2x32xbf16>
    tpu.vector_store %arg7[%c2_36, %c0_37], %137 {strides = array<i32>} : memref<16x32xbf16, #tpu.memory_space<vmem>>, vector<2x32xbf16>,
    %139 = arith.truncf %136 : vector<2x32xf32> to vector<2x32xbf16>
    %c12_38 = arith.constant 12 : index
    %c0_39 = arith.constant 0 : index
    %140 = vector.load %arg8[%c12_38, %c0_39] : memref<16x32xbf16, #tpu.memory_space<vmem>>, vector<2x32xbf16>
    tpu.vector_store %arg8[%c12_38, %c0_39], %139 {strides = array<i32>} : memref<16x32xbf16, #tpu.memory_space<vmem>>, vector<2x32xbf16>,
    %141 = arith.truncf %110 : vector<2x32xf32> to vector<2x32xbf16>
    %cst_40 = arith.constant dense<0.000000e+00> : vector<2x96xf32>
    %142 = tpu.matmul %141, %3, %cst_40 {dimension_numbers = #tpu.dot_dimension_numbers<[1], [0], [0], [1], [0, 0, 1, 1], [], []>} : vector<2x32xbf16>, vector<32x96xbf16>, vector<2x96xf32> -> vector<2x96xf32>
    %143 = arith.addf %142, %7 : vector<2x96xf32>
    %144 = arith.truncf %136 : vector<2x32xf32> to vector<2x32xbf16>
    %cst_41 = arith.constant dense<0.000000e+00> : vector<2x96xf32>
    %145 = tpu.matmul %144, %4, %cst_41 {dimension_numbers = #tpu.dot_dimension_numbers<[1], [0], [0], [1], [0, 0, 1, 1], [], []>} : vector<2x32xbf16>, vector<32x96xbf16>, vector<2x96xf32> -> vector<2x96xf32>
    %146 = arith.addf %145, %10 : vector<2x96xf32>
    %c4 = arith.constant 4 : index
    %c0_42 = arith.constant 0 : index
    %147 = vector.load %arg1[%c4, %c0_42] : memref<16x96xf32, #tpu.memory_space<vmem>>, vector<2x96xf32>
    %c10 = arith.constant 10 : index
    %c0_43 = arith.constant 0 : index
    %148 = vector.load %arg2[%c10, %c0_43] : memref<16x96xf32, #tpu.memory_space<vmem>>, vector<2x96xf32>
    %149 = vector.extract_strided_slice %147 {offsets = [0, 0], sizes = [2, 32], strides = [1, 1]} : vector<2x96xf32> to vector<2x32xf32>
    %150 = vector.extract_strided_slice %143 {offsets = [0, 0], sizes = [2, 32], strides = [1, 1]} : vector<2x96xf32> to vector<2x32xf32>
    %151 = arith.addf %149, %150 : vector<2x32xf32>
    %152 = arith.negf %151 : vector<2x32xf32>
    %153 = math.exp %152 : vector<2x32xf32>
    %cst_44 = arith.constant 1.000000e+00 : f32
    %154 = vector.broadcast %cst_44 : f32 to vector<2x32xf32>
    %155 = arith.addf %154, %153 : vector<2x32xf32>
    %156 = arith.divf %154, %155 : vector<2x32xf32>
    %157 = vector.extract_strided_slice %147 {offsets = [0, 32], sizes = [2, 32], strides = [1, 1]} : vector<2x96xf32> to vector<2x32xf32>
    %158 = vector.extract_strided_slice %143 {offsets = [0, 32], sizes = [2, 32], strides = [1, 1]} : vector<2x96xf32> to vector<2x32xf32>
    %159 = arith.addf %157, %158 : vector<2x32xf32>
    %160 = arith.negf %159 : vector<2x32xf32>
    %161 = math.exp %160 : vector<2x32xf32>
    %cst_45 = arith.constant 1.000000e+00 : f32
    %162 = vector.broadcast %cst_45 : f32 to vector<2x32xf32>
    %163 = arith.addf %162, %161 : vector<2x32xf32>
    %164 = arith.divf %162, %163 : vector<2x32xf32>
    %165 = vector.extract_strided_slice %147 {offsets = [0, 64], sizes = [2, 32], strides = [1, 1]} : vector<2x96xf32> to vector<2x32xf32>
    %166 = vector.extract_strided_slice %143 {offsets = [0, 64], sizes = [2, 32], strides = [1, 1]} : vector<2x96xf32> to vector<2x32xf32>
    %167 = arith.mulf %156, %166 : vector<2x32xf32>
    %168 = arith.addf %165, %167 : vector<2x32xf32>
    %169 = math.tanh %168 : vector<2x32xf32>
    %cst_46 = arith.constant 1.000000e+00 : f32
    %170 = vector.broadcast %cst_46 : f32 to vector<2x32xf32>
    %171 = arith.subf %170, %164 : vector<2x32xf32>
    %172 = arith.mulf %171, %169 : vector<2x32xf32>
    %173 = arith.mulf %164, %110 : vector<2x32xf32>
    %174 = arith.addf %172, %173 : vector<2x32xf32>
    %175 = vector.extract_strided_slice %148 {offsets = [0, 0], sizes = [2, 32], strides = [1, 1]} : vector<2x96xf32> to vector<2x32xf32>
    %176 = vector.extract_strided_slice %146 {offsets = [0, 0], sizes = [2, 32], strides = [1, 1]} : vector<2x96xf32> to vector<2x32xf32>
    %177 = arith.addf %175, %176 : vector<2x32xf32>
    %178 = arith.negf %177 : vector<2x32xf32>
    %179 = math.exp %178 : vector<2x32xf32>
    %cst_47 = arith.constant 1.000000e+00 : f32
    %180 = vector.broadcast %cst_47 : f32 to vector<2x32xf32>
    %181 = arith.addf %180, %179 : vector<2x32xf32>
    %182 = arith.divf %180, %181 : vector<2x32xf32>
    %183 = vector.extract_strided_slice %148 {offsets = [0, 32], sizes = [2, 32], strides = [1, 1]} : vector<2x96xf32> to vector<2x32xf32>
    %184 = vector.extract_strided_slice %146 {offsets = [0, 32], sizes = [2, 32], strides = [1, 1]} : vector<2x96xf32> to vector<2x32xf32>
    %185 = arith.addf %183, %184 : vector<2x32xf32>
    %186 = arith.negf %185 : vector<2x32xf32>
    %187 = math.exp %186 : vector<2x32xf32>
    %cst_48 = arith.constant 1.000000e+00 : f32
    %188 = vector.broadcast %cst_48 : f32 to vector<2x32xf32>
    %189 = arith.addf %188, %187 : vector<2x32xf32>
    %190 = arith.divf %188, %189 : vector<2x32xf32>
    %191 = vector.extract_strided_slice %148 {offsets = [0, 64], sizes = [2, 32], strides = [1, 1]} : vector<2x96xf32> to vector<2x32xf32>
    %192 = vector.extract_strided_slice %146 {offsets = [0, 64], sizes = [2, 32], strides = [1, 1]} : vector<2x96xf32> to vector<2x32xf32>
    %193 = arith.mulf %182, %192 : vector<2x32xf32>
    %194 = arith.addf %191, %193 : vector<2x32xf32>
    %195 = math.tanh %194 : vector<2x32xf32>
    %cst_49 = arith.constant 1.000000e+00 : f32
    %196 = vector.broadcast %cst_49 : f32 to vector<2x32xf32>
    %197 = arith.subf %196, %190 : vector<2x32xf32>
    %198 = arith.mulf %197, %195 : vector<2x32xf32>
    %199 = arith.mulf %190, %136 : vector<2x32xf32>
    %200 = arith.addf %198, %199 : vector<2x32xf32>
    %201 = arith.truncf %174 : vector<2x32xf32> to vector<2x32xbf16>
    %c4_50 = arith.constant 4 : index
    %c0_51 = arith.constant 0 : index
    %202 = vector.load %arg7[%c4_50, %c0_51] : memref<16x32xbf16, #tpu.memory_space<vmem>>, vector<2x32xbf16>
    tpu.vector_store %arg7[%c4_50, %c0_51], %201 {strides = array<i32>} : memref<16x32xbf16, #tpu.memory_space<vmem>>, vector<2x32xbf16>,
    %203 = arith.truncf %200 : vector<2x32xf32> to vector<2x32xbf16>
    %c10_52 = arith.constant 10 : index
    %c0_53 = arith.constant 0 : index
    %204 = vector.load %arg8[%c10_52, %c0_53] : memref<16x32xbf16, #tpu.memory_space<vmem>>, vector<2x32xbf16>
    tpu.vector_store %arg8[%c10_52, %c0_53], %203 {strides = array<i32>} : memref<16x32xbf16, #tpu.memory_space<vmem>>, vector<2x32xbf16>,
    %205 = arith.truncf %174 : vector<2x32xf32> to vector<2x32xbf16>
    %cst_54 = arith.constant dense<0.000000e+00> : vector<2x96xf32>
    %206 = tpu.matmul %205, %3, %cst_54 {dimension_numbers = #tpu.dot_dimension_numbers<[1], [0], [0], [1], [0, 0, 1, 1], [], []>} : vector<2x32xbf16>, vector<32x96xbf16>, vector<2x96xf32> -> vector<2x96xf32>
    %207 = arith.addf %206, %7 : vector<2x96xf32>
    %208 = arith.truncf %200 : vector<2x32xf32> to vector<2x32xbf16>
    %cst_55 = arith.constant dense<0.000000e+00> : vector<2x96xf32>
    %209 = tpu.matmul %208, %4, %cst_55 {dimension_numbers = #tpu.dot_dimension_numbers<[1], [0], [0], [1], [0, 0, 1, 1], [], []>} : vector<2x32xbf16>, vector<32x96xbf16>, vector<2x96xf32> -> vector<2x96xf32>
    %210 = arith.addf %209, %10 : vector<2x96xf32>
    %c6 = arith.constant 6 : index
    %c0_56 = arith.constant 0 : index
    %211 = vector.load %arg1[%c6, %c0_56] : memref<16x96xf32, #tpu.memory_space<vmem>>, vector<2x96xf32>
    %c8 = arith.constant 8 : index
    %c0_57 = arith.constant 0 : index
    %212 = vector.load %arg2[%c8, %c0_57] : memref<16x96xf32, #tpu.memory_space<vmem>>, vector<2x96xf32>
    %213 = vector.extract_strided_slice %211 {offsets = [0, 0], sizes = [2, 32], strides = [1, 1]} : vector<2x96xf32> to vector<2x32xf32>
    %214 = vector.extract_strided_slice %207 {offsets = [0, 0], sizes = [2, 32], strides = [1, 1]} : vector<2x96xf32> to vector<2x32xf32>
    %215 = arith.addf %213, %214 : vector<2x32xf32>
    %216 = arith.negf %215 : vector<2x32xf32>
    %217 = math.exp %216 : vector<2x32xf32>
    %cst_58 = arith.constant 1.000000e+00 : f32
    %218 = vector.broadcast %cst_58 : f32 to vector<2x32xf32>
    %219 = arith.addf %218, %217 : vector<2x32xf32>
    %220 = arith.divf %218, %219 : vector<2x32xf32>
    %221 = vector.extract_strided_slice %211 {offsets = [0, 32], sizes = [2, 32], strides = [1, 1]} : vector<2x96xf32> to vector<2x32xf32>
    %222 = vector.extract_strided_slice %207 {offsets = [0, 32], sizes = [2, 32], strides = [1, 1]} : vector<2x96xf32> to vector<2x32xf32>
    %223 = arith.addf %221, %222 : vector<2x32xf32>
    %224 = arith.negf %223 : vector<2x32xf32>
    %225 = math.exp %224 : vector<2x32xf32>
    %cst_59 = arith.constant 1.000000e+00 : f32
    %226 = vector.broadcast %cst_59 : f32 to vector<2x32xf32>
    %227 = arith.addf %226, %225 : vector<2x32xf32>
    %228 = arith.divf %226, %227 : vector<2x32xf32>
    %229 = vector.extract_strided_slice %211 {offsets = [0, 64], sizes = [2, 32], strides = [1, 1]} : vector<2x96xf32> to vector<2x32xf32>
    %230 = vector.extract_strided_slice %207 {offsets = [0, 64], sizes = [2, 32], strides = [1, 1]} : vector<2x96xf32> to vector<2x32xf32>
    %231 = arith.mulf %220, %230 : vector<2x32xf32>
    %232 = arith.addf %229, %231 : vector<2x32xf32>
    %233 = math.tanh %232 : vector<2x32xf32>
    %cst_60 = arith.constant 1.000000e+00 : f32
    %234 = vector.broadcast %cst_60 : f32 to vector<2x32xf32>
    %235 = arith.subf %234, %228 : vector<2x32xf32>
    %236 = arith.mulf %235, %233 : vector<2x32xf32>
    %237 = arith.mulf %228, %174 : vector<2x32xf32>
    %238 = arith.addf %236, %237 : vector<2x32xf32>
    %239 = vector.extract_strided_slice %212 {offsets = [0, 0], sizes = [2, 32], strides = [1, 1]} : vector<2x96xf32> to vector<2x32xf32>
    %240 = vector.extract_strided_slice %210 {offsets = [0, 0], sizes = [2, 32], strides = [1, 1]} : vector<2x96xf32> to vector<2x32xf32>
    %241 = arith.addf %239, %240 : vector<2x32xf32>
    %242 = arith.negf %241 : vector<2x32xf32>
    %243 = math.exp %242 : vector<2x32xf32>
    %cst_61 = arith.constant 1.000000e+00 : f32
    %244 = vector.broadcast %cst_61 : f32 to vector<2x32xf32>
    %245 = arith.addf %244, %243 : vector<2x32xf32>
    %246 = arith.divf %244, %245 : vector<2x32xf32>
    %247 = vector.extract_strided_slice %212 {offsets = [0, 32], sizes = [2, 32], strides = [1, 1]} : vector<2x96xf32> to vector<2x32xf32>
    %248 = vector.extract_strided_slice %210 {offsets = [0, 32], sizes = [2, 32], strides = [1, 1]} : vector<2x96xf32> to vector<2x32xf32>
    %249 = arith.addf %247, %248 : vector<2x32xf32>
    %250 = arith.negf %249 : vector<2x32xf32>
    %251 = math.exp %250 : vector<2x32xf32>
    %cst_62 = arith.constant 1.000000e+00 : f32
    %252 = vector.broadcast %cst_62 : f32 to vector<2x32xf32>
    %253 = arith.addf %252, %251 : vector<2x32xf32>
    %254 = arith.divf %252, %253 : vector<2x32xf32>
    %255 = vector.extract_strided_slice %212 {offsets = [0, 64], sizes = [2, 32], strides = [1, 1]} : vector<2x96xf32> to vector<2x32xf32>
    %256 = vector.extract_strided_slice %210 {offsets = [0, 64], sizes = [2, 32], strides = [1, 1]} : vector<2x96xf32> to vector<2x32xf32>
    %257 = arith.mulf %246, %256 : vector<2x32xf32>
    %258 = arith.addf %255, %257 : vector<2x32xf32>
    %259 = math.tanh %258 : vector<2x32xf32>
    %cst_63 = arith.constant 1.000000e+00 : f32
    %260 = vector.broadcast %cst_63 : f32 to vector<2x32xf32>
    %261 = arith.subf %260, %254 : vector<2x32xf32>
    %262 = arith.mulf %261, %259 : vector<2x32xf32>
    %263 = arith.mulf %254, %200 : vector<2x32xf32>
    %264 = arith.addf %262, %263 : vector<2x32xf32>
    %265 = arith.truncf %238 : vector<2x32xf32> to vector<2x32xbf16>
    %c6_64 = arith.constant 6 : index
    %c0_65 = arith.constant 0 : index
    %266 = vector.load %arg7[%c6_64, %c0_65] : memref<16x32xbf16, #tpu.memory_space<vmem>>, vector<2x32xbf16>
    tpu.vector_store %arg7[%c6_64, %c0_65], %265 {strides = array<i32>} : memref<16x32xbf16, #tpu.memory_space<vmem>>, vector<2x32xbf16>,
    %267 = arith.truncf %264 : vector<2x32xf32> to vector<2x32xbf16>
    %c8_66 = arith.constant 8 : index
    %c0_67 = arith.constant 0 : index
    %268 = vector.load %arg8[%c8_66, %c0_67] : memref<16x32xbf16, #tpu.memory_space<vmem>>, vector<2x32xbf16>
    tpu.vector_store %arg8[%c8_66, %c0_67], %267 {strides = array<i32>} : memref<16x32xbf16, #tpu.memory_space<vmem>>, vector<2x32xbf16>,
    %269 = arith.truncf %238 : vector<2x32xf32> to vector<2x32xbf16>
    %cst_68 = arith.constant dense<0.000000e+00> : vector<2x96xf32>
    %270 = tpu.matmul %269, %3, %cst_68 {dimension_numbers = #tpu.dot_dimension_numbers<[1], [0], [0], [1], [0, 0, 1, 1], [], []>} : vector<2x32xbf16>, vector<32x96xbf16>, vector<2x96xf32> -> vector<2x96xf32>
    %271 = arith.addf %270, %7 : vector<2x96xf32>
    %272 = arith.truncf %264 : vector<2x32xf32> to vector<2x32xbf16>
    %cst_69 = arith.constant dense<0.000000e+00> : vector<2x96xf32>
    %273 = tpu.matmul %272, %4, %cst_69 {dimension_numbers = #tpu.dot_dimension_numbers<[1], [0], [0], [1], [0, 0, 1, 1], [], []>} : vector<2x32xbf16>, vector<32x96xbf16>, vector<2x96xf32> -> vector<2x96xf32>
    %274 = arith.addf %273, %10 : vector<2x96xf32>
    %c8_70 = arith.constant 8 : index
    %c0_71 = arith.constant 0 : index
    %275 = vector.load %arg1[%c8_70, %c0_71] : memref<16x96xf32, #tpu.memory_space<vmem>>, vector<2x96xf32>
    %c6_72 = arith.constant 6 : index
    %c0_73 = arith.constant 0 : index
    %276 = vector.load %arg2[%c6_72, %c0_73] : memref<16x96xf32, #tpu.memory_space<vmem>>, vector<2x96xf32>
    %277 = vector.extract_strided_slice %275 {offsets = [0, 0], sizes = [2, 32], strides = [1, 1]} : vector<2x96xf32> to vector<2x32xf32>
    %278 = vector.extract_strided_slice %271 {offsets = [0, 0], sizes = [2, 32], strides = [1, 1]} : vector<2x96xf32> to vector<2x32xf32>
    %279 = arith.addf %277, %278 : vector<2x32xf32>
    %280 = arith.negf %279 : vector<2x32xf32>
    %281 = math.exp %280 : vector<2x32xf32>
    %cst_74 = arith.constant 1.000000e+00 : f32
    %282 = vector.broadcast %cst_74 : f32 to vector<2x32xf32>
    %283 = arith.addf %282, %281 : vector<2x32xf32>
    %284 = arith.divf %282, %283 : vector<2x32xf32>
    %285 = vector.extract_strided_slice %275 {offsets = [0, 32], sizes = [2, 32], strides = [1, 1]} : vector<2x96xf32> to vector<2x32xf32>
    %286 = vector.extract_strided_slice %271 {offsets = [0, 32], sizes = [2, 32], strides = [1, 1]} : vector<2x96xf32> to vector<2x32xf32>
    %287 = arith.addf %285, %286 : vector<2x32xf32>
    %288 = arith.negf %287 : vector<2x32xf32>
    %289 = math.exp %288 : vector<2x32xf32>
    %cst_75 = arith.constant 1.000000e+00 : f32
    %290 = vector.broadcast %cst_75 : f32 to vector<2x32xf32>
    %291 = arith.addf %290, %289 : vector<2x32xf32>
    %292 = arith.divf %290, %291 : vector<2x32xf32>
    %293 = vector.extract_strided_slice %275 {offsets = [0, 64], sizes = [2, 32], strides = [1, 1]} : vector<2x96xf32> to vector<2x32xf32>
    %294 = vector.extract_strided_slice %271 {offsets = [0, 64], sizes = [2, 32], strides = [1, 1]} : vector<2x96xf32> to vector<2x32xf32>
    %295 = arith.mulf %284, %294 : vector<2x32xf32>
    %296 = arith.addf %293, %295 : vector<2x32xf32>
    %297 = math.tanh %296 : vector<2x32xf32>
    %cst_76 = arith.constant 1.000000e+00 : f32
    %298 = vector.broadcast %cst_76 : f32 to vector<2x32xf32>
    %299 = arith.subf %298, %292 : vector<2x32xf32>
    %300 = arith.mulf %299, %297 : vector<2x32xf32>
    %301 = arith.mulf %292, %238 : vector<2x32xf32>
    %302 = arith.addf %300, %301 : vector<2x32xf32>
    %303 = vector.extract_strided_slice %276 {offsets = [0, 0], sizes = [2, 32], strides = [1, 1]} : vector<2x96xf32> to vector<2x32xf32>
    %304 = vector.extract_strided_slice %274 {offsets = [0, 0], sizes = [2, 32], strides = [1, 1]} : vector<2x96xf32> to vector<2x32xf32>
    %305 = arith.addf %303, %304 : vector<2x32xf32>
    %306 = arith.negf %305 : vector<2x32xf32>
    %307 = math.exp %306 : vector<2x32xf32>
    %cst_77 = arith.constant 1.000000e+00 : f32
    %308 = vector.broadcast %cst_77 : f32 to vector<2x32xf32>
    %309 = arith.addf %308, %307 : vector<2x32xf32>
    %310 = arith.divf %308, %309 : vector<2x32xf32>
    %311 = vector.extract_strided_slice %276 {offsets = [0, 32], sizes = [2, 32], strides = [1, 1]} : vector<2x96xf32> to vector<2x32xf32>
    %312 = vector.extract_strided_slice %274 {offsets = [0, 32], sizes = [2, 32], strides = [1, 1]} : vector<2x96xf32> to vector<2x32xf32>
    %313 = arith.addf %311, %312 : vector<2x32xf32>
    %314 = arith.negf %313 : vector<2x32xf32>
    %315 = math.exp %314 : vector<2x32xf32>
    %cst_78 = arith.constant 1.000000e+00 : f32
    %316 = vector.broadcast %cst_78 : f32 to vector<2x32xf32>
    %317 = arith.addf %316, %315 : vector<2x32xf32>
    %318 = arith.divf %316, %317 : vector<2x32xf32>
    %319 = vector.extract_strided_slice %276 {offsets = [0, 64], sizes = [2, 32], strides = [1, 1]} : vector<2x96xf32> to vector<2x32xf32>
    %320 = vector.extract_strided_slice %274 {offsets = [0, 64], sizes = [2, 32], strides = [1, 1]} : vector<2x96xf32> to vector<2x32xf32>
    %321 = arith.mulf %310, %320 : vector<2x32xf32>
    %322 = arith.addf %319, %321 : vector<2x32xf32>
    %323 = math.tanh %322 : vector<2x32xf32>
    %cst_79 = arith.constant 1.000000e+00 : f32
    %324 = vector.broadcast %cst_79 : f32 to vector<2x32xf32>
    %325 = arith.subf %324, %318 : vector<2x32xf32>
    %326 = arith.mulf %325, %323 : vector<2x32xf32>
    %327 = arith.mulf %318, %264 : vector<2x32xf32>
    %328 = arith.addf %326, %327 : vector<2x32xf32>
    %329 = arith.truncf %302 : vector<2x32xf32> to vector<2x32xbf16>
    %c8_80 = arith.constant 8 : index
    %c0_81 = arith.constant 0 : index
    %330 = vector.load %arg7[%c8_80, %c0_81] : memref<16x32xbf16, #tpu.memory_space<vmem>>, vector<2x32xbf16>
    tpu.vector_store %arg7[%c8_80, %c0_81], %329 {strides = array<i32>} : memref<16x32xbf16, #tpu.memory_space<vmem>>, vector<2x32xbf16>,
    %331 = arith.truncf %328 : vector<2x32xf32> to vector<2x32xbf16>
    %c6_82 = arith.constant 6 : index
    %c0_83 = arith.constant 0 : index
    %332 = vector.load %arg8[%c6_82, %c0_83] : memref<16x32xbf16, #tpu.memory_space<vmem>>, vector<2x32xbf16>
    tpu.vector_store %arg8[%c6_82, %c0_83], %331 {strides = array<i32>} : memref<16x32xbf16, #tpu.memory_space<vmem>>, vector<2x32xbf16>,
    %333 = arith.truncf %302 : vector<2x32xf32> to vector<2x32xbf16>
    %cst_84 = arith.constant dense<0.000000e+00> : vector<2x96xf32>
    %334 = tpu.matmul %333, %3, %cst_84 {dimension_numbers = #tpu.dot_dimension_numbers<[1], [0], [0], [1], [0, 0, 1, 1], [], []>} : vector<2x32xbf16>, vector<32x96xbf16>, vector<2x96xf32> -> vector<2x96xf32>
    %335 = arith.addf %334, %7 : vector<2x96xf32>
    %336 = arith.truncf %328 : vector<2x32xf32> to vector<2x32xbf16>
    %cst_85 = arith.constant dense<0.000000e+00> : vector<2x96xf32>
    %337 = tpu.matmul %336, %4, %cst_85 {dimension_numbers = #tpu.dot_dimension_numbers<[1], [0], [0], [1], [0, 0, 1, 1], [], []>} : vector<2x32xbf16>, vector<32x96xbf16>, vector<2x96xf32> -> vector<2x96xf32>
    %338 = arith.addf %337, %10 : vector<2x96xf32>
    %c10_86 = arith.constant 10 : index
    %c0_87 = arith.constant 0 : index
    %339 = vector.load %arg1[%c10_86, %c0_87] : memref<16x96xf32, #tpu.memory_space<vmem>>, vector<2x96xf32>
    %c4_88 = arith.constant 4 : index
    %c0_89 = arith.constant 0 : index
    %340 = vector.load %arg2[%c4_88, %c0_89] : memref<16x96xf32, #tpu.memory_space<vmem>>, vector<2x96xf32>
    %341 = vector.extract_strided_slice %339 {offsets = [0, 0], sizes = [2, 32], strides = [1, 1]} : vector<2x96xf32> to vector<2x32xf32>
    %342 = vector.extract_strided_slice %335 {offsets = [0, 0], sizes = [2, 32], strides = [1, 1]} : vector<2x96xf32> to vector<2x32xf32>
    %343 = arith.addf %341, %342 : vector<2x32xf32>
    %344 = arith.negf %343 : vector<2x32xf32>
    %345 = math.exp %344 : vector<2x32xf32>
    %cst_90 = arith.constant 1.000000e+00 : f32
    %346 = vector.broadcast %cst_90 : f32 to vector<2x32xf32>
    %347 = arith.addf %346, %345 : vector<2x32xf32>
    %348 = arith.divf %346, %347 : vector<2x32xf32>
    %349 = vector.extract_strided_slice %339 {offsets = [0, 32], sizes = [2, 32], strides = [1, 1]} : vector<2x96xf32> to vector<2x32xf32>
    %350 = vector.extract_strided_slice %335 {offsets = [0, 32], sizes = [2, 32], strides = [1, 1]} : vector<2x96xf32> to vector<2x32xf32>
    %351 = arith.addf %349, %350 : vector<2x32xf32>
    %352 = arith.negf %351 : vector<2x32xf32>
    %353 = math.exp %352 : vector<2x32xf32>
    %cst_91 = arith.constant 1.000000e+00 : f32
    %354 = vector.broadcast %cst_91 : f32 to vector<2x32xf32>
    %355 = arith.addf %354, %353 : vector<2x32xf32>
    %356 = arith.divf %354, %355 : vector<2x32xf32>
    %357 = vector.extract_strided_slice %339 {offsets = [0, 64], sizes = [2, 32], strides = [1, 1]} : vector<2x96xf32> to vector<2x32xf32>
    %358 = vector.extract_strided_slice %335 {offsets = [0, 64], sizes = [2, 32], strides = [1, 1]} : vector<2x96xf32> to vector<2x32xf32>
    %359 = arith.mulf %348, %358 : vector<2x32xf32>
    %360 = arith.addf %357, %359 : vector<2x32xf32>
    %361 = math.tanh %360 : vector<2x32xf32>
    %cst_92 = arith.constant 1.000000e+00 : f32
    %362 = vector.broadcast %cst_92 : f32 to vector<2x32xf32>
    %363 = arith.subf %362, %356 : vector<2x32xf32>
    %364 = arith.mulf %363, %361 : vector<2x32xf32>
    %365 = arith.mulf %356, %302 : vector<2x32xf32>
    %366 = arith.addf %364, %365 : vector<2x32xf32>
    %367 = vector.extract_strided_slice %340 {offsets = [0, 0], sizes = [2, 32], strides = [1, 1]} : vector<2x96xf32> to vector<2x32xf32>
    %368 = vector.extract_strided_slice %338 {offsets = [0, 0], sizes = [2, 32], strides = [1, 1]} : vector<2x96xf32> to vector<2x32xf32>
    %369 = arith.addf %367, %368 : vector<2x32xf32>
    %370 = arith.negf %369 : vector<2x32xf32>
    %371 = math.exp %370 : vector<2x32xf32>
    %cst_93 = arith.constant 1.000000e+00 : f32
    %372 = vector.broadcast %cst_93 : f32 to vector<2x32xf32>
    %373 = arith.addf %372, %371 : vector<2x32xf32>
    %374 = arith.divf %372, %373 : vector<2x32xf32>
    %375 = vector.extract_strided_slice %340 {offsets = [0, 32], sizes = [2, 32], strides = [1, 1]} : vector<2x96xf32> to vector<2x32xf32>
    %376 = vector.extract_strided_slice %338 {offsets = [0, 32], sizes = [2, 32], strides = [1, 1]} : vector<2x96xf32> to vector<2x32xf32>
    %377 = arith.addf %375, %376 : vector<2x32xf32>
    %378 = arith.negf %377 : vector<2x32xf32>
    %379 = math.exp %378 : vector<2x32xf32>
    %cst_94 = arith.constant 1.000000e+00 : f32
    %380 = vector.broadcast %cst_94 : f32 to vector<2x32xf32>
    %381 = arith.addf %380, %379 : vector<2x32xf32>
    %382 = arith.divf %380, %381 : vector<2x32xf32>
    %383 = vector.extract_strided_slice %340 {offsets = [0, 64], sizes = [2, 32], strides = [1, 1]} : vector<2x96xf32> to vector<2x32xf32>
    %384 = vector.extract_strided_slice %338 {offsets = [0, 64], sizes = [2, 32], strides = [1, 1]} : vector<2x96xf32> to vector<2x32xf32>
    %385 = arith.mulf %374, %384 : vector<2x32xf32>
    %386 = arith.addf %383, %385 : vector<2x32xf32>
    %387 = math.tanh %386 : vector<2x32xf32>
    %cst_95 = arith.constant 1.000000e+00 : f32
    %388 = vector.broadcast %cst_95 : f32 to vector<2x32xf32>
    %389 = arith.subf %388, %382 : vector<2x32xf32>
    %390 = arith.mulf %389, %387 : vector<2x32xf32>
    %391 = arith.mulf %382, %328 : vector<2x32xf32>
    %392 = arith.addf %390, %391 : vector<2x32xf32>
    %393 = arith.truncf %366 : vector<2x32xf32> to vector<2x32xbf16>
    %c10_96 = arith.constant 10 : index
    %c0_97 = arith.constant 0 : index
    %394 = vector.load %arg7[%c10_96, %c0_97] : memref<16x32xbf16, #tpu.memory_space<vmem>>, vector<2x32xbf16>
    tpu.vector_store %arg7[%c10_96, %c0_97], %393 {strides = array<i32>} : memref<16x32xbf16, #tpu.memory_space<vmem>>, vector<2x32xbf16>,
    %395 = arith.truncf %392 : vector<2x32xf32> to vector<2x32xbf16>
    %c4_98 = arith.constant 4 : index
    %c0_99 = arith.constant 0 : index
    %396 = vector.load %arg8[%c4_98, %c0_99] : memref<16x32xbf16, #tpu.memory_space<vmem>>, vector<2x32xbf16>
    tpu.vector_store %arg8[%c4_98, %c0_99], %395 {strides = array<i32>} : memref<16x32xbf16, #tpu.memory_space<vmem>>, vector<2x32xbf16>,
    %397 = arith.truncf %366 : vector<2x32xf32> to vector<2x32xbf16>
    %cst_100 = arith.constant dense<0.000000e+00> : vector<2x96xf32>
    %398 = tpu.matmul %397, %3, %cst_100 {dimension_numbers = #tpu.dot_dimension_numbers<[1], [0], [0], [1], [0, 0, 1, 1], [], []>} : vector<2x32xbf16>, vector<32x96xbf16>, vector<2x96xf32> -> vector<2x96xf32>
    %399 = arith.addf %398, %7 : vector<2x96xf32>
    %400 = arith.truncf %392 : vector<2x32xf32> to vector<2x32xbf16>
    %cst_101 = arith.constant dense<0.000000e+00> : vector<2x96xf32>
    %401 = tpu.matmul %400, %4, %cst_101 {dimension_numbers = #tpu.dot_dimension_numbers<[1], [0], [0], [1], [0, 0, 1, 1], [], []>} : vector<2x32xbf16>, vector<32x96xbf16>, vector<2x96xf32> -> vector<2x96xf32>
    %402 = arith.addf %401, %10 : vector<2x96xf32>
    %c12_102 = arith.constant 12 : index
    %c0_103 = arith.constant 0 : index
    %403 = vector.load %arg1[%c12_102, %c0_103] : memref<16x96xf32, #tpu.memory_space<vmem>>, vector<2x96xf32>
    %c2_104 = arith.constant 2 : index
    %c0_105 = arith.constant 0 : index
    %404 = vector.load %arg2[%c2_104, %c0_105] : memref<16x96xf32, #tpu.memory_space<vmem>>, vector<2x96xf32>
    %405 = vector.extract_strided_slice %403 {offsets = [0, 0], sizes = [2, 32], strides = [1, 1]} : vector<2x96xf32> to vector<2x32xf32>
    %406 = vector.extract_strided_slice %399 {offsets = [0, 0], sizes = [2, 32], strides = [1, 1]} : vector<2x96xf32> to vector<2x32xf32>
    %407 = arith.addf %405, %406 : vector<2x32xf32>
    %408 = arith.negf %407 : vector<2x32xf32>
    %409 = math.exp %408 : vector<2x32xf32>
    %cst_106 = arith.constant 1.000000e+00 : f32
    %410 = vector.broadcast %cst_106 : f32 to vector<2x32xf32>
    %411 = arith.addf %410, %409 : vector<2x32xf32>
    %412 = arith.divf %410, %411 : vector<2x32xf32>
    %413 = vector.extract_strided_slice %403 {offsets = [0, 32], sizes = [2, 32], strides = [1, 1]} : vector<2x96xf32> to vector<2x32xf32>
    %414 = vector.extract_strided_slice %399 {offsets = [0, 32], sizes = [2, 32], strides = [1, 1]} : vector<2x96xf32> to vector<2x32xf32>
    %415 = arith.addf %413, %414 : vector<2x32xf32>
    %416 = arith.negf %415 : vector<2x32xf32>
    %417 = math.exp %416 : vector<2x32xf32>
    %cst_107 = arith.constant 1.000000e+00 : f32
    %418 = vector.broadcast %cst_107 : f32 to vector<2x32xf32>
    %419 = arith.addf %418, %417 : vector<2x32xf32>
    %420 = arith.divf %418, %419 : vector<2x32xf32>
    %421 = vector.extract_strided_slice %403 {offsets = [0, 64], sizes = [2, 32], strides = [1, 1]} : vector<2x96xf32> to vector<2x32xf32>
    %422 = vector.extract_strided_slice %399 {offsets = [0, 64], sizes = [2, 32], strides = [1, 1]} : vector<2x96xf32> to vector<2x32xf32>
    %423 = arith.mulf %412, %422 : vector<2x32xf32>
    %424 = arith.addf %421, %423 : vector<2x32xf32>
    %425 = math.tanh %424 : vector<2x32xf32>
    %cst_108 = arith.constant 1.000000e+00 : f32
    %426 = vector.broadcast %cst_108 : f32 to vector<2x32xf32>
    %427 = arith.subf %426, %420 : vector<2x32xf32>
    %428 = arith.mulf %427, %425 : vector<2x32xf32>
    %429 = arith.mulf %420, %366 : vector<2x32xf32>
    %430 = arith.addf %428, %429 : vector<2x32xf32>
    %431 = vector.extract_strided_slice %404 {offsets = [0, 0], sizes = [2, 32], strides = [1, 1]} : vector<2x96xf32> to vector<2x32xf32>
    %432 = vector.extract_strided_slice %402 {offsets = [0, 0], sizes = [2, 32], strides = [1, 1]} : vector<2x96xf32> to vector<2x32xf32>
    %433 = arith.addf %431, %432 : vector<2x32xf32>
    %434 = arith.negf %433 : vector<2x32xf32>
    %435 = math.exp %434 : vector<2x32xf32>
    %cst_109 = arith.constant 1.000000e+00 : f32
    %436 = vector.broadcast %cst_109 : f32 to vector<2x32xf32>
    %437 = arith.addf %436, %435 : vector<2x32xf32>
    %438 = arith.divf %436, %437 : vector<2x32xf32>
    %439 = vector.extract_strided_slice %404 {offsets = [0, 32], sizes = [2, 32], strides = [1, 1]} : vector<2x96xf32> to vector<2x32xf32>
    %440 = vector.extract_strided_slice %402 {offsets = [0, 32], sizes = [2, 32], strides = [1, 1]} : vector<2x96xf32> to vector<2x32xf32>
    %441 = arith.addf %439, %440 : vector<2x32xf32>
    %442 = arith.negf %441 : vector<2x32xf32>
    %443 = math.exp %442 : vector<2x32xf32>
    %cst_110 = arith.constant 1.000000e+00 : f32
    %444 = vector.broadcast %cst_110 : f32 to vector<2x32xf32>
    %445 = arith.addf %444, %443 : vector<2x32xf32>
    %446 = arith.divf %444, %445 : vector<2x32xf32>
    %447 = vector.extract_strided_slice %404 {offsets = [0, 64], sizes = [2, 32], strides = [1, 1]} : vector<2x96xf32> to vector<2x32xf32>
    %448 = vector.extract_strided_slice %402 {offsets = [0, 64], sizes = [2, 32], strides = [1, 1]} : vector<2x96xf32> to vector<2x32xf32>
    %449 = arith.mulf %438, %448 : vector<2x32xf32>
    %450 = arith.addf %447, %449 : vector<2x32xf32>
    %451 = math.tanh %450 : vector<2x32xf32>
    %cst_111 = arith.constant 1.000000e+00 : f32
    %452 = vector.broadcast %cst_111 : f32 to vector<2x32xf32>
    %453 = arith.subf %452, %446 : vector<2x32xf32>
    %454 = arith.mulf %453, %451 : vector<2x32xf32>
    %455 = arith.mulf %446, %392 : vector<2x32xf32>
    %456 = arith.addf %454, %455 : vector<2x32xf32>
    %457 = arith.truncf %430 : vector<2x32xf32> to vector<2x32xbf16>
    %c12_112 = arith.constant 12 : index
    %c0_113 = arith.constant 0 : index
    %458 = vector.load %arg7[%c12_112, %c0_113] : memref<16x32xbf16, #tpu.memory_space<vmem>>, vector<2x32xbf16>
    tpu.vector_store %arg7[%c12_112, %c0_113], %457 {strides = array<i32>} : memref<16x32xbf16, #tpu.memory_space<vmem>>, vector<2x32xbf16>,
    %459 = arith.truncf %456 : vector<2x32xf32> to vector<2x32xbf16>
    %c2_114 = arith.constant 2 : index
    %c0_115 = arith.constant 0 : index
    %460 = vector.load %arg8[%c2_114, %c0_115] : memref<16x32xbf16, #tpu.memory_space<vmem>>, vector<2x32xbf16>
    tpu.vector_store %arg8[%c2_114, %c0_115], %459 {strides = array<i32>} : memref<16x32xbf16, #tpu.memory_space<vmem>>, vector<2x32xbf16>,
    %461 = arith.truncf %430 : vector<2x32xf32> to vector<2x32xbf16>
    %cst_116 = arith.constant dense<0.000000e+00> : vector<2x96xf32>
    %462 = tpu.matmul %461, %3, %cst_116 {dimension_numbers = #tpu.dot_dimension_numbers<[1], [0], [0], [1], [0, 0, 1, 1], [], []>} : vector<2x32xbf16>, vector<32x96xbf16>, vector<2x96xf32> -> vector<2x96xf32>
    %463 = arith.addf %462, %7 : vector<2x96xf32>
    %464 = arith.truncf %456 : vector<2x32xf32> to vector<2x32xbf16>
    %cst_117 = arith.constant dense<0.000000e+00> : vector<2x96xf32>
    %465 = tpu.matmul %464, %4, %cst_117 {dimension_numbers = #tpu.dot_dimension_numbers<[1], [0], [0], [1], [0, 0, 1, 1], [], []>} : vector<2x32xbf16>, vector<32x96xbf16>, vector<2x96xf32> -> vector<2x96xf32>
    %466 = arith.addf %465, %10 : vector<2x96xf32>
    %c14_118 = arith.constant 14 : index
    %c0_119 = arith.constant 0 : index
    %467 = vector.load %arg1[%c14_118, %c0_119] : memref<16x96xf32, #tpu.memory_space<vmem>>, vector<2x96xf32>
    %c0_120 = arith.constant 0 : index
    %c0_121 = arith.constant 0 : index
    %468 = vector.load %arg2[%c0_120, %c0_121] : memref<16x96xf32, #tpu.memory_space<vmem>>, vector<2x96xf32>
    %469 = vector.extract_strided_slice %467 {offsets = [0, 0], sizes = [2, 32], strides = [1, 1]} : vector<2x96xf32> to vector<2x32xf32>
    %470 = vector.extract_strided_slice %463 {offsets = [0, 0], sizes = [2, 32], strides = [1, 1]} : vector<2x96xf32> to vector<2x32xf32>
    %471 = arith.addf %469, %470 : vector<2x32xf32>
    %472 = arith.negf %471 : vector<2x32xf32>
    %473 = math.exp %472 : vector<2x32xf32>
    %cst_122 = arith.constant 1.000000e+00 : f32
    %474 = vector.broadcast %cst_122 : f32 to vector<2x32xf32>
    %475 = arith.addf %474, %473 : vector<2x32xf32>
    %476 = arith.divf %474, %475 : vector<2x32xf32>
    %477 = vector.extract_strided_slice %467 {offsets = [0, 32], sizes = [2, 32], strides = [1, 1]} : vector<2x96xf32> to vector<2x32xf32>
    %478 = vector.extract_strided_slice %463 {offsets = [0, 32], sizes = [2, 32], strides = [1, 1]} : vector<2x96xf32> to vector<2x32xf32>
    %479 = arith.addf %477, %478 : vector<2x32xf32>
    %480 = arith.negf %479 : vector<2x32xf32>
    %481 = math.exp %480 : vector<2x32xf32>
    %cst_123 = arith.constant 1.000000e+00 : f32
    %482 = vector.broadcast %cst_123 : f32 to vector<2x32xf32>
    %483 = arith.addf %482, %481 : vector<2x32xf32>
    %484 = arith.divf %482, %483 : vector<2x32xf32>
    %485 = vector.extract_strided_slice %467 {offsets = [0, 64], sizes = [2, 32], strides = [1, 1]} : vector<2x96xf32> to vector<2x32xf32>
    %486 = vector.extract_strided_slice %463 {offsets = [0, 64], sizes = [2, 32], strides = [1, 1]} : vector<2x96xf32> to vector<2x32xf32>
    %487 = arith.mulf %476, %486 : vector<2x32xf32>
    %488 = arith.addf %485, %487 : vector<2x32xf32>
    %489 = math.tanh %488 : vector<2x32xf32>
    %cst_124 = arith.constant 1.000000e+00 : f32
    %490 = vector.broadcast %cst_124 : f32 to vector<2x32xf32>
    %491 = arith.subf %490, %484 : vector<2x32xf32>
    %492 = arith.mulf %491, %489 : vector<2x32xf32>
    %493 = arith.mulf %484, %430 : vector<2x32xf32>
    %494 = arith.addf %492, %493 : vector<2x32xf32>
    %495 = vector.extract_strided_slice %468 {offsets = [0, 0], sizes = [2, 32], strides = [1, 1]} : vector<2x96xf32> to vector<2x32xf32>
    %496 = vector.extract_strided_slice %466 {offsets = [0, 0], sizes = [2, 32], strides = [1, 1]} : vector<2x96xf32> to vector<2x32xf32>
    %497 = arith.addf %495, %496 : vector<2x32xf32>
    %498 = arith.negf %497 : vector<2x32xf32>
    %499 = math.exp %498 : vector<2x32xf32>
    %cst_125 = arith.constant 1.000000e+00 : f32
    %500 = vector.broadcast %cst_125 : f32 to vector<2x32xf32>
    %501 = arith.addf %500, %499 : vector<2x32xf32>
    %502 = arith.divf %500, %501 : vector<2x32xf32>
    %503 = vector.extract_strided_slice %468 {offsets = [0, 32], sizes = [2, 32], strides = [1, 1]} : vector<2x96xf32> to vector<2x32xf32>
    %504 = vector.extract_strided_slice %466 {offsets = [0, 32], sizes = [2, 32], strides = [1, 1]} : vector<2x96xf32> to vector<2x32xf32>
    %505 = arith.addf %503, %504 : vector<2x32xf32>
    %506 = arith.negf %505 : vector<2x32xf32>
    %507 = math.exp %506 : vector<2x32xf32>
    %cst_126 = arith.constant 1.000000e+00 : f32
    %508 = vector.broadcast %cst_126 : f32 to vector<2x32xf32>
    %509 = arith.addf %508, %507 : vector<2x32xf32>
    %510 = arith.divf %508, %509 : vector<2x32xf32>
    %511 = vector.extract_strided_slice %468 {offsets = [0, 64], sizes = [2, 32], strides = [1, 1]} : vector<2x96xf32> to vector<2x32xf32>
    %512 = vector.extract_strided_slice %466 {offsets = [0, 64], sizes = [2, 32], strides = [1, 1]} : vector<2x96xf32> to vector<2x32xf32>
    %513 = arith.mulf %502, %512 : vector<2x32xf32>
    %514 = arith.addf %511, %513 : vector<2x32xf32>
    %515 = math.tanh %514 : vector<2x32xf32>
    %cst_127 = arith.constant 1.000000e+00 : f32
    %516 = vector.broadcast %cst_127 : f32 to vector<2x32xf32>
    %517 = arith.subf %516, %510 : vector<2x32xf32>
    %518 = arith.mulf %517, %515 : vector<2x32xf32>
    %519 = arith.mulf %510, %456 : vector<2x32xf32>
    %520 = arith.addf %518, %519 : vector<2x32xf32>
    %521 = arith.truncf %494 : vector<2x32xf32> to vector<2x32xbf16>
    %c14_128 = arith.constant 14 : index
    %c0_129 = arith.constant 0 : index
    %522 = vector.load %arg7[%c14_128, %c0_129] : memref<16x32xbf16, #tpu.memory_space<vmem>>, vector<2x32xbf16>
    tpu.vector_store %arg7[%c14_128, %c0_129], %521 {strides = array<i32>} : memref<16x32xbf16, #tpu.memory_space<vmem>>, vector<2x32xbf16>,
    %523 = arith.truncf %520 : vector<2x32xf32> to vector<2x32xbf16>
    %c0_130 = arith.constant 0 : index
    %c0_131 = arith.constant 0 : index
    %524 = vector.load %arg8[%c0_130, %c0_131] : memref<16x32xbf16, #tpu.memory_space<vmem>>, vector<2x32xbf16>
    tpu.vector_store %arg8[%c0_130, %c0_131], %523 {strides = array<i32>} : memref<16x32xbf16, #tpu.memory_space<vmem>>, vector<2x32xbf16>,
    %c0_132 = arith.constant 0 : index
    %c0_133 = arith.constant 0 : index
    %525 = vector.load %arg9[%c0_132, %c0_133] : memref<2x32xf32, #tpu.memory_space<vmem>>, vector<2x32xf32>
    tpu.vector_store %arg9[%c0_132, %c0_133], %494 {strides = array<i32>} : memref<2x32xf32, #tpu.memory_space<vmem>>, vector<2x32xf32>,
    %c0_134 = arith.constant 0 : index
    %c0_135 = arith.constant 0 : index
    %526 = vector.load %arg10[%c0_134, %c0_135] : memref<2x32xf32, #tpu.memory_space<vmem>>, vector<2x32xf32>
    tpu.vector_store %arg10[%c0_134, %c0_135], %520 {strides = array<i32>} : memref<2x32xf32, #tpu.memory_space<vmem>>, vector<2x32xf32>,
    return
  }
  func.func @transform_0(%arg0: i32) -> (i32, i32) {
    %c0_i32 = arith.constant 0 : i32
    %c0_i32_0 = arith.constant 0 : i32
    return %arg0, %c0_i32 : i32, i32
  }
  func.func @transform_1(%arg0: i32) -> (i32, i32) {
    %c0_i32 = arith.constant 0 : i32
    %0 = arith.subi %c0_i32, %arg0 : i32
    %c0_i32_0 = arith.constant 0 : i32
    %c0_i32_1 = arith.constant 0 : i32
    return %0, %c0_i32_0 : i32, i32
  }
  func.func @transform_2(%arg0: i32) -> (i32, i32) {
    %c0_i32 = arith.constant 0 : i32
    %c0_i32_0 = arith.constant 0 : i32
    %c0_i32_1 = arith.constant 0 : i32
    return %c0_i32, %c0_i32_0 : i32, i32
  }
  func.func @transform_3(%arg0: i32) -> (i32, i32) {
    %c0_i32 = arith.constant 0 : i32
    %c0_i32_0 = arith.constant 0 : i32
    %c0_i32_1 = arith.constant 0 : i32
    return %c0_i32, %c0_i32_0 : i32, i32
  }
  func.func @transform_4(%arg0: i32) -> (i32, i32) {
    %c0_i32 = arith.constant 0 : i32
    %c0_i32_0 = arith.constant 0 : i32
    %c0_i32_1 = arith.constant 0 : i32
    return %c0_i32, %c0_i32_0 : i32, i32
  }
  func.func @transform_5(%arg0: i32) -> (i32, i32) {
    %c0_i32 = arith.constant 0 : i32
    %c0_i32_0 = arith.constant 0 : i32
    %c0_i32_1 = arith.constant 0 : i32
    return %c0_i32, %c0_i32_0 : i32, i32
  }
  func.func @transform_6(%arg0: i32) -> (i32, i32) {
    %c0_i32 = arith.constant 0 : i32
    %c0_i32_0 = arith.constant 0 : i32
    return %arg0, %c0_i32 : i32, i32
  }
  func.func @transform_7(%arg0: i32) -> (i32, i32) {
    %c0_i32 = arith.constant 0 : i32
    %0 = arith.subi %c0_i32, %arg0 : i32
    %c0_i32_0 = arith.constant 0 : i32
    %c0_i32_1 = arith.constant 0 : i32
    return %0, %c0_i32_0 : i32, i32
  }
}

module attributes {stable_mosaic.version = 11 : i64} {
  func.func @_rowblock_matmul_kernel(%arg0: i32, %arg1: memref<16x32xbf16, #tpu.memory_space<vmem>>, %arg2: memref<16x32xbf16, #tpu.memory_space<vmem>>, %arg3: memref<32x96xbf16, #tpu.memory_space<vmem>>, %arg4: memref<32x96xbf16, #tpu.memory_space<vmem>>, %arg5: memref<1x96xf32, #tpu.memory_space<vmem>>, %arg6: memref<32x96xbf16, #tpu.memory_space<vmem>>, %arg7: memref<32x96xbf16, #tpu.memory_space<vmem>>, %arg8: memref<1x96xf32, #tpu.memory_space<vmem>>, %arg9: memref<16x96xf32, #tpu.memory_space<vmem>>, %arg10: memref<16x96xf32, #tpu.memory_space<vmem>>) attributes {dimension_semantics = [#tpu.dimension_semantics<parallel>], iteration_bounds = array<i64: 1>, scalar_prefetch = 0 : i64, scratch_operands = 0 : i64, tpu.core_type = #tpu.core_type<tc>, window_params = [{transform_indices = @transform_0, window_bounds = array<i64: 16, 32>}, {transform_indices = @transform_1, window_bounds = array<i64: 16, 32>}, {pipeline_mode = #tpu.pipeline_mode<synchronous>, transform_indices = @transform_2, window_bounds = array<i64: 32, 96>}, {pipeline_mode = #tpu.pipeline_mode<synchronous>, transform_indices = @transform_3, window_bounds = array<i64: 32, 96>}, {pipeline_mode = #tpu.pipeline_mode<synchronous>, transform_indices = @transform_4, window_bounds = array<i64: 1, 96>}, {pipeline_mode = #tpu.pipeline_mode<synchronous>, transform_indices = @transform_5, window_bounds = array<i64: 32, 96>}, {pipeline_mode = #tpu.pipeline_mode<synchronous>, transform_indices = @transform_6, window_bounds = array<i64: 32, 96>}, {pipeline_mode = #tpu.pipeline_mode<synchronous>, transform_indices = @transform_7, window_bounds = array<i64: 1, 96>}, {transform_indices = @transform_8, window_bounds = array<i64: 16, 96>}, {transform_indices = @transform_9, window_bounds = array<i64: 16, 96>}]} {
    %c0 = arith.constant 0 : index
    %c0_0 = arith.constant 0 : index
    %0 = vector.load %arg1[%c0, %c0_0] : memref<16x32xbf16, #tpu.memory_space<vmem>>, vector<16x32xbf16>
    %c0_1 = arith.constant 0 : index
    %c0_2 = arith.constant 0 : index
    %1 = vector.load %arg2[%c0_1, %c0_2] : memref<16x32xbf16, #tpu.memory_space<vmem>>, vector<16x32xbf16>
    %c0_3 = arith.constant 0 : index
    %c0_4 = arith.constant 0 : index
    %2 = vector.load %arg3[%c0_3, %c0_4] : memref<32x96xbf16, #tpu.memory_space<vmem>>, vector<32x96xbf16>
    %cst = arith.constant dense<0.000000e+00> : vector<16x96xf32>
    %3 = tpu.matmul %0, %2, %cst {dimension_numbers = #tpu.dot_dimension_numbers<[1], [0], [0], [1], [0, 0, 1, 1], [], []>} : vector<16x32xbf16>, vector<32x96xbf16>, vector<16x96xf32> -> vector<16x96xf32>
    %c0_5 = arith.constant 0 : index
    %c0_6 = arith.constant 0 : index
    %4 = vector.load %arg4[%c0_5, %c0_6] : memref<32x96xbf16, #tpu.memory_space<vmem>>, vector<32x96xbf16>
    %cst_7 = arith.constant dense<0.000000e+00> : vector<16x96xf32>
    %5 = tpu.matmul %1, %4, %cst_7 {dimension_numbers = #tpu.dot_dimension_numbers<[1], [0], [0], [1], [0, 0, 1, 1], [], []>} : vector<16x32xbf16>, vector<32x96xbf16>, vector<16x96xf32> -> vector<16x96xf32>
    %6 = arith.addf %3, %5 : vector<16x96xf32>
    %c0_8 = arith.constant 0 : index
    %c0_9 = arith.constant 0 : index
    %7 = vector.load %arg5[%c0_8, %c0_9] : memref<1x96xf32, #tpu.memory_space<vmem>>, vector<1x96xf32>
    %8 = vector.broadcast %7 : vector<1x96xf32> to vector<16x96xf32>
    %9 = arith.addf %6, %8 : vector<16x96xf32>
    %c0_10 = arith.constant 0 : index
    %c0_11 = arith.constant 0 : index
    %10 = vector.load %arg9[%c0_10, %c0_11] : memref<16x96xf32, #tpu.memory_space<vmem>>, vector<16x96xf32>
    tpu.vector_store %arg9[%c0_10, %c0_11], %9 {strides = array<i32>} : memref<16x96xf32, #tpu.memory_space<vmem>>, vector<16x96xf32>,
    %c0_12 = arith.constant 0 : index
    %c0_13 = arith.constant 0 : index
    %11 = vector.load %arg6[%c0_12, %c0_13] : memref<32x96xbf16, #tpu.memory_space<vmem>>, vector<32x96xbf16>
    %cst_14 = arith.constant dense<0.000000e+00> : vector<16x96xf32>
    %12 = tpu.matmul %0, %11, %cst_14 {dimension_numbers = #tpu.dot_dimension_numbers<[1], [0], [0], [1], [0, 0, 1, 1], [], []>} : vector<16x32xbf16>, vector<32x96xbf16>, vector<16x96xf32> -> vector<16x96xf32>
    %c0_15 = arith.constant 0 : index
    %c0_16 = arith.constant 0 : index
    %13 = vector.load %arg7[%c0_15, %c0_16] : memref<32x96xbf16, #tpu.memory_space<vmem>>, vector<32x96xbf16>
    %cst_17 = arith.constant dense<0.000000e+00> : vector<16x96xf32>
    %14 = tpu.matmul %1, %13, %cst_17 {dimension_numbers = #tpu.dot_dimension_numbers<[1], [0], [0], [1], [0, 0, 1, 1], [], []>} : vector<16x32xbf16>, vector<32x96xbf16>, vector<16x96xf32> -> vector<16x96xf32>
    %15 = arith.addf %12, %14 : vector<16x96xf32>
    %c0_18 = arith.constant 0 : index
    %c0_19 = arith.constant 0 : index
    %16 = vector.load %arg8[%c0_18, %c0_19] : memref<1x96xf32, #tpu.memory_space<vmem>>, vector<1x96xf32>
    %17 = vector.broadcast %16 : vector<1x96xf32> to vector<16x96xf32>
    %18 = arith.addf %15, %17 : vector<16x96xf32>
    %c0_20 = arith.constant 0 : index
    %c0_21 = arith.constant 0 : index
    %19 = vector.load %arg10[%c0_20, %c0_21] : memref<16x96xf32, #tpu.memory_space<vmem>>, vector<16x96xf32>
    tpu.vector_store %arg10[%c0_20, %c0_21], %18 {strides = array<i32>} : memref<16x96xf32, #tpu.memory_space<vmem>>, vector<16x96xf32>,
    return
  }
  func.func @transform_0(%arg0: i32) -> (i32, i32) {
    %c0_i32 = arith.constant 0 : i32
    %c0_i32_0 = arith.constant 0 : i32
    return %arg0, %c0_i32 : i32, i32
  }
  func.func @transform_1(%arg0: i32) -> (i32, i32) {
    %c0_i32 = arith.constant 0 : i32
    %c0_i32_0 = arith.constant 0 : i32
    return %arg0, %c0_i32 : i32, i32
  }
  func.func @transform_2(%arg0: i32) -> (i32, i32) {
    %c0_i32 = arith.constant 0 : i32
    %c0_i32_0 = arith.constant 0 : i32
    %c0_i32_1 = arith.constant 0 : i32
    return %c0_i32, %c0_i32_0 : i32, i32
  }
  func.func @transform_3(%arg0: i32) -> (i32, i32) {
    %c0_i32 = arith.constant 0 : i32
    %c0_i32_0 = arith.constant 0 : i32
    %c0_i32_1 = arith.constant 0 : i32
    return %c0_i32, %c0_i32_0 : i32, i32
  }
  func.func @transform_4(%arg0: i32) -> (i32, i32) {
    %c0_i32 = arith.constant 0 : i32
    %c0_i32_0 = arith.constant 0 : i32
    %c0_i32_1 = arith.constant 0 : i32
    return %c0_i32, %c0_i32_0 : i32, i32
  }
  func.func @transform_5(%arg0: i32) -> (i32, i32) {
    %c0_i32 = arith.constant 0 : i32
    %c0_i32_0 = arith.constant 0 : i32
    %c0_i32_1 = arith.constant 0 : i32
    return %c0_i32, %c0_i32_0 : i32, i32
  }
  func.func @transform_6(%arg0: i32) -> (i32, i32) {
    %c0_i32 = arith.constant 0 : i32
    %c0_i32_0 = arith.constant 0 : i32
    %c0_i32_1 = arith.constant 0 : i32
    return %c0_i32, %c0_i32_0 : i32, i32
  }
  func.func @transform_7(%arg0: i32) -> (i32, i32) {
    %c0_i32 = arith.constant 0 : i32
    %c0_i32_0 = arith.constant 0 : i32
    %c0_i32_1 = arith.constant 0 : i32
    return %c0_i32, %c0_i32_0 : i32, i32
  }
  func.func @transform_8(%arg0: i32) -> (i32, i32) {
    %c0_i32 = arith.constant 0 : i32
    %c0_i32_0 = arith.constant 0 : i32
    return %arg0, %c0_i32 : i32, i32
  }
  func.func @transform_9(%arg0: i32) -> (i32, i32) {
    %c0_i32 = arith.constant 0 : i32
    %c0_i32_0 = arith.constant 0 : i32
    return %arg0, %c0_i32 : i32, i32
  }
}

module attributes {stable_mosaic.version = 11 : i64} {
  func.func @_rowblock_matmul_kernel(%arg0: i32, %arg1: memref<16x300xbf16, #tpu.memory_space<vmem>>, %arg2: memref<300x96xbf16, #tpu.memory_space<vmem>>, %arg3: memref<1x96xf32, #tpu.memory_space<vmem>>, %arg4: memref<300x96xbf16, #tpu.memory_space<vmem>>, %arg5: memref<1x96xf32, #tpu.memory_space<vmem>>, %arg6: memref<16x96xf32, #tpu.memory_space<vmem>>, %arg7: memref<16x96xf32, #tpu.memory_space<vmem>>) attributes {dimension_semantics = [#tpu.dimension_semantics<parallel>], iteration_bounds = array<i64: 1>, scalar_prefetch = 0 : i64, scratch_operands = 0 : i64, tpu.core_type = #tpu.core_type<tc>, window_params = [{transform_indices = @transform_0, window_bounds = array<i64: 16, 300>}, {pipeline_mode = #tpu.pipeline_mode<synchronous>, transform_indices = @transform_1, window_bounds = array<i64: 300, 96>}, {pipeline_mode = #tpu.pipeline_mode<synchronous>, transform_indices = @transform_2, window_bounds = array<i64: 1, 96>}, {pipeline_mode = #tpu.pipeline_mode<synchronous>, transform_indices = @transform_3, window_bounds = array<i64: 300, 96>}, {pipeline_mode = #tpu.pipeline_mode<synchronous>, transform_indices = @transform_4, window_bounds = array<i64: 1, 96>}, {transform_indices = @transform_5, window_bounds = array<i64: 16, 96>}, {transform_indices = @transform_6, window_bounds = array<i64: 16, 96>}]} {
    %c0 = arith.constant 0 : index
    %c0_0 = arith.constant 0 : index
    %0 = vector.load %arg1[%c0, %c0_0] : memref<16x300xbf16, #tpu.memory_space<vmem>>, vector<16x300xbf16>
    %c0_1 = arith.constant 0 : index
    %c0_2 = arith.constant 0 : index
    %1 = vector.load %arg2[%c0_1, %c0_2] : memref<300x96xbf16, #tpu.memory_space<vmem>>, vector<300x96xbf16>
    %cst = arith.constant dense<0.000000e+00> : vector<16x96xf32>
    %2 = tpu.matmul %0, %1, %cst {dimension_numbers = #tpu.dot_dimension_numbers<[1], [0], [0], [1], [0, 0, 1, 1], [], []>} : vector<16x300xbf16>, vector<300x96xbf16>, vector<16x96xf32> -> vector<16x96xf32>
    %c0_3 = arith.constant 0 : index
    %c0_4 = arith.constant 0 : index
    %3 = vector.load %arg3[%c0_3, %c0_4] : memref<1x96xf32, #tpu.memory_space<vmem>>, vector<1x96xf32>
    %4 = vector.broadcast %3 : vector<1x96xf32> to vector<16x96xf32>
    %5 = arith.addf %2, %4 : vector<16x96xf32>
    %c0_5 = arith.constant 0 : index
    %c0_6 = arith.constant 0 : index
    %6 = vector.load %arg6[%c0_5, %c0_6] : memref<16x96xf32, #tpu.memory_space<vmem>>, vector<16x96xf32>
    tpu.vector_store %arg6[%c0_5, %c0_6], %5 {strides = array<i32>} : memref<16x96xf32, #tpu.memory_space<vmem>>, vector<16x96xf32>,
    %c0_7 = arith.constant 0 : index
    %c0_8 = arith.constant 0 : index
    %7 = vector.load %arg4[%c0_7, %c0_8] : memref<300x96xbf16, #tpu.memory_space<vmem>>, vector<300x96xbf16>
    %cst_9 = arith.constant dense<0.000000e+00> : vector<16x96xf32>
    %8 = tpu.matmul %0, %7, %cst_9 {dimension_numbers = #tpu.dot_dimension_numbers<[1], [0], [0], [1], [0, 0, 1, 1], [], []>} : vector<16x300xbf16>, vector<300x96xbf16>, vector<16x96xf32> -> vector<16x96xf32>
    %c0_10 = arith.constant 0 : index
    %c0_11 = arith.constant 0 : index
    %9 = vector.load %arg5[%c0_10, %c0_11] : memref<1x96xf32, #tpu.memory_space<vmem>>, vector<1x96xf32>
    %10 = vector.broadcast %9 : vector<1x96xf32> to vector<16x96xf32>
    %11 = arith.addf %8, %10 : vector<16x96xf32>
    %c0_12 = arith.constant 0 : index
    %c0_13 = arith.constant 0 : index
    %12 = vector.load %arg7[%c0_12, %c0_13] : memref<16x96xf32, #tpu.memory_space<vmem>>, vector<16x96xf32>
    tpu.vector_store %arg7[%c0_12, %c0_13], %11 {strides = array<i32>} : memref<16x96xf32, #tpu.memory_space<vmem>>, vector<16x96xf32>,
    return
  }
  func.func @transform_0(%arg0: i32) -> (i32, i32) {
    %c0_i32 = arith.constant 0 : i32
    %c0_i32_0 = arith.constant 0 : i32
    return %arg0, %c0_i32 : i32, i32
  }
  func.func @transform_1(%arg0: i32) -> (i32, i32) {
    %c0_i32 = arith.constant 0 : i32
    %c0_i32_0 = arith.constant 0 : i32
    %c0_i32_1 = arith.constant 0 : i32
    return %c0_i32, %c0_i32_0 : i32, i32
  }
  func.func @transform_2(%arg0: i32) -> (i32, i32) {
    %c0_i32 = arith.constant 0 : i32
    %c0_i32_0 = arith.constant 0 : i32
    %c0_i32_1 = arith.constant 0 : i32
    return %c0_i32, %c0_i32_0 : i32, i32
  }
  func.func @transform_3(%arg0: i32) -> (i32, i32) {
    %c0_i32 = arith.constant 0 : i32
    %c0_i32_0 = arith.constant 0 : i32
    %c0_i32_1 = arith.constant 0 : i32
    return %c0_i32, %c0_i32_0 : i32, i32
  }
  func.func @transform_4(%arg0: i32) -> (i32, i32) {
    %c0_i32 = arith.constant 0 : i32
    %c0_i32_0 = arith.constant 0 : i32
    %c0_i32_1 = arith.constant 0 : i32
    return %c0_i32, %c0_i32_0 : i32, i32
  }
  func.func @transform_5(%arg0: i32) -> (i32, i32) {
    %c0_i32 = arith.constant 0 : i32
    %c0_i32_0 = arith.constant 0 : i32
    return %arg0, %c0_i32 : i32, i32
  }
  func.func @transform_6(%arg0: i32) -> (i32, i32) {
    %c0_i32 = arith.constant 0 : i32
    %c0_i32_0 = arith.constant 0 : i32
    return %arg0, %c0_i32 : i32, i32
  }
}

module attributes {stable_mosaic.version = 11 : i64} {
  func.func @_bigru_kernel(%arg0: i32, %arg1: memref<16x96xf32, #tpu.memory_space<vmem>>, %arg2: memref<16x96xf32, #tpu.memory_space<vmem>>, %arg3: memref<32x96xbf16, #tpu.memory_space<vmem>>, %arg4: memref<32x96xbf16, #tpu.memory_space<vmem>>, %arg5: memref<1x96xf32, #tpu.memory_space<vmem>>, %arg6: memref<1x96xf32, #tpu.memory_space<vmem>>, %arg7: memref<16x32xbf16, #tpu.memory_space<vmem>>, %arg8: memref<16x32xbf16, #tpu.memory_space<vmem>>, %arg9: memref<2x32xf32, #tpu.memory_space<vmem>>, %arg10: memref<2x32xf32, #tpu.memory_space<vmem>>) attributes {dimension_semantics = [#tpu.dimension_semantics<arbitrary>], iteration_bounds = array<i64: 1>, scalar_prefetch = 0 : i64, scratch_operands = 2 : i64, tpu.core_type = #tpu.core_type<tc>, window_params = [{transform_indices = @transform_0, window_bounds = array<i64: 16, 96>}, {transform_indices = @transform_1, window_bounds = array<i64: 16, 96>}, {pipeline_mode = #tpu.pipeline_mode<synchronous>, transform_indices = @transform_2, window_bounds = array<i64: 32, 96>}, {pipeline_mode = #tpu.pipeline_mode<synchronous>, transform_indices = @transform_3, window_bounds = array<i64: 32, 96>}, {pipeline_mode = #tpu.pipeline_mode<synchronous>, transform_indices = @transform_4, window_bounds = array<i64: 1, 96>}, {pipeline_mode = #tpu.pipeline_mode<synchronous>, transform_indices = @transform_5, window_bounds = array<i64: 1, 96>}, {transform_indices = @transform_6, window_bounds = array<i64: 16, 32>}, {transform_indices = @transform_7, window_bounds = array<i64: 16, 32>}]} {
    %c0_i32 = arith.constant 0 : i32
    %0 = arith.cmpi eq, %arg0, %c0_i32 : i32
    %1 = arith.extui %0 : i1 to i32
    %c0_i32_0 = arith.constant 0 : i32
    %2 = arith.cmpi ne, %1, %c0_i32_0 : i32
    scf.if %2 {
      %cst_136 = arith.constant 0.000000e+00 : f32
      %527 = vector.broadcast %cst_136 : f32 to vector<2x32xf32>
      %c0_137 = arith.constant 0 : index
      %c0_138 = arith.constant 0 : index
      %528 = vector.load %arg9[%c0_137, %c0_138] : memref<2x32xf32, #tpu.memory_space<vmem>>, vector<2x32xf32>
      tpu.vector_store %arg9[%c0_137, %c0_138], %527 {strides = array<i32>} : memref<2x32xf32, #tpu.memory_space<vmem>>, vector<2x32xf32>,
      %cst_139 = arith.constant 0.000000e+00 : f32
      %529 = vector.broadcast %cst_139 : f32 to vector<2x32xf32>
      %c0_140 = arith.constant 0 : index
      %c0_141 = arith.constant 0 : index
      %530 = vector.load %arg10[%c0_140, %c0_141] : memref<2x32xf32, #tpu.memory_space<vmem>>, vector<2x32xf32>
      tpu.vector_store %arg10[%c0_140, %c0_141], %529 {strides = array<i32>} : memref<2x32xf32, #tpu.memory_space<vmem>>, vector<2x32xf32>,
    } else {
    }
    %c0 = arith.constant 0 : index
    %c0_1 = arith.constant 0 : index
    %3 = vector.load %arg3[%c0, %c0_1] : memref<32x96xbf16, #tpu.memory_space<vmem>>, vector<32x96xbf16>
    %c0_2 = arith.constant 0 : index
    %c0_3 = arith.constant 0 : index
    %4 = vector.load %arg4[%c0_2, %c0_3] : memref<32x96xbf16, #tpu.memory_space<vmem>>, vector<32x96xbf16>
    %c0_4 = arith.constant 0 : index
    %c0_5 = arith.constant 0 : index
    %5 = vector.load %arg5[%c0_4, %c0_5] : memref<1x96xf32, #tpu.memory_space<vmem>>, vector<1x96xf32>
    %6 = vector.shape_cast %5 : vector<1x96xf32> to vector<1x96xf32>
    %7 = vector.broadcast %6 : vector<1x96xf32> to vector<2x96xf32>
    %c0_6 = arith.constant 0 : index
    %c0_7 = arith.constant 0 : index
    %8 = vector.load %arg6[%c0_6, %c0_7] : memref<1x96xf32, #tpu.memory_space<vmem>>, vector<1x96xf32>
    %9 = vector.shape_cast %8 : vector<1x96xf32> to vector<1x96xf32>
    %10 = vector.broadcast %9 : vector<1x96xf32> to vector<2x96xf32>
    %c0_8 = arith.constant 0 : index
    %c0_9 = arith.constant 0 : index
    %11 = vector.load %arg9[%c0_8, %c0_9] : memref<2x32xf32, #tpu.memory_space<vmem>>, vector<2x32xf32>
    %c0_10 = arith.constant 0 : index
    %c0_11 = arith.constant 0 : index
    %12 = vector.load %arg10[%c0_10, %c0_11] : memref<2x32xf32, #tpu.memory_space<vmem>>, vector<2x32xf32>
    %13 = arith.truncf %11 : vector<2x32xf32> to vector<2x32xbf16>
    %cst = arith.constant dense<0.000000e+00> : vector<2x96xf32>
    %14 = tpu.matmul %13, %3, %cst {dimension_numbers = #tpu.dot_dimension_numbers<[1], [0], [0], [1], [0, 0, 1, 1], [], []>} : vector<2x32xbf16>, vector<32x96xbf16>, vector<2x96xf32> -> vector<2x96xf32>
    %15 = arith.addf %14, %7 : vector<2x96xf32>
    %16 = arith.truncf %12 : vector<2x32xf32> to vector<2x32xbf16>
    %cst_12 = arith.constant dense<0.000000e+00> : vector<2x96xf32>
    %17 = tpu.matmul %16, %4, %cst_12 {dimension_numbers = #tpu.dot_dimension_numbers<[1], [0], [0], [1], [0, 0, 1, 1], [], []>} : vector<2x32xbf16>, vector<32x96xbf16>, vector<2x96xf32> -> vector<2x96xf32>
    %18 = arith.addf %17, %10 : vector<2x96xf32>
    %c0_13 = arith.constant 0 : index
    %c0_14 = arith.constant 0 : index
    %19 = vector.load %arg1[%c0_13, %c0_14] : memref<16x96xf32, #tpu.memory_space<vmem>>, vector<2x96xf32>
    %c14 = arith.constant 14 : index
    %c0_15 = arith.constant 0 : index
    %20 = vector.load %arg2[%c14, %c0_15] : memref<16x96xf32, #tpu.memory_space<vmem>>, vector<2x96xf32>
    %21 = vector.extract_strided_slice %19 {offsets = [0, 0], sizes = [2, 32], strides = [1, 1]} : vector<2x96xf32> to vector<2x32xf32>
    %22 = vector.extract_strided_slice %15 {offsets = [0, 0], sizes = [2, 32], strides = [1, 1]} : vector<2x96xf32> to vector<2x32xf32>
    %23 = arith.addf %21, %22 : vector<2x32xf32>
    %24 = arith.negf %23 : vector<2x32xf32>
    %25 = math.exp %24 : vector<2x32xf32>
    %cst_16 = arith.constant 1.000000e+00 : f32
    %26 = vector.broadcast %cst_16 : f32 to vector<2x32xf32>
    %27 = arith.addf %26, %25 : vector<2x32xf32>
    %28 = arith.divf %26, %27 : vector<2x32xf32>
    %29 = vector.extract_strided_slice %19 {offsets = [0, 32], sizes = [2, 32], strides = [1, 1]} : vector<2x96xf32> to vector<2x32xf32>
    %30 = vector.extract_strided_slice %15 {offsets = [0, 32], sizes = [2, 32], strides = [1, 1]} : vector<2x96xf32> to vector<2x32xf32>
    %31 = arith.addf %29, %30 : vector<2x32xf32>
    %32 = arith.negf %31 : vector<2x32xf32>
    %33 = math.exp %32 : vector<2x32xf32>
    %cst_17 = arith.constant 1.000000e+00 : f32
    %34 = vector.broadcast %cst_17 : f32 to vector<2x32xf32>
    %35 = arith.addf %34, %33 : vector<2x32xf32>
    %36 = arith.divf %34, %35 : vector<2x32xf32>
    %37 = vector.extract_strided_slice %19 {offsets = [0, 64], sizes = [2, 32], strides = [1, 1]} : vector<2x96xf32> to vector<2x32xf32>
    %38 = vector.extract_strided_slice %15 {offsets = [0, 64], sizes = [2, 32], strides = [1, 1]} : vector<2x96xf32> to vector<2x32xf32>
    %39 = arith.mulf %28, %38 : vector<2x32xf32>
    %40 = arith.addf %37, %39 : vector<2x32xf32>
    %41 = math.tanh %40 : vector<2x32xf32>
    %cst_18 = arith.constant 1.000000e+00 : f32
    %42 = vector.broadcast %cst_18 : f32 to vector<2x32xf32>
    %43 = arith.subf %42, %36 : vector<2x32xf32>
    %44 = arith.mulf %43, %41 : vector<2x32xf32>
    %45 = arith.mulf %36, %11 : vector<2x32xf32>
    %46 = arith.addf %44, %45 : vector<2x32xf32>
    %47 = vector.extract_strided_slice %20 {offsets = [0, 0], sizes = [2, 32], strides = [1, 1]} : vector<2x96xf32> to vector<2x32xf32>
    %48 = vector.extract_strided_slice %18 {offsets = [0, 0], sizes = [2, 32], strides = [1, 1]} : vector<2x96xf32> to vector<2x32xf32>
    %49 = arith.addf %47, %48 : vector<2x32xf32>
    %50 = arith.negf %49 : vector<2x32xf32>
    %51 = math.exp %50 : vector<2x32xf32>
    %cst_19 = arith.constant 1.000000e+00 : f32
    %52 = vector.broadcast %cst_19 : f32 to vector<2x32xf32>
    %53 = arith.addf %52, %51 : vector<2x32xf32>
    %54 = arith.divf %52, %53 : vector<2x32xf32>
    %55 = vector.extract_strided_slice %20 {offsets = [0, 32], sizes = [2, 32], strides = [1, 1]} : vector<2x96xf32> to vector<2x32xf32>
    %56 = vector.extract_strided_slice %18 {offsets = [0, 32], sizes = [2, 32], strides = [1, 1]} : vector<2x96xf32> to vector<2x32xf32>
    %57 = arith.addf %55, %56 : vector<2x32xf32>
    %58 = arith.negf %57 : vector<2x32xf32>
    %59 = math.exp %58 : vector<2x32xf32>
    %cst_20 = arith.constant 1.000000e+00 : f32
    %60 = vector.broadcast %cst_20 : f32 to vector<2x32xf32>
    %61 = arith.addf %60, %59 : vector<2x32xf32>
    %62 = arith.divf %60, %61 : vector<2x32xf32>
    %63 = vector.extract_strided_slice %20 {offsets = [0, 64], sizes = [2, 32], strides = [1, 1]} : vector<2x96xf32> to vector<2x32xf32>
    %64 = vector.extract_strided_slice %18 {offsets = [0, 64], sizes = [2, 32], strides = [1, 1]} : vector<2x96xf32> to vector<2x32xf32>
    %65 = arith.mulf %54, %64 : vector<2x32xf32>
    %66 = arith.addf %63, %65 : vector<2x32xf32>
    %67 = math.tanh %66 : vector<2x32xf32>
    %cst_21 = arith.constant 1.000000e+00 : f32
    %68 = vector.broadcast %cst_21 : f32 to vector<2x32xf32>
    %69 = arith.subf %68, %62 : vector<2x32xf32>
    %70 = arith.mulf %69, %67 : vector<2x32xf32>
    %71 = arith.mulf %62, %12 : vector<2x32xf32>
    %72 = arith.addf %70, %71 : vector<2x32xf32>
    %73 = arith.truncf %46 : vector<2x32xf32> to vector<2x32xbf16>
    %c0_22 = arith.constant 0 : index
    %c0_23 = arith.constant 0 : index
    %74 = vector.load %arg7[%c0_22, %c0_23] : memref<16x32xbf16, #tpu.memory_space<vmem>>, vector<2x32xbf16>
    tpu.vector_store %arg7[%c0_22, %c0_23], %73 {strides = array<i32>} : memref<16x32xbf16, #tpu.memory_space<vmem>>, vector<2x32xbf16>,
    %75 = arith.truncf %72 : vector<2x32xf32> to vector<2x32xbf16>
    %c14_24 = arith.constant 14 : index
    %c0_25 = arith.constant 0 : index
    %76 = vector.load %arg8[%c14_24, %c0_25] : memref<16x32xbf16, #tpu.memory_space<vmem>>, vector<2x32xbf16>
    tpu.vector_store %arg8[%c14_24, %c0_25], %75 {strides = array<i32>} : memref<16x32xbf16, #tpu.memory_space<vmem>>, vector<2x32xbf16>,
    %77 = arith.truncf %46 : vector<2x32xf32> to vector<2x32xbf16>
    %cst_26 = arith.constant dense<0.000000e+00> : vector<2x96xf32>
    %78 = tpu.matmul %77, %3, %cst_26 {dimension_numbers = #tpu.dot_dimension_numbers<[1], [0], [0], [1], [0, 0, 1, 1], [], []>} : vector<2x32xbf16>, vector<32x96xbf16>, vector<2x96xf32> -> vector<2x96xf32>
    %79 = arith.addf %78, %7 : vector<2x96xf32>
    %80 = arith.truncf %72 : vector<2x32xf32> to vector<2x32xbf16>
    %cst_27 = arith.constant dense<0.000000e+00> : vector<2x96xf32>
    %81 = tpu.matmul %80, %4, %cst_27 {dimension_numbers = #tpu.dot_dimension_numbers<[1], [0], [0], [1], [0, 0, 1, 1], [], []>} : vector<2x32xbf16>, vector<32x96xbf16>, vector<2x96xf32> -> vector<2x96xf32>
    %82 = arith.addf %81, %10 : vector<2x96xf32>
    %c2 = arith.constant 2 : index
    %c0_28 = arith.constant 0 : index
    %83 = vector.load %arg1[%c2, %c0_28] : memref<16x96xf32, #tpu.memory_space<vmem>>, vector<2x96xf32>
    %c12 = arith.constant 12 : index
    %c0_29 = arith.constant 0 : index
    %84 = vector.load %arg2[%c12, %c0_29] : memref<16x96xf32, #tpu.memory_space<vmem>>, vector<2x96xf32>
    %85 = vector.extract_strided_slice %83 {offsets = [0, 0], sizes = [2, 32], strides = [1, 1]} : vector<2x96xf32> to vector<2x32xf32>
    %86 = vector.extract_strided_slice %79 {offsets = [0, 0], sizes = [2, 32], strides = [1, 1]} : vector<2x96xf32> to vector<2x32xf32>
    %87 = arith.addf %85, %86 : vector<2x32xf32>
    %88 = arith.negf %87 : vector<2x32xf32>
    %89 = math.exp %88 : vector<2x32xf32>
    %cst_30 = arith.constant 1.000000e+00 : f32
    %90 = vector.broadcast %cst_30 : f32 to vector<2x32xf32>
    %91 = arith.addf %90, %89 : vector<2x32xf32>
    %92 = arith.divf %90, %91 : vector<2x32xf32>
    %93 = vector.extract_strided_slice %83 {offsets = [0, 32], sizes = [2, 32], strides = [1, 1]} : vector<2x96xf32> to vector<2x32xf32>
    %94 = vector.extract_strided_slice %79 {offsets = [0, 32], sizes = [2, 32], strides = [1, 1]} : vector<2x96xf32> to vector<2x32xf32>
    %95 = arith.addf %93, %94 : vector<2x32xf32>
    %96 = arith.negf %95 : vector<2x32xf32>
    %97 = math.exp %96 : vector<2x32xf32>
    %cst_31 = arith.constant 1.000000e+00 : f32
    %98 = vector.broadcast %cst_31 : f32 to vector<2x32xf32>
    %99 = arith.addf %98, %97 : vector<2x32xf32>
    %100 = arith.divf %98, %99 : vector<2x32xf32>
    %101 = vector.extract_strided_slice %83 {offsets = [0, 64], sizes = [2, 32], strides = [1, 1]} : vector<2x96xf32> to vector<2x32xf32>
    %102 = vector.extract_strided_slice %79 {offsets = [0, 64], sizes = [2, 32], strides = [1, 1]} : vector<2x96xf32> to vector<2x32xf32>
    %103 = arith.mulf %92, %102 : vector<2x32xf32>
    %104 = arith.addf %101, %103 : vector<2x32xf32>
    %105 = math.tanh %104 : vector<2x32xf32>
    %cst_32 = arith.constant 1.000000e+00 : f32
    %106 = vector.broadcast %cst_32 : f32 to vector<2x32xf32>
    %107 = arith.subf %106, %100 : vector<2x32xf32>
    %108 = arith.mulf %107, %105 : vector<2x32xf32>
    %109 = arith.mulf %100, %46 : vector<2x32xf32>
    %110 = arith.addf %108, %109 : vector<2x32xf32>
    %111 = vector.extract_strided_slice %84 {offsets = [0, 0], sizes = [2, 32], strides = [1, 1]} : vector<2x96xf32> to vector<2x32xf32>
    %112 = vector.extract_strided_slice %82 {offsets = [0, 0], sizes = [2, 32], strides = [1, 1]} : vector<2x96xf32> to vector<2x32xf32>
    %113 = arith.addf %111, %112 : vector<2x32xf32>
    %114 = arith.negf %113 : vector<2x32xf32>
    %115 = math.exp %114 : vector<2x32xf32>
    %cst_33 = arith.constant 1.000000e+00 : f32
    %116 = vector.broadcast %cst_33 : f32 to vector<2x32xf32>
    %117 = arith.addf %116, %115 : vector<2x32xf32>
    %118 = arith.divf %116, %117 : vector<2x32xf32>
    %119 = vector.extract_strided_slice %84 {offsets = [0, 32], sizes = [2, 32], strides = [1, 1]} : vector<2x96xf32> to vector<2x32xf32>
    %120 = vector.extract_strided_slice %82 {offsets = [0, 32], sizes = [2, 32], strides = [1, 1]} : vector<2x96xf32> to vector<2x32xf32>
    %121 = arith.addf %119, %120 : vector<2x32xf32>
    %122 = arith.negf %121 : vector<2x32xf32>
    %123 = math.exp %122 : vector<2x32xf32>
    %cst_34 = arith.constant 1.000000e+00 : f32
    %124 = vector.broadcast %cst_34 : f32 to vector<2x32xf32>
    %125 = arith.addf %124, %123 : vector<2x32xf32>
    %126 = arith.divf %124, %125 : vector<2x32xf32>
    %127 = vector.extract_strided_slice %84 {offsets = [0, 64], sizes = [2, 32], strides = [1, 1]} : vector<2x96xf32> to vector<2x32xf32>
    %128 = vector.extract_strided_slice %82 {offsets = [0, 64], sizes = [2, 32], strides = [1, 1]} : vector<2x96xf32> to vector<2x32xf32>
    %129 = arith.mulf %118, %128 : vector<2x32xf32>
    %130 = arith.addf %127, %129 : vector<2x32xf32>
    %131 = math.tanh %130 : vector<2x32xf32>
    %cst_35 = arith.constant 1.000000e+00 : f32
    %132 = vector.broadcast %cst_35 : f32 to vector<2x32xf32>
    %133 = arith.subf %132, %126 : vector<2x32xf32>
    %134 = arith.mulf %133, %131 : vector<2x32xf32>
    %135 = arith.mulf %126, %72 : vector<2x32xf32>
    %136 = arith.addf %134, %135 : vector<2x32xf32>
    %137 = arith.truncf %110 : vector<2x32xf32> to vector<2x32xbf16>
    %c2_36 = arith.constant 2 : index
    %c0_37 = arith.constant 0 : index
    %138 = vector.load %arg7[%c2_36, %c0_37] : memref<16x32xbf16, #tpu.memory_space<vmem>>, vector<2x32xbf16>
    tpu.vector_store %arg7[%c2_36, %c0_37], %137 {strides = array<i32>} : memref<16x32xbf16, #tpu.memory_space<vmem>>, vector<2x32xbf16>,
    %139 = arith.truncf %136 : vector<2x32xf32> to vector<2x32xbf16>
    %c12_38 = arith.constant 12 : index
    %c0_39 = arith.constant 0 : index
    %140 = vector.load %arg8[%c12_38, %c0_39] : memref<16x32xbf16, #tpu.memory_space<vmem>>, vector<2x32xbf16>
    tpu.vector_store %arg8[%c12_38, %c0_39], %139 {strides = array<i32>} : memref<16x32xbf16, #tpu.memory_space<vmem>>, vector<2x32xbf16>,
    %141 = arith.truncf %110 : vector<2x32xf32> to vector<2x32xbf16>
    %cst_40 = arith.constant dense<0.000000e+00> : vector<2x96xf32>
    %142 = tpu.matmul %141, %3, %cst_40 {dimension_numbers = #tpu.dot_dimension_numbers<[1], [0], [0], [1], [0, 0, 1, 1], [], []>} : vector<2x32xbf16>, vector<32x96xbf16>, vector<2x96xf32> -> vector<2x96xf32>
    %143 = arith.addf %142, %7 : vector<2x96xf32>
    %144 = arith.truncf %136 : vector<2x32xf32> to vector<2x32xbf16>
    %cst_41 = arith.constant dense<0.000000e+00> : vector<2x96xf32>
    %145 = tpu.matmul %144, %4, %cst_41 {dimension_numbers = #tpu.dot_dimension_numbers<[1], [0], [0], [1], [0, 0, 1, 1], [], []>} : vector<2x32xbf16>, vector<32x96xbf16>, vector<2x96xf32> -> vector<2x96xf32>
    %146 = arith.addf %145, %10 : vector<2x96xf32>
    %c4 = arith.constant 4 : index
    %c0_42 = arith.constant 0 : index
    %147 = vector.load %arg1[%c4, %c0_42] : memref<16x96xf32, #tpu.memory_space<vmem>>, vector<2x96xf32>
    %c10 = arith.constant 10 : index
    %c0_43 = arith.constant 0 : index
    %148 = vector.load %arg2[%c10, %c0_43] : memref<16x96xf32, #tpu.memory_space<vmem>>, vector<2x96xf32>
    %149 = vector.extract_strided_slice %147 {offsets = [0, 0], sizes = [2, 32], strides = [1, 1]} : vector<2x96xf32> to vector<2x32xf32>
    %150 = vector.extract_strided_slice %143 {offsets = [0, 0], sizes = [2, 32], strides = [1, 1]} : vector<2x96xf32> to vector<2x32xf32>
    %151 = arith.addf %149, %150 : vector<2x32xf32>
    %152 = arith.negf %151 : vector<2x32xf32>
    %153 = math.exp %152 : vector<2x32xf32>
    %cst_44 = arith.constant 1.000000e+00 : f32
    %154 = vector.broadcast %cst_44 : f32 to vector<2x32xf32>
    %155 = arith.addf %154, %153 : vector<2x32xf32>
    %156 = arith.divf %154, %155 : vector<2x32xf32>
    %157 = vector.extract_strided_slice %147 {offsets = [0, 32], sizes = [2, 32], strides = [1, 1]} : vector<2x96xf32> to vector<2x32xf32>
    %158 = vector.extract_strided_slice %143 {offsets = [0, 32], sizes = [2, 32], strides = [1, 1]} : vector<2x96xf32> to vector<2x32xf32>
    %159 = arith.addf %157, %158 : vector<2x32xf32>
    %160 = arith.negf %159 : vector<2x32xf32>
    %161 = math.exp %160 : vector<2x32xf32>
    %cst_45 = arith.constant 1.000000e+00 : f32
    %162 = vector.broadcast %cst_45 : f32 to vector<2x32xf32>
    %163 = arith.addf %162, %161 : vector<2x32xf32>
    %164 = arith.divf %162, %163 : vector<2x32xf32>
    %165 = vector.extract_strided_slice %147 {offsets = [0, 64], sizes = [2, 32], strides = [1, 1]} : vector<2x96xf32> to vector<2x32xf32>
    %166 = vector.extract_strided_slice %143 {offsets = [0, 64], sizes = [2, 32], strides = [1, 1]} : vector<2x96xf32> to vector<2x32xf32>
    %167 = arith.mulf %156, %166 : vector<2x32xf32>
    %168 = arith.addf %165, %167 : vector<2x32xf32>
    %169 = math.tanh %168 : vector<2x32xf32>
    %cst_46 = arith.constant 1.000000e+00 : f32
    %170 = vector.broadcast %cst_46 : f32 to vector<2x32xf32>
    %171 = arith.subf %170, %164 : vector<2x32xf32>
    %172 = arith.mulf %171, %169 : vector<2x32xf32>
    %173 = arith.mulf %164, %110 : vector<2x32xf32>
    %174 = arith.addf %172, %173 : vector<2x32xf32>
    %175 = vector.extract_strided_slice %148 {offsets = [0, 0], sizes = [2, 32], strides = [1, 1]} : vector<2x96xf32> to vector<2x32xf32>
    %176 = vector.extract_strided_slice %146 {offsets = [0, 0], sizes = [2, 32], strides = [1, 1]} : vector<2x96xf32> to vector<2x32xf32>
    %177 = arith.addf %175, %176 : vector<2x32xf32>
    %178 = arith.negf %177 : vector<2x32xf32>
    %179 = math.exp %178 : vector<2x32xf32>
    %cst_47 = arith.constant 1.000000e+00 : f32
    %180 = vector.broadcast %cst_47 : f32 to vector<2x32xf32>
    %181 = arith.addf %180, %179 : vector<2x32xf32>
    %182 = arith.divf %180, %181 : vector<2x32xf32>
    %183 = vector.extract_strided_slice %148 {offsets = [0, 32], sizes = [2, 32], strides = [1, 1]} : vector<2x96xf32> to vector<2x32xf32>
    %184 = vector.extract_strided_slice %146 {offsets = [0, 32], sizes = [2, 32], strides = [1, 1]} : vector<2x96xf32> to vector<2x32xf32>
    %185 = arith.addf %183, %184 : vector<2x32xf32>
    %186 = arith.negf %185 : vector<2x32xf32>
    %187 = math.exp %186 : vector<2x32xf32>
    %cst_48 = arith.constant 1.000000e+00 : f32
    %188 = vector.broadcast %cst_48 : f32 to vector<2x32xf32>
    %189 = arith.addf %188, %187 : vector<2x32xf32>
    %190 = arith.divf %188, %189 : vector<2x32xf32>
    %191 = vector.extract_strided_slice %148 {offsets = [0, 64], sizes = [2, 32], strides = [1, 1]} : vector<2x96xf32> to vector<2x32xf32>
    %192 = vector.extract_strided_slice %146 {offsets = [0, 64], sizes = [2, 32], strides = [1, 1]} : vector<2x96xf32> to vector<2x32xf32>
    %193 = arith.mulf %182, %192 : vector<2x32xf32>
    %194 = arith.addf %191, %193 : vector<2x32xf32>
    %195 = math.tanh %194 : vector<2x32xf32>
    %cst_49 = arith.constant 1.000000e+00 : f32
    %196 = vector.broadcast %cst_49 : f32 to vector<2x32xf32>
    %197 = arith.subf %196, %190 : vector<2x32xf32>
    %198 = arith.mulf %197, %195 : vector<2x32xf32>
    %199 = arith.mulf %190, %136 : vector<2x32xf32>
    %200 = arith.addf %198, %199 : vector<2x32xf32>
    %201 = arith.truncf %174 : vector<2x32xf32> to vector<2x32xbf16>
    %c4_50 = arith.constant 4 : index
    %c0_51 = arith.constant 0 : index
    %202 = vector.load %arg7[%c4_50, %c0_51] : memref<16x32xbf16, #tpu.memory_space<vmem>>, vector<2x32xbf16>
    tpu.vector_store %arg7[%c4_50, %c0_51], %201 {strides = array<i32>} : memref<16x32xbf16, #tpu.memory_space<vmem>>, vector<2x32xbf16>,
    %203 = arith.truncf %200 : vector<2x32xf32> to vector<2x32xbf16>
    %c10_52 = arith.constant 10 : index
    %c0_53 = arith.constant 0 : index
    %204 = vector.load %arg8[%c10_52, %c0_53] : memref<16x32xbf16, #tpu.memory_space<vmem>>, vector<2x32xbf16>
    tpu.vector_store %arg8[%c10_52, %c0_53], %203 {strides = array<i32>} : memref<16x32xbf16, #tpu.memory_space<vmem>>, vector<2x32xbf16>,
    %205 = arith.truncf %174 : vector<2x32xf32> to vector<2x32xbf16>
    %cst_54 = arith.constant dense<0.000000e+00> : vector<2x96xf32>
    %206 = tpu.matmul %205, %3, %cst_54 {dimension_numbers = #tpu.dot_dimension_numbers<[1], [0], [0], [1], [0, 0, 1, 1], [], []>} : vector<2x32xbf16>, vector<32x96xbf16>, vector<2x96xf32> -> vector<2x96xf32>
    %207 = arith.addf %206, %7 : vector<2x96xf32>
    %208 = arith.truncf %200 : vector<2x32xf32> to vector<2x32xbf16>
    %cst_55 = arith.constant dense<0.000000e+00> : vector<2x96xf32>
    %209 = tpu.matmul %208, %4, %cst_55 {dimension_numbers = #tpu.dot_dimension_numbers<[1], [0], [0], [1], [0, 0, 1, 1], [], []>} : vector<2x32xbf16>, vector<32x96xbf16>, vector<2x96xf32> -> vector<2x96xf32>
    %210 = arith.addf %209, %10 : vector<2x96xf32>
    %c6 = arith.constant 6 : index
    %c0_56 = arith.constant 0 : index
    %211 = vector.load %arg1[%c6, %c0_56] : memref<16x96xf32, #tpu.memory_space<vmem>>, vector<2x96xf32>
    %c8 = arith.constant 8 : index
    %c0_57 = arith.constant 0 : index
    %212 = vector.load %arg2[%c8, %c0_57] : memref<16x96xf32, #tpu.memory_space<vmem>>, vector<2x96xf32>
    %213 = vector.extract_strided_slice %211 {offsets = [0, 0], sizes = [2, 32], strides = [1, 1]} : vector<2x96xf32> to vector<2x32xf32>
    %214 = vector.extract_strided_slice %207 {offsets = [0, 0], sizes = [2, 32], strides = [1, 1]} : vector<2x96xf32> to vector<2x32xf32>
    %215 = arith.addf %213, %214 : vector<2x32xf32>
    %216 = arith.negf %215 : vector<2x32xf32>
    %217 = math.exp %216 : vector<2x32xf32>
    %cst_58 = arith.constant 1.000000e+00 : f32
    %218 = vector.broadcast %cst_58 : f32 to vector<2x32xf32>
    %219 = arith.addf %218, %217 : vector<2x32xf32>
    %220 = arith.divf %218, %219 : vector<2x32xf32>
    %221 = vector.extract_strided_slice %211 {offsets = [0, 32], sizes = [2, 32], strides = [1, 1]} : vector<2x96xf32> to vector<2x32xf32>
    %222 = vector.extract_strided_slice %207 {offsets = [0, 32], sizes = [2, 32], strides = [1, 1]} : vector<2x96xf32> to vector<2x32xf32>
    %223 = arith.addf %221, %222 : vector<2x32xf32>
    %224 = arith.negf %223 : vector<2x32xf32>
    %225 = math.exp %224 : vector<2x32xf32>
    %cst_59 = arith.constant 1.000000e+00 : f32
    %226 = vector.broadcast %cst_59 : f32 to vector<2x32xf32>
    %227 = arith.addf %226, %225 : vector<2x32xf32>
    %228 = arith.divf %226, %227 : vector<2x32xf32>
    %229 = vector.extract_strided_slice %211 {offsets = [0, 64], sizes = [2, 32], strides = [1, 1]} : vector<2x96xf32> to vector<2x32xf32>
    %230 = vector.extract_strided_slice %207 {offsets = [0, 64], sizes = [2, 32], strides = [1, 1]} : vector<2x96xf32> to vector<2x32xf32>
    %231 = arith.mulf %220, %230 : vector<2x32xf32>
    %232 = arith.addf %229, %231 : vector<2x32xf32>
    %233 = math.tanh %232 : vector<2x32xf32>
    %cst_60 = arith.constant 1.000000e+00 : f32
    %234 = vector.broadcast %cst_60 : f32 to vector<2x32xf32>
    %235 = arith.subf %234, %228 : vector<2x32xf32>
    %236 = arith.mulf %235, %233 : vector<2x32xf32>
    %237 = arith.mulf %228, %174 : vector<2x32xf32>
    %238 = arith.addf %236, %237 : vector<2x32xf32>
    %239 = vector.extract_strided_slice %212 {offsets = [0, 0], sizes = [2, 32], strides = [1, 1]} : vector<2x96xf32> to vector<2x32xf32>
    %240 = vector.extract_strided_slice %210 {offsets = [0, 0], sizes = [2, 32], strides = [1, 1]} : vector<2x96xf32> to vector<2x32xf32>
    %241 = arith.addf %239, %240 : vector<2x32xf32>
    %242 = arith.negf %241 : vector<2x32xf32>
    %243 = math.exp %242 : vector<2x32xf32>
    %cst_61 = arith.constant 1.000000e+00 : f32
    %244 = vector.broadcast %cst_61 : f32 to vector<2x32xf32>
    %245 = arith.addf %244, %243 : vector<2x32xf32>
    %246 = arith.divf %244, %245 : vector<2x32xf32>
    %247 = vector.extract_strided_slice %212 {offsets = [0, 32], sizes = [2, 32], strides = [1, 1]} : vector<2x96xf32> to vector<2x32xf32>
    %248 = vector.extract_strided_slice %210 {offsets = [0, 32], sizes = [2, 32], strides = [1, 1]} : vector<2x96xf32> to vector<2x32xf32>
    %249 = arith.addf %247, %248 : vector<2x32xf32>
    %250 = arith.negf %249 : vector<2x32xf32>
    %251 = math.exp %250 : vector<2x32xf32>
    %cst_62 = arith.constant 1.000000e+00 : f32
    %252 = vector.broadcast %cst_62 : f32 to vector<2x32xf32>
    %253 = arith.addf %252, %251 : vector<2x32xf32>
    %254 = arith.divf %252, %253 : vector<2x32xf32>
    %255 = vector.extract_strided_slice %212 {offsets = [0, 64], sizes = [2, 32], strides = [1, 1]} : vector<2x96xf32> to vector<2x32xf32>
    %256 = vector.extract_strided_slice %210 {offsets = [0, 64], sizes = [2, 32], strides = [1, 1]} : vector<2x96xf32> to vector<2x32xf32>
    %257 = arith.mulf %246, %256 : vector<2x32xf32>
    %258 = arith.addf %255, %257 : vector<2x32xf32>
    %259 = math.tanh %258 : vector<2x32xf32>
    %cst_63 = arith.constant 1.000000e+00 : f32
    %260 = vector.broadcast %cst_63 : f32 to vector<2x32xf32>
    %261 = arith.subf %260, %254 : vector<2x32xf32>
    %262 = arith.mulf %261, %259 : vector<2x32xf32>
    %263 = arith.mulf %254, %200 : vector<2x32xf32>
    %264 = arith.addf %262, %263 : vector<2x32xf32>
    %265 = arith.truncf %238 : vector<2x32xf32> to vector<2x32xbf16>
    %c6_64 = arith.constant 6 : index
    %c0_65 = arith.constant 0 : index
    %266 = vector.load %arg7[%c6_64, %c0_65] : memref<16x32xbf16, #tpu.memory_space<vmem>>, vector<2x32xbf16>
    tpu.vector_store %arg7[%c6_64, %c0_65], %265 {strides = array<i32>} : memref<16x32xbf16, #tpu.memory_space<vmem>>, vector<2x32xbf16>,
    %267 = arith.truncf %264 : vector<2x32xf32> to vector<2x32xbf16>
    %c8_66 = arith.constant 8 : index
    %c0_67 = arith.constant 0 : index
    %268 = vector.load %arg8[%c8_66, %c0_67] : memref<16x32xbf16, #tpu.memory_space<vmem>>, vector<2x32xbf16>
    tpu.vector_store %arg8[%c8_66, %c0_67], %267 {strides = array<i32>} : memref<16x32xbf16, #tpu.memory_space<vmem>>, vector<2x32xbf16>,
    %269 = arith.truncf %238 : vector<2x32xf32> to vector<2x32xbf16>
    %cst_68 = arith.constant dense<0.000000e+00> : vector<2x96xf32>
    %270 = tpu.matmul %269, %3, %cst_68 {dimension_numbers = #tpu.dot_dimension_numbers<[1], [0], [0], [1], [0, 0, 1, 1], [], []>} : vector<2x32xbf16>, vector<32x96xbf16>, vector<2x96xf32> -> vector<2x96xf32>
    %271 = arith.addf %270, %7 : vector<2x96xf32>
    %272 = arith.truncf %264 : vector<2x32xf32> to vector<2x32xbf16>
    %cst_69 = arith.constant dense<0.000000e+00> : vector<2x96xf32>
    %273 = tpu.matmul %272, %4, %cst_69 {dimension_numbers = #tpu.dot_dimension_numbers<[1], [0], [0], [1], [0, 0, 1, 1], [], []>} : vector<2x32xbf16>, vector<32x96xbf16>, vector<2x96xf32> -> vector<2x96xf32>
    %274 = arith.addf %273, %10 : vector<2x96xf32>
    %c8_70 = arith.constant 8 : index
    %c0_71 = arith.constant 0 : index
    %275 = vector.load %arg1[%c8_70, %c0_71] : memref<16x96xf32, #tpu.memory_space<vmem>>, vector<2x96xf32>
    %c6_72 = arith.constant 6 : index
    %c0_73 = arith.constant 0 : index
    %276 = vector.load %arg2[%c6_72, %c0_73] : memref<16x96xf32, #tpu.memory_space<vmem>>, vector<2x96xf32>
    %277 = vector.extract_strided_slice %275 {offsets = [0, 0], sizes = [2, 32], strides = [1, 1]} : vector<2x96xf32> to vector<2x32xf32>
    %278 = vector.extract_strided_slice %271 {offsets = [0, 0], sizes = [2, 32], strides = [1, 1]} : vector<2x96xf32> to vector<2x32xf32>
    %279 = arith.addf %277, %278 : vector<2x32xf32>
    %280 = arith.negf %279 : vector<2x32xf32>
    %281 = math.exp %280 : vector<2x32xf32>
    %cst_74 = arith.constant 1.000000e+00 : f32
    %282 = vector.broadcast %cst_74 : f32 to vector<2x32xf32>
    %283 = arith.addf %282, %281 : vector<2x32xf32>
    %284 = arith.divf %282, %283 : vector<2x32xf32>
    %285 = vector.extract_strided_slice %275 {offsets = [0, 32], sizes = [2, 32], strides = [1, 1]} : vector<2x96xf32> to vector<2x32xf32>
    %286 = vector.extract_strided_slice %271 {offsets = [0, 32], sizes = [2, 32], strides = [1, 1]} : vector<2x96xf32> to vector<2x32xf32>
    %287 = arith.addf %285, %286 : vector<2x32xf32>
    %288 = arith.negf %287 : vector<2x32xf32>
    %289 = math.exp %288 : vector<2x32xf32>
    %cst_75 = arith.constant 1.000000e+00 : f32
    %290 = vector.broadcast %cst_75 : f32 to vector<2x32xf32>
    %291 = arith.addf %290, %289 : vector<2x32xf32>
    %292 = arith.divf %290, %291 : vector<2x32xf32>
    %293 = vector.extract_strided_slice %275 {offsets = [0, 64], sizes = [2, 32], strides = [1, 1]} : vector<2x96xf32> to vector<2x32xf32>
    %294 = vector.extract_strided_slice %271 {offsets = [0, 64], sizes = [2, 32], strides = [1, 1]} : vector<2x96xf32> to vector<2x32xf32>
    %295 = arith.mulf %284, %294 : vector<2x32xf32>
    %296 = arith.addf %293, %295 : vector<2x32xf32>
    %297 = math.tanh %296 : vector<2x32xf32>
    %cst_76 = arith.constant 1.000000e+00 : f32
    %298 = vector.broadcast %cst_76 : f32 to vector<2x32xf32>
    %299 = arith.subf %298, %292 : vector<2x32xf32>
    %300 = arith.mulf %299, %297 : vector<2x32xf32>
    %301 = arith.mulf %292, %238 : vector<2x32xf32>
    %302 = arith.addf %300, %301 : vector<2x32xf32>
    %303 = vector.extract_strided_slice %276 {offsets = [0, 0], sizes = [2, 32], strides = [1, 1]} : vector<2x96xf32> to vector<2x32xf32>
    %304 = vector.extract_strided_slice %274 {offsets = [0, 0], sizes = [2, 32], strides = [1, 1]} : vector<2x96xf32> to vector<2x32xf32>
    %305 = arith.addf %303, %304 : vector<2x32xf32>
    %306 = arith.negf %305 : vector<2x32xf32>
    %307 = math.exp %306 : vector<2x32xf32>
    %cst_77 = arith.constant 1.000000e+00 : f32
    %308 = vector.broadcast %cst_77 : f32 to vector<2x32xf32>
    %309 = arith.addf %308, %307 : vector<2x32xf32>
    %310 = arith.divf %308, %309 : vector<2x32xf32>
    %311 = vector.extract_strided_slice %276 {offsets = [0, 32], sizes = [2, 32], strides = [1, 1]} : vector<2x96xf32> to vector<2x32xf32>
    %312 = vector.extract_strided_slice %274 {offsets = [0, 32], sizes = [2, 32], strides = [1, 1]} : vector<2x96xf32> to vector<2x32xf32>
    %313 = arith.addf %311, %312 : vector<2x32xf32>
    %314 = arith.negf %313 : vector<2x32xf32>
    %315 = math.exp %314 : vector<2x32xf32>
    %cst_78 = arith.constant 1.000000e+00 : f32
    %316 = vector.broadcast %cst_78 : f32 to vector<2x32xf32>
    %317 = arith.addf %316, %315 : vector<2x32xf32>
    %318 = arith.divf %316, %317 : vector<2x32xf32>
    %319 = vector.extract_strided_slice %276 {offsets = [0, 64], sizes = [2, 32], strides = [1, 1]} : vector<2x96xf32> to vector<2x32xf32>
    %320 = vector.extract_strided_slice %274 {offsets = [0, 64], sizes = [2, 32], strides = [1, 1]} : vector<2x96xf32> to vector<2x32xf32>
    %321 = arith.mulf %310, %320 : vector<2x32xf32>
    %322 = arith.addf %319, %321 : vector<2x32xf32>
    %323 = math.tanh %322 : vector<2x32xf32>
    %cst_79 = arith.constant 1.000000e+00 : f32
    %324 = vector.broadcast %cst_79 : f32 to vector<2x32xf32>
    %325 = arith.subf %324, %318 : vector<2x32xf32>
    %326 = arith.mulf %325, %323 : vector<2x32xf32>
    %327 = arith.mulf %318, %264 : vector<2x32xf32>
    %328 = arith.addf %326, %327 : vector<2x32xf32>
    %329 = arith.truncf %302 : vector<2x32xf32> to vector<2x32xbf16>
    %c8_80 = arith.constant 8 : index
    %c0_81 = arith.constant 0 : index
    %330 = vector.load %arg7[%c8_80, %c0_81] : memref<16x32xbf16, #tpu.memory_space<vmem>>, vector<2x32xbf16>
    tpu.vector_store %arg7[%c8_80, %c0_81], %329 {strides = array<i32>} : memref<16x32xbf16, #tpu.memory_space<vmem>>, vector<2x32xbf16>,
    %331 = arith.truncf %328 : vector<2x32xf32> to vector<2x32xbf16>
    %c6_82 = arith.constant 6 : index
    %c0_83 = arith.constant 0 : index
    %332 = vector.load %arg8[%c6_82, %c0_83] : memref<16x32xbf16, #tpu.memory_space<vmem>>, vector<2x32xbf16>
    tpu.vector_store %arg8[%c6_82, %c0_83], %331 {strides = array<i32>} : memref<16x32xbf16, #tpu.memory_space<vmem>>, vector<2x32xbf16>,
    %333 = arith.truncf %302 : vector<2x32xf32> to vector<2x32xbf16>
    %cst_84 = arith.constant dense<0.000000e+00> : vector<2x96xf32>
    %334 = tpu.matmul %333, %3, %cst_84 {dimension_numbers = #tpu.dot_dimension_numbers<[1], [0], [0], [1], [0, 0, 1, 1], [], []>} : vector<2x32xbf16>, vector<32x96xbf16>, vector<2x96xf32> -> vector<2x96xf32>
    %335 = arith.addf %334, %7 : vector<2x96xf32>
    %336 = arith.truncf %328 : vector<2x32xf32> to vector<2x32xbf16>
    %cst_85 = arith.constant dense<0.000000e+00> : vector<2x96xf32>
    %337 = tpu.matmul %336, %4, %cst_85 {dimension_numbers = #tpu.dot_dimension_numbers<[1], [0], [0], [1], [0, 0, 1, 1], [], []>} : vector<2x32xbf16>, vector<32x96xbf16>, vector<2x96xf32> -> vector<2x96xf32>
    %338 = arith.addf %337, %10 : vector<2x96xf32>
    %c10_86 = arith.constant 10 : index
    %c0_87 = arith.constant 0 : index
    %339 = vector.load %arg1[%c10_86, %c0_87] : memref<16x96xf32, #tpu.memory_space<vmem>>, vector<2x96xf32>
    %c4_88 = arith.constant 4 : index
    %c0_89 = arith.constant 0 : index
    %340 = vector.load %arg2[%c4_88, %c0_89] : memref<16x96xf32, #tpu.memory_space<vmem>>, vector<2x96xf32>
    %341 = vector.extract_strided_slice %339 {offsets = [0, 0], sizes = [2, 32], strides = [1, 1]} : vector<2x96xf32> to vector<2x32xf32>
    %342 = vector.extract_strided_slice %335 {offsets = [0, 0], sizes = [2, 32], strides = [1, 1]} : vector<2x96xf32> to vector<2x32xf32>
    %343 = arith.addf %341, %342 : vector<2x32xf32>
    %344 = arith.negf %343 : vector<2x32xf32>
    %345 = math.exp %344 : vector<2x32xf32>
    %cst_90 = arith.constant 1.000000e+00 : f32
    %346 = vector.broadcast %cst_90 : f32 to vector<2x32xf32>
    %347 = arith.addf %346, %345 : vector<2x32xf32>
    %348 = arith.divf %346, %347 : vector<2x32xf32>
    %349 = vector.extract_strided_slice %339 {offsets = [0, 32], sizes = [2, 32], strides = [1, 1]} : vector<2x96xf32> to vector<2x32xf32>
    %350 = vector.extract_strided_slice %335 {offsets = [0, 32], sizes = [2, 32], strides = [1, 1]} : vector<2x96xf32> to vector<2x32xf32>
    %351 = arith.addf %349, %350 : vector<2x32xf32>
    %352 = arith.negf %351 : vector<2x32xf32>
    %353 = math.exp %352 : vector<2x32xf32>
    %cst_91 = arith.constant 1.000000e+00 : f32
    %354 = vector.broadcast %cst_91 : f32 to vector<2x32xf32>
    %355 = arith.addf %354, %353 : vector<2x32xf32>
    %356 = arith.divf %354, %355 : vector<2x32xf32>
    %357 = vector.extract_strided_slice %339 {offsets = [0, 64], sizes = [2, 32], strides = [1, 1]} : vector<2x96xf32> to vector<2x32xf32>
    %358 = vector.extract_strided_slice %335 {offsets = [0, 64], sizes = [2, 32], strides = [1, 1]} : vector<2x96xf32> to vector<2x32xf32>
    %359 = arith.mulf %348, %358 : vector<2x32xf32>
    %360 = arith.addf %357, %359 : vector<2x32xf32>
    %361 = math.tanh %360 : vector<2x32xf32>
    %cst_92 = arith.constant 1.000000e+00 : f32
    %362 = vector.broadcast %cst_92 : f32 to vector<2x32xf32>
    %363 = arith.subf %362, %356 : vector<2x32xf32>
    %364 = arith.mulf %363, %361 : vector<2x32xf32>
    %365 = arith.mulf %356, %302 : vector<2x32xf32>
    %366 = arith.addf %364, %365 : vector<2x32xf32>
    %367 = vector.extract_strided_slice %340 {offsets = [0, 0], sizes = [2, 32], strides = [1, 1]} : vector<2x96xf32> to vector<2x32xf32>
    %368 = vector.extract_strided_slice %338 {offsets = [0, 0], sizes = [2, 32], strides = [1, 1]} : vector<2x96xf32> to vector<2x32xf32>
    %369 = arith.addf %367, %368 : vector<2x32xf32>
    %370 = arith.negf %369 : vector<2x32xf32>
    %371 = math.exp %370 : vector<2x32xf32>
    %cst_93 = arith.constant 1.000000e+00 : f32
    %372 = vector.broadcast %cst_93 : f32 to vector<2x32xf32>
    %373 = arith.addf %372, %371 : vector<2x32xf32>
    %374 = arith.divf %372, %373 : vector<2x32xf32>
    %375 = vector.extract_strided_slice %340 {offsets = [0, 32], sizes = [2, 32], strides = [1, 1]} : vector<2x96xf32> to vector<2x32xf32>
    %376 = vector.extract_strided_slice %338 {offsets = [0, 32], sizes = [2, 32], strides = [1, 1]} : vector<2x96xf32> to vector<2x32xf32>
    %377 = arith.addf %375, %376 : vector<2x32xf32>
    %378 = arith.negf %377 : vector<2x32xf32>
    %379 = math.exp %378 : vector<2x32xf32>
    %cst_94 = arith.constant 1.000000e+00 : f32
    %380 = vector.broadcast %cst_94 : f32 to vector<2x32xf32>
    %381 = arith.addf %380, %379 : vector<2x32xf32>
    %382 = arith.divf %380, %381 : vector<2x32xf32>
    %383 = vector.extract_strided_slice %340 {offsets = [0, 64], sizes = [2, 32], strides = [1, 1]} : vector<2x96xf32> to vector<2x32xf32>
    %384 = vector.extract_strided_slice %338 {offsets = [0, 64], sizes = [2, 32], strides = [1, 1]} : vector<2x96xf32> to vector<2x32xf32>
    %385 = arith.mulf %374, %384 : vector<2x32xf32>
    %386 = arith.addf %383, %385 : vector<2x32xf32>
    %387 = math.tanh %386 : vector<2x32xf32>
    %cst_95 = arith.constant 1.000000e+00 : f32
    %388 = vector.broadcast %cst_95 : f32 to vector<2x32xf32>
    %389 = arith.subf %388, %382 : vector<2x32xf32>
    %390 = arith.mulf %389, %387 : vector<2x32xf32>
    %391 = arith.mulf %382, %328 : vector<2x32xf32>
    %392 = arith.addf %390, %391 : vector<2x32xf32>
    %393 = arith.truncf %366 : vector<2x32xf32> to vector<2x32xbf16>
    %c10_96 = arith.constant 10 : index
    %c0_97 = arith.constant 0 : index
    %394 = vector.load %arg7[%c10_96, %c0_97] : memref<16x32xbf16, #tpu.memory_space<vmem>>, vector<2x32xbf16>
    tpu.vector_store %arg7[%c10_96, %c0_97], %393 {strides = array<i32>} : memref<16x32xbf16, #tpu.memory_space<vmem>>, vector<2x32xbf16>,
    %395 = arith.truncf %392 : vector<2x32xf32> to vector<2x32xbf16>
    %c4_98 = arith.constant 4 : index
    %c0_99 = arith.constant 0 : index
    %396 = vector.load %arg8[%c4_98, %c0_99] : memref<16x32xbf16, #tpu.memory_space<vmem>>, vector<2x32xbf16>
    tpu.vector_store %arg8[%c4_98, %c0_99], %395 {strides = array<i32>} : memref<16x32xbf16, #tpu.memory_space<vmem>>, vector<2x32xbf16>,
    %397 = arith.truncf %366 : vector<2x32xf32> to vector<2x32xbf16>
    %cst_100 = arith.constant dense<0.000000e+00> : vector<2x96xf32>
    %398 = tpu.matmul %397, %3, %cst_100 {dimension_numbers = #tpu.dot_dimension_numbers<[1], [0], [0], [1], [0, 0, 1, 1], [], []>} : vector<2x32xbf16>, vector<32x96xbf16>, vector<2x96xf32> -> vector<2x96xf32>
    %399 = arith.addf %398, %7 : vector<2x96xf32>
    %400 = arith.truncf %392 : vector<2x32xf32> to vector<2x32xbf16>
    %cst_101 = arith.constant dense<0.000000e+00> : vector<2x96xf32>
    %401 = tpu.matmul %400, %4, %cst_101 {dimension_numbers = #tpu.dot_dimension_numbers<[1], [0], [0], [1], [0, 0, 1, 1], [], []>} : vector<2x32xbf16>, vector<32x96xbf16>, vector<2x96xf32> -> vector<2x96xf32>
    %402 = arith.addf %401, %10 : vector<2x96xf32>
    %c12_102 = arith.constant 12 : index
    %c0_103 = arith.constant 0 : index
    %403 = vector.load %arg1[%c12_102, %c0_103] : memref<16x96xf32, #tpu.memory_space<vmem>>, vector<2x96xf32>
    %c2_104 = arith.constant 2 : index
    %c0_105 = arith.constant 0 : index
    %404 = vector.load %arg2[%c2_104, %c0_105] : memref<16x96xf32, #tpu.memory_space<vmem>>, vector<2x96xf32>
    %405 = vector.extract_strided_slice %403 {offsets = [0, 0], sizes = [2, 32], strides = [1, 1]} : vector<2x96xf32> to vector<2x32xf32>
    %406 = vector.extract_strided_slice %399 {offsets = [0, 0], sizes = [2, 32], strides = [1, 1]} : vector<2x96xf32> to vector<2x32xf32>
    %407 = arith.addf %405, %406 : vector<2x32xf32>
    %408 = arith.negf %407 : vector<2x32xf32>
    %409 = math.exp %408 : vector<2x32xf32>
    %cst_106 = arith.constant 1.000000e+00 : f32
    %410 = vector.broadcast %cst_106 : f32 to vector<2x32xf32>
    %411 = arith.addf %410, %409 : vector<2x32xf32>
    %412 = arith.divf %410, %411 : vector<2x32xf32>
    %413 = vector.extract_strided_slice %403 {offsets = [0, 32], sizes = [2, 32], strides = [1, 1]} : vector<2x96xf32> to vector<2x32xf32>
    %414 = vector.extract_strided_slice %399 {offsets = [0, 32], sizes = [2, 32], strides = [1, 1]} : vector<2x96xf32> to vector<2x32xf32>
    %415 = arith.addf %413, %414 : vector<2x32xf32>
    %416 = arith.negf %415 : vector<2x32xf32>
    %417 = math.exp %416 : vector<2x32xf32>
    %cst_107 = arith.constant 1.000000e+00 : f32
    %418 = vector.broadcast %cst_107 : f32 to vector<2x32xf32>
    %419 = arith.addf %418, %417 : vector<2x32xf32>
    %420 = arith.divf %418, %419 : vector<2x32xf32>
    %421 = vector.extract_strided_slice %403 {offsets = [0, 64], sizes = [2, 32], strides = [1, 1]} : vector<2x96xf32> to vector<2x32xf32>
    %422 = vector.extract_strided_slice %399 {offsets = [0, 64], sizes = [2, 32], strides = [1, 1]} : vector<2x96xf32> to vector<2x32xf32>
    %423 = arith.mulf %412, %422 : vector<2x32xf32>
    %424 = arith.addf %421, %423 : vector<2x32xf32>
    %425 = math.tanh %424 : vector<2x32xf32>
    %cst_108 = arith.constant 1.000000e+00 : f32
    %426 = vector.broadcast %cst_108 : f32 to vector<2x32xf32>
    %427 = arith.subf %426, %420 : vector<2x32xf32>
    %428 = arith.mulf %427, %425 : vector<2x32xf32>
    %429 = arith.mulf %420, %366 : vector<2x32xf32>
    %430 = arith.addf %428, %429 : vector<2x32xf32>
    %431 = vector.extract_strided_slice %404 {offsets = [0, 0], sizes = [2, 32], strides = [1, 1]} : vector<2x96xf32> to vector<2x32xf32>
    %432 = vector.extract_strided_slice %402 {offsets = [0, 0], sizes = [2, 32], strides = [1, 1]} : vector<2x96xf32> to vector<2x32xf32>
    %433 = arith.addf %431, %432 : vector<2x32xf32>
    %434 = arith.negf %433 : vector<2x32xf32>
    %435 = math.exp %434 : vector<2x32xf32>
    %cst_109 = arith.constant 1.000000e+00 : f32
    %436 = vector.broadcast %cst_109 : f32 to vector<2x32xf32>
    %437 = arith.addf %436, %435 : vector<2x32xf32>
    %438 = arith.divf %436, %437 : vector<2x32xf32>
    %439 = vector.extract_strided_slice %404 {offsets = [0, 32], sizes = [2, 32], strides = [1, 1]} : vector<2x96xf32> to vector<2x32xf32>
    %440 = vector.extract_strided_slice %402 {offsets = [0, 32], sizes = [2, 32], strides = [1, 1]} : vector<2x96xf32> to vector<2x32xf32>
    %441 = arith.addf %439, %440 : vector<2x32xf32>
    %442 = arith.negf %441 : vector<2x32xf32>
    %443 = math.exp %442 : vector<2x32xf32>
    %cst_110 = arith.constant 1.000000e+00 : f32
    %444 = vector.broadcast %cst_110 : f32 to vector<2x32xf32>
    %445 = arith.addf %444, %443 : vector<2x32xf32>
    %446 = arith.divf %444, %445 : vector<2x32xf32>
    %447 = vector.extract_strided_slice %404 {offsets = [0, 64], sizes = [2, 32], strides = [1, 1]} : vector<2x96xf32> to vector<2x32xf32>
    %448 = vector.extract_strided_slice %402 {offsets = [0, 64], sizes = [2, 32], strides = [1, 1]} : vector<2x96xf32> to vector<2x32xf32>
    %449 = arith.mulf %438, %448 : vector<2x32xf32>
    %450 = arith.addf %447, %449 : vector<2x32xf32>
    %451 = math.tanh %450 : vector<2x32xf32>
    %cst_111 = arith.constant 1.000000e+00 : f32
    %452 = vector.broadcast %cst_111 : f32 to vector<2x32xf32>
    %453 = arith.subf %452, %446 : vector<2x32xf32>
    %454 = arith.mulf %453, %451 : vector<2x32xf32>
    %455 = arith.mulf %446, %392 : vector<2x32xf32>
    %456 = arith.addf %454, %455 : vector<2x32xf32>
    %457 = arith.truncf %430 : vector<2x32xf32> to vector<2x32xbf16>
    %c12_112 = arith.constant 12 : index
    %c0_113 = arith.constant 0 : index
    %458 = vector.load %arg7[%c12_112, %c0_113] : memref<16x32xbf16, #tpu.memory_space<vmem>>, vector<2x32xbf16>
    tpu.vector_store %arg7[%c12_112, %c0_113], %457 {strides = array<i32>} : memref<16x32xbf16, #tpu.memory_space<vmem>>, vector<2x32xbf16>,
    %459 = arith.truncf %456 : vector<2x32xf32> to vector<2x32xbf16>
    %c2_114 = arith.constant 2 : index
    %c0_115 = arith.constant 0 : index
    %460 = vector.load %arg8[%c2_114, %c0_115] : memref<16x32xbf16, #tpu.memory_space<vmem>>, vector<2x32xbf16>
    tpu.vector_store %arg8[%c2_114, %c0_115], %459 {strides = array<i32>} : memref<16x32xbf16, #tpu.memory_space<vmem>>, vector<2x32xbf16>,
    %461 = arith.truncf %430 : vector<2x32xf32> to vector<2x32xbf16>
    %cst_116 = arith.constant dense<0.000000e+00> : vector<2x96xf32>
    %462 = tpu.matmul %461, %3, %cst_116 {dimension_numbers = #tpu.dot_dimension_numbers<[1], [0], [0], [1], [0, 0, 1, 1], [], []>} : vector<2x32xbf16>, vector<32x96xbf16>, vector<2x96xf32> -> vector<2x96xf32>
    %463 = arith.addf %462, %7 : vector<2x96xf32>
    %464 = arith.truncf %456 : vector<2x32xf32> to vector<2x32xbf16>
    %cst_117 = arith.constant dense<0.000000e+00> : vector<2x96xf32>
    %465 = tpu.matmul %464, %4, %cst_117 {dimension_numbers = #tpu.dot_dimension_numbers<[1], [0], [0], [1], [0, 0, 1, 1], [], []>} : vector<2x32xbf16>, vector<32x96xbf16>, vector<2x96xf32> -> vector<2x96xf32>
    %466 = arith.addf %465, %10 : vector<2x96xf32>
    %c14_118 = arith.constant 14 : index
    %c0_119 = arith.constant 0 : index
    %467 = vector.load %arg1[%c14_118, %c0_119] : memref<16x96xf32, #tpu.memory_space<vmem>>, vector<2x96xf32>
    %c0_120 = arith.constant 0 : index
    %c0_121 = arith.constant 0 : index
    %468 = vector.load %arg2[%c0_120, %c0_121] : memref<16x96xf32, #tpu.memory_space<vmem>>, vector<2x96xf32>
    %469 = vector.extract_strided_slice %467 {offsets = [0, 0], sizes = [2, 32], strides = [1, 1]} : vector<2x96xf32> to vector<2x32xf32>
    %470 = vector.extract_strided_slice %463 {offsets = [0, 0], sizes = [2, 32], strides = [1, 1]} : vector<2x96xf32> to vector<2x32xf32>
    %471 = arith.addf %469, %470 : vector<2x32xf32>
    %472 = arith.negf %471 : vector<2x32xf32>
    %473 = math.exp %472 : vector<2x32xf32>
    %cst_122 = arith.constant 1.000000e+00 : f32
    %474 = vector.broadcast %cst_122 : f32 to vector<2x32xf32>
    %475 = arith.addf %474, %473 : vector<2x32xf32>
    %476 = arith.divf %474, %475 : vector<2x32xf32>
    %477 = vector.extract_strided_slice %467 {offsets = [0, 32], sizes = [2, 32], strides = [1, 1]} : vector<2x96xf32> to vector<2x32xf32>
    %478 = vector.extract_strided_slice %463 {offsets = [0, 32], sizes = [2, 32], strides = [1, 1]} : vector<2x96xf32> to vector<2x32xf32>
    %479 = arith.addf %477, %478 : vector<2x32xf32>
    %480 = arith.negf %479 : vector<2x32xf32>
    %481 = math.exp %480 : vector<2x32xf32>
    %cst_123 = arith.constant 1.000000e+00 : f32
    %482 = vector.broadcast %cst_123 : f32 to vector<2x32xf32>
    %483 = arith.addf %482, %481 : vector<2x32xf32>
    %484 = arith.divf %482, %483 : vector<2x32xf32>
    %485 = vector.extract_strided_slice %467 {offsets = [0, 64], sizes = [2, 32], strides = [1, 1]} : vector<2x96xf32> to vector<2x32xf32>
    %486 = vector.extract_strided_slice %463 {offsets = [0, 64], sizes = [2, 32], strides = [1, 1]} : vector<2x96xf32> to vector<2x32xf32>
    %487 = arith.mulf %476, %486 : vector<2x32xf32>
    %488 = arith.addf %485, %487 : vector<2x32xf32>
    %489 = math.tanh %488 : vector<2x32xf32>
    %cst_124 = arith.constant 1.000000e+00 : f32
    %490 = vector.broadcast %cst_124 : f32 to vector<2x32xf32>
    %491 = arith.subf %490, %484 : vector<2x32xf32>
    %492 = arith.mulf %491, %489 : vector<2x32xf32>
    %493 = arith.mulf %484, %430 : vector<2x32xf32>
    %494 = arith.addf %492, %493 : vector<2x32xf32>
    %495 = vector.extract_strided_slice %468 {offsets = [0, 0], sizes = [2, 32], strides = [1, 1]} : vector<2x96xf32> to vector<2x32xf32>
    %496 = vector.extract_strided_slice %466 {offsets = [0, 0], sizes = [2, 32], strides = [1, 1]} : vector<2x96xf32> to vector<2x32xf32>
    %497 = arith.addf %495, %496 : vector<2x32xf32>
    %498 = arith.negf %497 : vector<2x32xf32>
    %499 = math.exp %498 : vector<2x32xf32>
    %cst_125 = arith.constant 1.000000e+00 : f32
    %500 = vector.broadcast %cst_125 : f32 to vector<2x32xf32>
    %501 = arith.addf %500, %499 : vector<2x32xf32>
    %502 = arith.divf %500, %501 : vector<2x32xf32>
    %503 = vector.extract_strided_slice %468 {offsets = [0, 32], sizes = [2, 32], strides = [1, 1]} : vector<2x96xf32> to vector<2x32xf32>
    %504 = vector.extract_strided_slice %466 {offsets = [0, 32], sizes = [2, 32], strides = [1, 1]} : vector<2x96xf32> to vector<2x32xf32>
    %505 = arith.addf %503, %504 : vector<2x32xf32>
    %506 = arith.negf %505 : vector<2x32xf32>
    %507 = math.exp %506 : vector<2x32xf32>
    %cst_126 = arith.constant 1.000000e+00 : f32
    %508 = vector.broadcast %cst_126 : f32 to vector<2x32xf32>
    %509 = arith.addf %508, %507 : vector<2x32xf32>
    %510 = arith.divf %508, %509 : vector<2x32xf32>
    %511 = vector.extract_strided_slice %468 {offsets = [0, 64], sizes = [2, 32], strides = [1, 1]} : vector<2x96xf32> to vector<2x32xf32>
    %512 = vector.extract_strided_slice %466 {offsets = [0, 64], sizes = [2, 32], strides = [1, 1]} : vector<2x96xf32> to vector<2x32xf32>
    %513 = arith.mulf %502, %512 : vector<2x32xf32>
    %514 = arith.addf %511, %513 : vector<2x32xf32>
    %515 = math.tanh %514 : vector<2x32xf32>
    %cst_127 = arith.constant 1.000000e+00 : f32
    %516 = vector.broadcast %cst_127 : f32 to vector<2x32xf32>
    %517 = arith.subf %516, %510 : vector<2x32xf32>
    %518 = arith.mulf %517, %515 : vector<2x32xf32>
    %519 = arith.mulf %510, %456 : vector<2x32xf32>
    %520 = arith.addf %518, %519 : vector<2x32xf32>
    %521 = arith.truncf %494 : vector<2x32xf32> to vector<2x32xbf16>
    %c14_128 = arith.constant 14 : index
    %c0_129 = arith.constant 0 : index
    %522 = vector.load %arg7[%c14_128, %c0_129] : memref<16x32xbf16, #tpu.memory_space<vmem>>, vector<2x32xbf16>
    tpu.vector_store %arg7[%c14_128, %c0_129], %521 {strides = array<i32>} : memref<16x32xbf16, #tpu.memory_space<vmem>>, vector<2x32xbf16>,
    %523 = arith.truncf %520 : vector<2x32xf32> to vector<2x32xbf16>
    %c0_130 = arith.constant 0 : index
    %c0_131 = arith.constant 0 : index
    %524 = vector.load %arg8[%c0_130, %c0_131] : memref<16x32xbf16, #tpu.memory_space<vmem>>, vector<2x32xbf16>
    tpu.vector_store %arg8[%c0_130, %c0_131], %523 {strides = array<i32>} : memref<16x32xbf16, #tpu.memory_space<vmem>>, vector<2x32xbf16>,
    %c0_132 = arith.constant 0 : index
    %c0_133 = arith.constant 0 : index
    %525 = vector.load %arg9[%c0_132, %c0_133] : memref<2x32xf32, #tpu.memory_space<vmem>>, vector<2x32xf32>
    tpu.vector_store %arg9[%c0_132, %c0_133], %494 {strides = array<i32>} : memref<2x32xf32, #tpu.memory_space<vmem>>, vector<2x32xf32>,
    %c0_134 = arith.constant 0 : index
    %c0_135 = arith.constant 0 : index
    %526 = vector.load %arg10[%c0_134, %c0_135] : memref<2x32xf32, #tpu.memory_space<vmem>>, vector<2x32xf32>
    tpu.vector_store %arg10[%c0_134, %c0_135], %520 {strides = array<i32>} : memref<2x32xf32, #tpu.memory_space<vmem>>, vector<2x32xf32>,
    return
  }
  func.func @transform_0(%arg0: i32) -> (i32, i32) {
    %c0_i32 = arith.constant 0 : i32
    %c0_i32_0 = arith.constant 0 : i32
    return %arg0, %c0_i32 : i32, i32
  }
  func.func @transform_1(%arg0: i32) -> (i32, i32) {
    %c0_i32 = arith.constant 0 : i32
    %0 = arith.subi %c0_i32, %arg0 : i32
    %c0_i32_0 = arith.constant 0 : i32
    %c0_i32_1 = arith.constant 0 : i32
    return %0, %c0_i32_0 : i32, i32
  }
  func.func @transform_2(%arg0: i32) -> (i32, i32) {
    %c0_i32 = arith.constant 0 : i32
    %c0_i32_0 = arith.constant 0 : i32
    %c0_i32_1 = arith.constant 0 : i32
    return %c0_i32, %c0_i32_0 : i32, i32
  }
  func.func @transform_3(%arg0: i32) -> (i32, i32) {
    %c0_i32 = arith.constant 0 : i32
    %c0_i32_0 = arith.constant 0 : i32
    %c0_i32_1 = arith.constant 0 : i32
    return %c0_i32, %c0_i32_0 : i32, i32
  }
  func.func @transform_4(%arg0: i32) -> (i32, i32) {
    %c0_i32 = arith.constant 0 : i32
    %c0_i32_0 = arith.constant 0 : i32
    %c0_i32_1 = arith.constant 0 : i32
    return %c0_i32, %c0_i32_0 : i32, i32
  }
  func.func @transform_5(%arg0: i32) -> (i32, i32) {
    %c0_i32 = arith.constant 0 : i32
    %c0_i32_0 = arith.constant 0 : i32
    %c0_i32_1 = arith.constant 0 : i32
    return %c0_i32, %c0_i32_0 : i32, i32
  }
  func.func @transform_6(%arg0: i32) -> (i32, i32) {
    %c0_i32 = arith.constant 0 : i32
    %c0_i32_0 = arith.constant 0 : i32
    return %arg0, %c0_i32 : i32, i32
  }
  func.func @transform_7(%arg0: i32) -> (i32, i32) {
    %c0_i32 = arith.constant 0 : i32
    %0 = arith.subi %c0_i32, %arg0 : i32
    %c0_i32_0 = arith.constant 0 : i32
    %c0_i32_1 = arith.constant 0 : i32
    return %0, %c0_i32_0 : i32, i32
  }
}

module attributes {stable_mosaic.version = 11 : i64} {
  func.func @_rowblock_matmul_kernel(%arg0: i32, %arg1: memref<16x32xbf16, #tpu.memory_space<vmem>>, %arg2: memref<16x32xbf16, #tpu.memory_space<vmem>>, %arg3: memref<32x8xbf16, #tpu.memory_space<vmem>>, %arg4: memref<32x8xbf16, #tpu.memory_space<vmem>>, %arg5: memref<1x8xf32, #tpu.memory_space<vmem>>, %arg6: memref<16x8xf32, #tpu.memory_space<vmem>>) attributes {dimension_semantics = [#tpu.dimension_semantics<parallel>], iteration_bounds = array<i64: 1>, scalar_prefetch = 0 : i64, scratch_operands = 0 : i64, tpu.core_type = #tpu.core_type<tc>, window_params = [{transform_indices = @transform_0, window_bounds = array<i64: 16, 32>}, {transform_indices = @transform_1, window_bounds = array<i64: 16, 32>}, {pipeline_mode = #tpu.pipeline_mode<synchronous>, transform_indices = @transform_2, window_bounds = array<i64: 32, 8>}, {pipeline_mode = #tpu.pipeline_mode<synchronous>, transform_indices = @transform_3, window_bounds = array<i64: 32, 8>}, {pipeline_mode = #tpu.pipeline_mode<synchronous>, transform_indices = @transform_4, window_bounds = array<i64: 1, 8>}, {transform_indices = @transform_5, window_bounds = array<i64: 16, 8>}]} {
    %c0 = arith.constant 0 : index
    %c0_0 = arith.constant 0 : index
    %0 = vector.load %arg1[%c0, %c0_0] : memref<16x32xbf16, #tpu.memory_space<vmem>>, vector<16x32xbf16>
    %c0_1 = arith.constant 0 : index
    %c0_2 = arith.constant 0 : index
    %1 = vector.load %arg2[%c0_1, %c0_2] : memref<16x32xbf16, #tpu.memory_space<vmem>>, vector<16x32xbf16>
    %c0_3 = arith.constant 0 : index
    %c0_4 = arith.constant 0 : index
    %2 = vector.load %arg3[%c0_3, %c0_4] : memref<32x8xbf16, #tpu.memory_space<vmem>>, vector<32x8xbf16>
    %cst = arith.constant dense<0.000000e+00> : vector<16x8xf32>
    %3 = tpu.matmul %0, %2, %cst {dimension_numbers = #tpu.dot_dimension_numbers<[1], [0], [0], [1], [0, 0, 1, 1], [], []>} : vector<16x32xbf16>, vector<32x8xbf16>, vector<16x8xf32> -> vector<16x8xf32>
    %c0_5 = arith.constant 0 : index
    %c0_6 = arith.constant 0 : index
    %4 = vector.load %arg4[%c0_5, %c0_6] : memref<32x8xbf16, #tpu.memory_space<vmem>>, vector<32x8xbf16>
    %cst_7 = arith.constant dense<0.000000e+00> : vector<16x8xf32>
    %5 = tpu.matmul %1, %4, %cst_7 {dimension_numbers = #tpu.dot_dimension_numbers<[1], [0], [0], [1], [0, 0, 1, 1], [], []>} : vector<16x32xbf16>, vector<32x8xbf16>, vector<16x8xf32> -> vector<16x8xf32>
    %6 = arith.addf %3, %5 : vector<16x8xf32>
    %c0_8 = arith.constant 0 : index
    %c0_9 = arith.constant 0 : index
    %7 = vector.load %arg5[%c0_8, %c0_9] : memref<1x8xf32, #tpu.memory_space<vmem>>, vector<1x8xf32>
    %8 = vector.broadcast %7 : vector<1x8xf32> to vector<16x8xf32>
    %9 = arith.addf %6, %8 : vector<16x8xf32>
    %c0_10 = arith.constant 0 : index
    %c0_11 = arith.constant 0 : index
    %10 = vector.load %arg6[%c0_10, %c0_11] : memref<16x8xf32, #tpu.memory_space<vmem>>, vector<16x8xf32>
    tpu.vector_store %arg6[%c0_10, %c0_11], %9 {strides = array<i32>} : memref<16x8xf32, #tpu.memory_space<vmem>>, vector<16x8xf32>,
    return
  }
  func.func @transform_0(%arg0: i32) -> (i32, i32) {
    %c0_i32 = arith.constant 0 : i32
    %c0_i32_0 = arith.constant 0 : i32
    return %arg0, %c0_i32 : i32, i32
  }
  func.func @transform_1(%arg0: i32) -> (i32, i32) {
    %c0_i32 = arith.constant 0 : i32
    %c0_i32_0 = arith.constant 0 : i32
    return %arg0, %c0_i32 : i32, i32
  }
  func.func @transform_2(%arg0: i32) -> (i32, i32) {
    %c0_i32 = arith.constant 0 : i32
    %c0_i32_0 = arith.constant 0 : i32
    %c0_i32_1 = arith.constant 0 : i32
    return %c0_i32, %c0_i32_0 : i32, i32
  }
  func.func @transform_3(%arg0: i32) -> (i32, i32) {
    %c0_i32 = arith.constant 0 : i32
    %c0_i32_0 = arith.constant 0 : i32
    %c0_i32_1 = arith.constant 0 : i32
    return %c0_i32, %c0_i32_0 : i32, i32
  }
  func.func @transform_4(%arg0: i32) -> (i32, i32) {
    %c0_i32 = arith.constant 0 : i32
    %c0_i32_0 = arith.constant 0 : i32
    %c0_i32_1 = arith.constant 0 : i32
    return %c0_i32, %c0_i32_0 : i32, i32
  }
  func.func @transform_5(%arg0: i32) -> (i32, i32) {
    %c0_i32 = arith.constant 0 : i32
    %c0_i32_0 = arith.constant 0 : i32
    return %arg0, %c0_i32 : i32, i32
  }
}

</mosaic_0001>

<bundles_post_ra>
// kernel: a_call__.5
= control target key start
LH: loop header
LB: loop body
LE: loop exit
PB: predicated region body
PF: predicated region fallthrough
CT: control target
= control target key end

     0   :  { %12 = vsyncpa [#allocation3], 0  ;;  %s946_s0 = inlined_call_operand.vmem [shape: bf16[16,300], index: 0, kind: input, shape index: {}]   ;;  %s947_s1 = inlined_call_operand.hbm [shape: bf16[300,96], index: 1, kind: input, shape index: {}]   ;;  %s948_s2 = inlined_call_operand.hbm [shape: f32[1,96], index: 2, kind: input, shape index: {}]   ;;  %s949_s3 = inlined_call_operand.vmem [shape: bf16[300,96], index: 3, kind: input, shape index: {}]   ;;  %s950_s4 = inlined_call_operand.hbm [shape: f32[1,96], index: 4, kind: input, shape index: {}]   ;;  %s951_s5 = inlined_call_operand.vmem [shape: f32[16,96], index: 5, kind: output, shape index: {0}]   ;;  %s952_s6 = inlined_call_operand.vmem [shape: f32[16,96], index: 6, kind: output, shape index: {1}]  }
   0x1   :  { %13 = vsyncpa [#allocation5], 0  ;;  %s34_s23 = sshll.u32 %s948_s2, 4  ;;  %s795_s24 = smov [#allocation4]   ;;  %s35_s23 = int_to_ptr.hbm [resolvable:$true] %s34_s23 }
   0x2   :  { %s36_s25 = sshll.u32 %s795_s24, 4  ;;  %s20_s28 = sshll.u32 %s947_s1, 4  ;;  %s37_s25 = int_to_ptr.vmem [resolvable:$true] %s36_s25  ;;  %s21_s28 = int_to_ptr.hbm [resolvable:$true] %s20_s28 }
   0x3   :  { %39 = dma.hbm_to_vmem [thread:$0]  %s35_s23, 16, %s37_s25, [#allocation5]  }
   0x4   :  { %s796_s29 = smov [#allocation2]   ;;  %s797_s7 = smov 64  }
   0x5   :  { %s22_s30 = sshll.u32 %s796_s29, 4  ;;  %s798_s8 = smov 4   ;;  %s23_s30 = int_to_ptr.vmem [resolvable:$true] %s22_s30 }
   0x6   :  { %28 = dma.hbm_to_vmem [thread:$0]  %s21_s28, 2432, %s23_s30, [#allocation3], %s797_s7, %s797_s7, %s798_s8  }
   0x7   :  { %s47_s2 = sshll.u32 %s950_s4, 4  ;;  %s799_s11 = smov [#allocation6]   ;;  %s48_s2 = int_to_ptr.hbm [resolvable:$true] %s47_s2 }
   0x8   :  { %s49_s12 = sshll.u32 %s799_s11, 4  ;;  %s50_s12 = int_to_ptr.vmem [resolvable:$true] %s49_s12 }
   0x9   :  { %52 = dma.hbm_to_vmem [thread:$0]  %s48_s2, 16, %s50_s12, [#allocation5]  }
   0xa   :  { %791 = dma.done.wait [#allocation3], 2432  }
   0xb   :  { %792 = vsyncadd [#allocation3], 4294964864 }
   0xc   :  { %793 = dma.done.wait [#allocation5], 32  }
   0xd   :  { %794 = vsyncadd [#allocation5], 4294967264  ;;  %v681_v0 = vld [vmem:[#allocation2 + $0x38] sm:$0xff]  ;;  %v591_v2 = vld [vmem:[#allocation2 + $0x90] sm:$0xf]  ;;  %vm244_vm0 = vcmask 1045504  }
   0xe   :  { %v700_v1 = vld [vmem:[%s949_s3 + $0x38] sm:$0xff]  ;;  %v692_v3 = vld [vmem:[#allocation2 + $0x90] sm:$0x30]  ;;  %248 = vmatpush.bf16.msra.mxu0 %v681_v0  ;;  %v691_v10 = vld [vmem:[#allocation2 + $0x88] sm:$0xff]  ;;  %vm240_vm1 = vcmask 359424   ;;  %vm290_vm2 = vcmask 785408  }
   0xf   :  { %v689_v4 = vld [vmem:[#allocation2 + $0x78] sm:$0xff]  ;;  %451 = vmatpush.bf16.msra.mxu3 %v700_v1  ;;  %v592_v5 = vor.u32 %v692_v3, %v591_v2  ;;  %v680_v6 = vld [vmem:[#allocation2 + $0x30] sm:$0xff]  ;;  %v679_v11 = vld [vmem:[#allocation2 + $0x28] sm:$0xff] }
  0x10   :  { %v699_v7 = vld [vmem:[%s949_s3 + $0x30] sm:$0xff]  ;;  %262 = vmatpush.bf16.msra.mxu1 %v689_v4  ;;  %v698_v12 = vld [vmem:[%s949_s3 + $0x28] sm:$0xff]  ;;  %v690_v14 = vld [vmem:[#allocation2 + $0x80] sm:$0xff] }
  0x11   :  { %v688_v8 = vld [vmem:[#allocation2 + $0x70] sm:$0xff]  ;;  %v246_v9 = vsel %vm244_vm0, %v592_v5, 0  ;;  %v687_v13 = vld [vmem:[#allocation2 + $0x68] sm:$0xff]  ;;  %v708_v17 = vld [vmem:[%s949_s3 + $0x78] sm:$0xff] }
  0x12   :  { %281 = vmatpush.bf16.msra.mxu2 %v246_v9  ;;  %249 = vmatpush.bf16.msra.mxu0 %v680_v6  ;;  %v515_v15 = vld [vmem:[%s946_s0 + $0x8] sm:$0xf]  ;;  %v673_v16 = vld [vmem:[%s946_s0 + $0x10] sm:$0xf0]  ;;  %v678_v18 = vld [vmem:[#allocation2 + $0x20] sm:$0xff] }
  0x13   :  { %452 = vmatpush.bf16.msra.mxu3 %v699_v7  ;;  %v697_v19 = vld [vmem:[%s949_s3 + $0x20] sm:$0xff]  ;;  %v866_v21 = vor.u32 %v673_v16, %v515_v15  ;;  %v707_v22 = vld [vmem:[%s949_s3 + $0x70] sm:$0xff]  ;;  %v677_v23 = vld [vmem:[#allocation2 + $0x18] sm:$0xff] }
  0x14   :  { %263 = vmatpush.bf16.msra.mxu1 %v688_v8  ;;  %v686_v20 = vld [vmem:[#allocation2 + $0x60] sm:$0xff]  ;;  %v696_v24 = vld [vmem:[%s949_s3 + $0x18] sm:$0xff]  ;;  %v706_v26 = vld [vmem:[%s949_s3 + $0x68] sm:$0xff] }
  0x15   :  { %v685_v25 = vld [vmem:[#allocation2 + $0x58] sm:$0xff]  ;;  %v676_v27 = vld [vmem:[#allocation2 + $0x10] sm:$0xff]  ;;  %v705_v30 = vld [vmem:[%s949_s3 + $0x60] sm:$0xff] }
  0x16   :  { %282 = vmatpush.bf16.msra.mxu2 %v691_v10  ;;  %250 = vmatpush.bf16.msra.mxu0 %v679_v11  ;;  %v695_v28 = vld [vmem:[%s949_s3 + $0x10] sm:$0xff]  ;;  %v675_v31 = vld [vmem:[#allocation2 + $0x8] sm:$0xff]  ;;  %v704_v36 = vld [vmem:[%s949_s3 + $0x58] sm:$0xff] }
  0x17   :  { %453 = vmatpush.bf16.msra.mxu3 %v698_v12  ;;  %v684_v29 = vld [vmem:[#allocation2 + $0x50] sm:$0xff]  ;;  %v694_v34 = vld [vmem:[%s949_s3 + $0x8] sm:$0xff]  ;;  %v674_v38 = vld [vmem:[#allocation2] sm:$0xff] }
  0x18   :  { %264 = vmatpush.bf16.msra.mxu1 %v687_v13  ;;  %v668_v32 = vld [vmem:[%s949_s3 + $0x90] sm:$0xf]  ;;  %v711_v33 = vld [vmem:[%s949_s3 + $0x90] sm:$0x30]  ;;  %v683_v35 = vld [vmem:[#allocation2 + $0x48] sm:$0xff] }
  0x19   :  { %v669_v37 = vor.u32 %v711_v33, %v668_v32  ;;  %v507_v39 = vld [vmem:[%s946_s0] sm:$0xf]  ;;  %v672_v40 = vld [vmem:[%s946_s0 + $0x8] sm:$0xf0]  ;;  %v671_v43 = vld [vmem:[%s946_s0 + $0x4] sm:$0xf] }
  0x1a   :  { %283 = vmatpush.bf16.msra.mxu2 %v690_v14  ;;  %251 = vmatpush.bf16.msra.mxu0 %v678_v18  ;;  %v693_v41 = vld [vmem:[%s949_s3] sm:$0xff]  ;;  %v509_v44 = vld [vmem:[%s946_s0 + $0xc] sm:$0xf0]  ;;  %v508_v45 = vor.u32 %v672_v40, %v507_v39  ;;  %v710_v49 = vld [vmem:[%s949_s3 + $0x88] sm:$0xff] }
  0x1b   :  { %454 = vmatpush.bf16.msra.mxu3 %v697_v19  ;;  %v682_v42 = vld [vmem:[#allocation2 + $0x40] sm:$0xff]  ;;  %v449_v46 = vsel %vm244_vm0, %v669_v37, 0  ;;  %v703_v47 = vld [vmem:[%s949_s3 + $0x50] sm:$0xff]  ;;  %v512_v48 = vor.u32 %v671_v43, %v509_v44  ;;  %v702_v50 = vld [vmem:[%s949_s3 + $0x48] sm:$0xff] }
  0x1c   :  { %265 = vmatpush.bf16.msra.mxu1 %v686_v20  ;;  %v709_v51 = vld [vmem:[%s949_s3 + $0x80] sm:$0xff]  ;;  %v717_v53 = vld [vmem:[#allocation4] ss:$0 sm:$0xff]  ;;  %v718_v0 = vld [vmem:[#allocation6] ss:$0 sm:$0xff] }
  0x1d   :  { %593 = vmatmul.msk.bf16.vlgmr.msra.gmra.mxu2 %vm240_vm1, %v866_v21  ;;  %v701_v52 = vld [vmem:[%s949_s3 + $0x40] sm:$0xff] }
  0x1e   :  { %465 = vmatpush.bf16.msrb.mxu2 %v708_v17  ;;  %252 = vmatpush.bf16.msra.mxu0 %v677_v23 }
  0x1f   :  { %455 = vmatpush.bf16.msra.mxu3 %v696_v24 }
  0x20   :  { %266 = vmatpush.bf16.msra.mxu1 %v685_v25 }
  0x22   :  { %466 = vmatpush.bf16.msrb.mxu2 %v707_v22  ;;  %253 = vmatpush.bf16.msra.mxu0 %v676_v27 }
  0x23   :  { %456 = vmatpush.bf16.msra.mxu3 %v695_v28 }
  0x24   :  { %267 = vmatpush.bf16.msra.mxu1 %v684_v29 }
  0x26   :  { %467 = vmatpush.bf16.msrb.mxu2 %v706_v26  ;;  %254 = vmatpush.bf16.msra.mxu0 %v675_v31 }
  0x27   :  { %457 = vmatpush.bf16.msra.mxu3 %v694_v34 }
  0x28   :  { %268 = vmatpush.bf16.msra.mxu1 %v683_v35 }
  0x2a   :  { %468 = vmatpush.bf16.msrb.mxu2 %v705_v30  ;;  %255 = vmatpush.bf16.msra.mxu0 %v674_v38 }
  0x2b   :  { %458 = vmatpush.bf16.msra.mxu3 %v693_v41 }
  0x2c   :  { %269 = vmatpush.bf16.msra.mxu1 %v682_v42 }
  0x2d   :  { %256 = vmatmul.bf16.vlgmr.msra.gmra.mxu0 %v508_v45 }
  0x2e   :  { %469 = vmatpush.bf16.msrb.mxu2 %v704_v36  ;;  %484 = vmatpush.bf16.msrb.mxu0 %v449_v46 }
  0x2f   :  { %459 = vmatmul.bf16.vlgmr.msra.gmra.mxu3 %v508_v45  ;;  %270 = vmatmul.bf16.vlgmr.msra.gmra.mxu1 %v512_v48 }
  0x32   :  { %470 = vmatpush.bf16.msrb.mxu2 %v703_v47  ;;  %485 = vmatpush.bf16.msrb.mxu0 %v710_v49 }
  0x36   :  { %471 = vmatpush.bf16.msrb.mxu2 %v702_v50  ;;  %486 = vmatpush.bf16.msrb.mxu0 %v709_v51 }
  0x3a   :  { %472 = vmatpush.bf16.msrb.mxu2 %v701_v52 }
  0x3d   :  { %473 = vmatmul.bf16.vlgmr.msrb.gmra.mxu2 %v512_v48  ;;  %670 = vmatmul.msk.bf16.vlgmr.msrb.gmra.mxu0 %vm240_vm1, %v866_v21 }
  0xa0   :  { %v285_v54 = vpop.f32.mrf.mxu2 }
  0xa8   :  { %v287_v62 = vpop.f32.mrf.mxu2 }
  0xaa   :  { %v257_v55 = vpop.f32.mrf.mxu0 }
  0xab   :  { %v258_v56 = vadd.f32 %v717_v53, %v257_v55 }
  0xac   :  { %v271_v57 = vpop.f32.mrf.mxu1 }
  0xad   :  { %v272_v58 = vadd.f32 %v271_v57, %v258_v56 }
  0xaf   :  { %v286_v59 = vadd.f32 %v285_v54, %v272_v58 }
  0xb1   :  { %291 = vst.msk [vmem:[%s951_s5] sm:$0xff] %vm290_vm2, %v286_v59 }
  0xb2   :  { %v259_v60 = vpop.f32.mrf.mxu0  ;;  %v460_v2 = vpop.f32.mrf.mxu3 }
  0xb3   :  { %v260_v61 = vadd.f32 %v717_v53, %v259_v60  ;;  %v461_v4 = vadd.f32 %v718_v0, %v460_v2 }
  0xb4   :  { %v273_v63 = vpop.f32.mrf.mxu1 }
  0xb5   :  { %v274_v1 = vadd.f32 %v273_v63, %v260_v61 }
  0xb7   :  { %v288_v3 = vadd.f32 %v287_v62, %v274_v1 }
  0xb9   :  { %292 = vst.msk [vmem:[%s951_s5 + $0x8] sm:$0xff] %vm290_vm2, %v288_v3 }
  0xba   :  { %v488_v6 = vpop.f32.mrf.mxu0  ;;  %v462_v9 = vpop.f32.mrf.mxu3 }
  0xbb   :  { %v463_v10 = vadd.f32 %v718_v0, %v462_v9 }
  0xc0   :  { %v474_v5 = vpop.f32.mrf.mxu2 }
  0xc1   :  { %v475_v7 = vadd.f32 %v474_v5, %v461_v4 }
  0xc2   :  { %v490_v13 = vpop.f32.mrf.mxu0 }
  0xc3   :  { %v489_v8 = vadd.f32 %v488_v6, %v475_v7 }
  0xc5   :  { %493 = vst.msk [vmem:[%s952_s6] sm:$0xff] %vm290_vm2, %v489_v8 }
  0xc8   :  { %v476_v11 = vpop.f32.mrf.mxu2 }
  0xc9   :  { %v477_v12 = vadd.f32 %v476_v11, %v463_v10 }
  0xcb   :  { %v491_v14 = vadd.f32 %v490_v13, %v477_v12 }
  0xcd   :  { %494 = vst.msk [vmem:[%s952_s6 + $0x8] sm:$0xff] %vm290_vm2, %v491_v14 }
  0xce   :  { %503 = vsyncpa [#allocation3], 1 }
  0xcf   :  { %504 = vsyncpa [#allocation5], 1 }

// kernel: a_call__.7
= control target key start
LH: loop header
LB: loop body
LE: loop exit
PB: predicated region body
PF: predicated region fallthrough
CT: control target
= control target key end

     0   :  { %vm61_vm0 = vcmask 261120   ;;  %vm119_vm1 = vcmask 785408   ;;  %s356_s3 = inlined_call_operand.vmem [shape: bf16[32,96], index: 3, kind: input, shape index: {}]   ;;  %s357_s2 = inlined_call_operand.vmem [shape: bf16[32,96], index: 2, kind: input, shape index: {}]   ;;  %s358_s6 = inlined_call_operand.vmem [shape: bf16[32,96], index: 6, kind: input, shape index: {}]   ;;  %s359_s5 = inlined_call_operand.vmem [shape: bf16[32,96], index: 5, kind: input, shape index: {}]   ;;  %s360_s1 = inlined_call_operand.vmem [shape: bf16[16,32], index: 1, kind: input, shape index: {}]   ;;  %s361_s0 = inlined_call_operand.vmem [shape: bf16[16,32], index: 0, kind: input, shape index: {}]   ;;  %s362_s4 = inlined_call_operand.vmem [shape: f32[1,96], index: 4, kind: input, shape index: {}]   ;;  %s363_s7 = inlined_call_operand.vmem [shape: f32[1,96], index: 7, kind: input, shape index: {}]   ;;  %s364_s8 = inlined_call_operand.vmem [shape: f32[16,96], index: 8, kind: output, shape index: {0}]   ;;  %s365_s9 = inlined_call_operand.vmem [shape: f32[16,96], index: 9, kind: output, shape index: {1}]  }
   0x1   :  { %v247_v0 = vld [vmem:[%s356_s3 + $0x8] sm:$0xff]  ;;  %v246_v4 = vld [vmem:[%s356_s3] sm:$0xff] }
   0x2   :  { %v245_v1 = vld [vmem:[%s357_s2 + $0x8] sm:$0xff]  ;;  %71 = vmatpush.bf16.msra.mxu0 %v247_v0  ;;  %v244_v5 = vld [vmem:[%s357_s2] sm:$0xff] }
   0x3   :  { %v251_v2 = vld [vmem:[%s358_s6 + $0x8] sm:$0xff]  ;;  %105 = vmatpush.bf16.msra.mxu1 %v245_v1  ;;  %v250_v6 = vld [vmem:[%s358_s6] sm:$0xff] }
   0x4   :  { %v249_v3 = vld [vmem:[%s359_s5 + $0x8] sm:$0xff]  ;;  %148 = vmatpush.bf16.msra.mxu2 %v251_v2  ;;  %v248_v7 = vld [vmem:[%s359_s5] sm:$0xff] }
   0x5   :  { %174 = vmatpush.bf16.msra.mxu3 %v249_v3  ;;  %v243_v8 = vld [vmem:[%s360_s1] sm:$0xff] }
   0x6   :  { %v242_v9 = vld [vmem:[%s361_s0] sm:$0xff]  ;;  %72 = vmatpush.bf16.msra.mxu0 %v246_v4 }
   0x7   :  { %106 = vmatpush.bf16.msra.mxu1 %v244_v5  ;;  %v252_v10 = vld [vmem:[%s362_s4] ss:$0 sm:$0xff] }
   0x8   :  { %149 = vmatpush.bf16.msra.mxu2 %v250_v6  ;;  %v253_v15 = vld [vmem:[%s363_s7] ss:$0 sm:$0xff] }
   0x9   :  { %175 = vmatpush.bf16.msra.mxu3 %v248_v7  ;;  %210 = vmatmul.msk.bf16.vlgmr.msra.gmra.mxu0 %vm61_vm0, %v243_v8 }
   0xa   :  { %223 = vmatmul.msk.bf16.vlgmr.msra.gmra.mxu1 %vm61_vm0, %v242_v9 }
   0xb   :  { %232 = vmatmul.msk.bf16.vlgmr.msra.gmra.mxu2 %vm61_vm0, %v243_v8 }
   0xc   :  { %241 = vmatmul.msk.bf16.vlgmr.msra.gmra.mxu3 %vm61_vm0, %v242_v9 }
  0x86   :  { %v74_v11 = vpop.f32.mrf.mxu0 }
  0x87   :  { %v108_v12 = vpop.f32.mrf.mxu1 }
  0x88   :  { %v109_v13 = vadd.f32 %v108_v12, %v74_v11 }
  0x8a   :  { %v117_v14 = vadd.f32 %v252_v10, %v109_v13 }
  0x8c   :  { %120 = vst.msk [vmem:[%s364_s8] sm:$0xff] %vm119_vm1, %v117_v14 }
  0x8e   :  { %v151_v16 = vpop.f32.mrf.mxu2  ;;  %v76_v19 = vpop.f32.mrf.mxu0 }
  0x8f   :  { %v177_v17 = vpop.f32.mrf.mxu3  ;;  %v110_v20 = vpop.f32.mrf.mxu1 }
  0x90   :  { %v178_v18 = vadd.f32 %v177_v17, %v151_v16  ;;  %v111_v21 = vadd.f32 %v110_v20, %v76_v19 }
  0x92   :  { %v186_v22 = vadd.f32 %v253_v15, %v178_v18  ;;  %v118_v23 = vadd.f32 %v252_v10, %v111_v21 }
  0x94   :  { %188 = vst.msk [vmem:[%s365_s9] sm:$0xff] %vm119_vm1, %v186_v22 }
  0x95   :  { %121 = vst.msk [vmem:[%s364_s8 + $0x8] sm:$0xff] %vm119_vm1, %v118_v23 }
  0x96   :  { %v153_v24 = vpop.f32.mrf.mxu2 }
  0x97   :  { %v179_v25 = vpop.f32.mrf.mxu3 }
  0x98   :  { %v180_v26 = vadd.f32 %v179_v25, %v153_v24 }
  0x9a   :  { %v187_v27 = vadd.f32 %v253_v15, %v180_v26 }
  0x9c   :  { %189 = vst.msk [vmem:[%s365_s9 + $0x8] sm:$0xff] %vm119_vm1, %v187_v27 }

// kernel: a_call__.6
= control target key start
LH: loop header
LB: loop body
LE: loop exit
PB: predicated region body
PF: predicated region fallthrough
CT: control target
= control target key end

     0   :  { %13 = vsyncpa [#allocation5], 0  ;;  %s1969_s0 = inlined_call_operand.vmem [shape: f32[16,96], index: 0, kind: input, shape index: {}]   ;;  %s1970_s1 = inlined_call_operand.vmem [shape: f32[16,96], index: 1, kind: input, shape index: {}]   ;;  %s1971_s2 = inlined_call_operand.hbm [shape: bf16[32,96], index: 2, kind: input, shape index: {}]   ;;  %s1972_s3 = inlined_call_operand.hbm [shape: bf16[32,96], index: 3, kind: input, shape index: {}]   ;;  %s1973_s4 = inlined_call_operand.vmem [shape: f32[1,96], index: 4, kind: input, shape index: {}]   ;;  %s1974_s5 = inlined_call_operand.vmem [shape: f32[1,96], index: 5, kind: input, shape index: {}]   ;;  %s1975_s6 = inlined_call_operand.vmem [shape: bf16[16,32], index: 6, kind: output, shape index: {0}]   ;;  %s1976_s7 = inlined_call_operand.vmem [shape: bf16[16,32], index: 7, kind: output, shape index: {1}]  }
   0x1   :  { %s31_s26 = sshll.u32 %s1971_s2, 4  ;;  %s32_s26 = int_to_ptr.hbm [resolvable:$true] %s31_s26 }
   0x2   :  { %14 = vsyncpa [#allocation7], 0  ;;  %s1478_s27 = smov [#allocation4]   ;;  %s44_s8 = sshll.u32 %s1972_s3, 4  ;;  %s45_s8 = int_to_ptr.hbm [resolvable:$true] %s44_s8 }
   0x3   :  { %s33_s28 = sshll.u32 %s1478_s27, 4  ;;  %s1479_s9 = smov 64   ;;  %s34_s28 = int_to_ptr.vmem [resolvable:$true] %s33_s28 }
   0x4   :  { %s1480_s10 = smov 4   ;;  %s1481_s11 = smov [#allocation6]  }
   0x5   :  { %39 = dma.hbm_to_vmem [thread:$0]  %s32_s26, 256, %s34_s28, [#allocation5], %s1479_s9, %s1479_s9, %s1480_s10  }
   0x6   :  { %s46_s12 = sshll.u32 %s1481_s11, 4  ;;  %s47_s12 = int_to_ptr.vmem [resolvable:$true] %s46_s12 }
   0x7   :  { %52 = dma.hbm_to_vmem [thread:$0]  %s45_s8, 256, %s47_s12, [#allocation7], %s1479_s9, %s1479_s9, %s1480_s10  }
   0x8   :  { %1474 = dma.done.wait [#allocation5], 256  }
   0x9   :  { %1475 = vsyncadd [#allocation5], 4294967040 }
   0xa   :  { %1476 = dma.done.wait [#allocation7], 256  }
   0xb   :  { %1477 = vsyncadd [#allocation7], 4294967040  ;;  %vm98_vm0 = vcmask 254976   ;;  %v1482_v0 = vmov 0.0   ;;  %v1537_v1 = vld [vmem:[#allocation4 + $0x8] sm:$0xff]  ;;  %v1539_v2 = vld [vmem:[#allocation6 + $0x8] sm:$0xff] }
   0xc   :  { %99 = vst.msk [vmem:[#allocation2] sm:$0x3] %vm98_vm0, %v1482_v0  ;;  %v1541_v3 = vld [vmem:[#allocation4] sm:$0xff]  ;;  %v1543_v4 = vld [vmem:[#allocation6] sm:$0xff]  ;;  %142 = vmatpush.bf16.msra.mxu0 %v1537_v1  ;;  %171 = vmatpush.bf16.msra.mxu1 %v1539_v2  ;;  %vm132_vm1 = vcmask 261120   ;;  %s1483_s19 = smov 32  }
   0xd   :  { %100 = vst.msk [vmem:[#allocation3] sm:$0x3] %vm98_vm0, %v1482_v0  ;;  %294 = vmatpush.bf16.msra.mxu2 %v1537_v1  ;;  %314 = vmatpush.bf16.msra.mxu3 %v1539_v2  ;;  %v1578_v9 = vld [vmem:[%s1973_s4] ss:$0 sm:$0xff]  ;;  %v179_v20 = vld [vmem:[%s1970_s1 + $0xe] sm:$0x3] }
   0xe   :  { %v1585_v13 = vld [vmem:[%s1974_s5] ss:$0 sm:$0xff]  ;;  %s1484_s20 = smov 96  }
   0xf   :  { %v178_v17 = vld [vmem:[%s1969_s0] sm:$0x3] }
  0x10   :  { %143 = vmatpush.bf16.msra.mxu0 %v1541_v3  ;;  %172 = vmatpush.bf16.msra.mxu1 %v1543_v4 }
  0x11   :  { %295 = vmatpush.bf16.msra.mxu2 %v1541_v3  ;;  %315 = vmatpush.bf16.msra.mxu3 %v1543_v4 }
  0x13   :  { %v1547_v5 = vld [vmem:[#allocation2] sm:$0x3] }
  0x14   :  { %v1549_v6 = vld [vmem:[#allocation3] sm:$0x3]  ;;  %v119_v7 = vpack.c.bf16 %v1547_v5, %v1547_v5  ;;  %430 = vmatpush.bf16.msrb.mxu0 %v1537_v1  ;;  %450 = vmatpush.bf16.msrb.mxu1 %v1539_v2 }
  0x15   :  { %v149_v8 = vpack.c.bf16 %v1549_v6, %v1549_v6  ;;  %564 = vmatpush.bf16.msrb.mxu2 %v1537_v1  ;;  %584 = vmatpush.bf16.msrb.mxu3 %v1539_v2 }
  0x16   :  { %1275 = vmatmul.msk.bf16.vlgmr.msra.gmra.mxu0 %vm132_vm1, %v119_v7 }
  0x17   :  { %1284 = vmatmul.msk.bf16.vlgmr.msra.gmra.mxu1 %vm132_vm1, %v149_v8 }
  0x18   :  { %431 = vmatpush.bf16.msrb.mxu0 %v1541_v3  ;;  %451 = vmatpush.bf16.msrb.mxu1 %v1543_v4 }
  0x19   :  { %565 = vmatpush.bf16.msrb.mxu2 %v1541_v3  ;;  %585 = vmatpush.bf16.msrb.mxu3 %v1543_v4 }
  0x1c   :  { %697 = vmatpush.bf16.msra.mxu0 %v1537_v1  ;;  %717 = vmatpush.bf16.msra.mxu1 %v1539_v2 }
  0x20   :  { %698 = vmatpush.bf16.msra.mxu0 %v1541_v3  ;;  %718 = vmatpush.bf16.msra.mxu1 %v1543_v4 }
  0x93   :  { %v145_v10 = vpop.f32.mrf.mxu0 }
  0x94   :  { %v174_v11 = vpop.f32.mrf.mxu1  ;;  %v146_v12 = vadd.f32 %v1578_v9, %v145_v10 }
  0x95   :  { %v175_v16 = vadd.f32 %v1585_v13, %v174_v11 }
  0x96   :  { %201 = vrot.lane.b32.xlu0 %v146_v12, %s1479_s9  ;;  %v180_v18 = vadd.f32 %v178_v17, %v146_v12 }
  0x97   :  { %v223_v21 = vadd.f32 %v179_v20, %v175_v16 }
  0x98   :  { %v1285_v19 = vmul.f32 -1.442695, %v180_v18 }
  0x99   :  { %v1286_v22 = vmul.f32 -1.442695, %v223_v21 }
  0x9a   :  { %1328 = vpow2.f32 %v1285_v19 }
  0x9b   :  { %v147_v14 = vpop.f32.mrf.mxu0  ;;  %1330 = vpow2.f32 %v1286_v22 }
  0x9c   :  { %v176_v15 = vpop.f32.mrf.mxu1 }
  0x9e   :  { %244 = vrot.lane.b32.xlu0 %v175_v16, %s1479_s9 }
  0xa0   :  { %v1329_v23 = vpop.eup %1328 }
  0xa1   :  { %v184_v24 = vadd.f32 1.0, %v1329_v23  ;;  %v1331_v25 = vpop.eup %1330 }
  0xa2   :  { %v227_v26 = vadd.f32 1.0, %v1331_v25  ;;  %v321_v25 = vld [vmem:[%s1969_s0 + $0x2] sm:$0x3] }
  0xa3   :  { %1332 = vrcp.f32 %v184_v24  ;;  %v196_v35 = vand.u32 2147483648, %v184_v24  ;;  %vm190_vm3 = vweird.f32 %v184_v24  ;;  %v194_v36 = vand.u32 2147483647, %v184_v24 }
  0xa4   :  { %1334 = vrcp.f32 %v227_v26  ;;  %vm233_vm6 = vweird.f32 %v227_v26  ;;  %v239_v44 = vand.u32 2147483648, %v227_v26  ;;  %v237_v45 = vand.u32 2147483647, %v227_v26 }
  0xa5   :  { %v197_v39 = vor.u32 1.1754944e-38, %v196_v35  ;;  %vm195_vm5 = vcmp.eq.f32.partialorder %v194_v36, 8.507059e+37 }
  0xa6   :  { %v240_v47 = vor.u32 1.1754944e-38, %v239_v44  ;;  %vm238_vm9 = vcmp.eq.f32.partialorder %v237_v45, 8.507059e+37 }
  0xa9   :  { %v1333_v27 = vpop.eup %1332 }
  0xaa   :  { %v186_v28 = vmul.f32 %v1333_v27, %v184_v24  ;;  %v1335_v30 = vpop.eup %1334  ;;  %vm191_vm2 = vweird.f32 %v1333_v27 }
  0xab   :  { %v229_v32 = vmul.f32 %v1335_v30, %v227_v26  ;;  %vm192_vm4 = vmor %vm190_vm3, %vm191_vm2  ;;  %vm234_vm7 = vweird.f32 %v1335_v30 }
  0xac   :  { %v187_v29 = vsub.f32 1.0, %v186_v28  ;;  %vm235_vm8 = vmor %vm233_vm6, %vm234_vm7 }
  0xad   :  { %v230_v34 = vsub.f32 1.0, %v229_v32 }
  0xae   :  { %v188_v31 = vmul.f32 %v1333_v27, %v187_v29 }
  0xaf   :  { %v231_v38 = vmul.f32 %v1335_v30, %v230_v34 }
  0xb0   :  { %v189_v33 = vadd.f32 %v1333_v27, %v188_v31 }
  0xb1   :  { %v232_v43 = vadd.f32 %v1335_v30, %v231_v38 }
  0xb2   :  { %v193_v37 = vsel %vm192_vm4, %v1333_v27, %v189_v33 }
  0xb3   :  { %v198_v41 = vsel %vm195_vm5, %v197_v39, %v193_v37  ;;  %v236_v46 = vsel %vm235_vm8, %v1335_v30, %v232_v43  ;;  %v322_v30 = vld [vmem:[%s1970_s1 + $0xc] sm:$0x3] }
  0xb4   :  { %v241_v48 = vsel %vm238_vm9, %v240_v47, %v236_v46  ;;  %v211_v58 = vsub.f32 1.0, %v198_v41 }
 0x108   :  { %v202_v40 = vpop.permute.xlu0 %201 }
 0x109   :  { %v204_v42 = vmul.f32 %v202_v40, %v198_v41 }
 0x10b   :  { %206 = vrot.lane.b32.xlu1 %v204_v42, %s1479_s9 }
 0x110   :  { %v245_v49 = vpop.permute.xlu0 %244 }
 0x111   :  { %v247_v50 = vmul.f32 %v245_v49, %v241_v48 }
 0x113   :  { %249 = vrot.lane.b32.xlu1 %v247_v50, %s1479_s9 }
 0x11b   :  { %261 = vrot.lane.b32.xlu1 %v1549_v6, %s1483_s19 }
 0x17d   :  { %v207_v51 = vpop.permute.xlu1 %206 }
 0x17e   :  { %v209_v52 = vadd.f32 %v207_v51, %v178_v17 }
 0x180   :  { %1336 = vtanh.f32 %v209_v52 }
 0x185   :  { %v250_v53 = vpop.permute.xlu1 %249 }
 0x186   :  { %v1337_v54 = vpop.eup %1336  ;;  %v252_v55 = vadd.f32 %v250_v53, %v179_v20 }
 0x187   :  { %213 = vrot.lane.b32.xlu2 %v1337_v54, %s1484_s20 }
 0x188   :  { %1338 = vtanh.f32 %v252_v55 }
 0x18d   :  { %v262_v7 = vpop.permute.xlu1 %261 }
 0x18e   :  { %v1339_v56 = vpop.eup %1338  ;;  %v264_v10 = vmul.f32 %v262_v7, %v241_v48 }
 0x18f   :  { %218 = vrot.lane.b32.xlu2 %v1547_v5, %s1483_s19  ;;  %256 = vrot.lane.b32.xlu0 %v1339_v56, %s1484_s20  ;;  %v254_v5 = vsub.f32 1.0, %v241_v48 }
 0x1e1   :  { %v214_v57 = vpop.permute.xlu2 %213 }
 0x1e2   :  { %v216_v60 = vmul.f32 %v214_v57, %v211_v58 }
 0x1e9   :  { %v219_v59 = vpop.permute.xlu2 %218 }
 0x1ea   :  { %v221_v61 = vmul.f32 %v219_v59, %v198_v41 }
 0x1ec   :  { %v1601_v62 = vadd.f32 %v221_v61, %v216_v60 }
 0x1ee   :  { %v1605_v63 = vpack.c.bf16 %v1601_v62, %v1601_v62 }
 0x1f0   :  { %v281_v0 = vunpack.c.l.b16 %v1605_v63 }
 0x1f2   :  { %v282_v6 = vpack.c.b16 %v281_v0, %v281_v0 }
 0x1f4   :  { %283 = vrot.lane.b32.xlu2 %v282_v6, %s1484_s20 }
 0x201   :  { %v257_v8 = vpop.permute.xlu0 %256 }
 0x202   :  { %v259_v11 = vmul.f32 %v257_v8, %v254_v5 }
 0x204   :  { %v1609_v12 = vadd.f32 %v264_v10, %v259_v11 }
 0x206   :  { %v1613_v14 = vpack.c.bf16 %v1609_v12, %v1609_v12 }
 0x208   :  { %v301_v15 = vunpack.c.l.b16 %v1613_v14 }
 0x20a   :  { %v302_v16 = vpack.c.b16 %v301_v15, %v301_v15 }
 0x20c   :  { %303 = vrot.lane.b32.xlu0 %v302_v16, %s1484_s20 }
 0x24e   :  { %v284_v17 = vpop.permute.xlu2 %283 }
 0x24f   :  { %1287 = vmatmul.msk.bf16.vlgmr.msra.gmra.mxu2 %vm132_vm1, %v284_v17 }
 0x250   :  { %830 = vmatpush.bf16.msra.mxu2 %v1537_v1 }
 0x254   :  { %831 = vmatpush.bf16.msra.mxu2 %v1541_v3 }
 0x27e   :  { %v304_v18 = vpop.permute.xlu0 %303 }
 0x27f   :  { %1288 = vmatmul.msk.bf16.vlgmr.msra.gmra.mxu3 %vm132_vm1, %v304_v18 }
 0x280   :  { %850 = vmatpush.bf16.msra.mxu3 %v1539_v2 }
 0x284   :  { %851 = vmatpush.bf16.msra.mxu3 %v1543_v4 }
 0x2d2   :  { %v297_v19 = vpop.f32.mrf.mxu2 }
 0x2d3   :  { %v298_v20 = vadd.f32 %v1578_v9, %v297_v19 }
 0x2d5   :  { %344 = vrot.lane.b32.xlu1 %v298_v20, %s1479_s9  ;;  %v323_v26 = vadd.f32 %v321_v25, %v298_v20 }
 0x2d7   :  { %v1289_v27 = vmul.f32 -1.442695, %v323_v26 }
 0x2d9   :  { %1340 = vpow2.f32 %v1289_v27 }
 0x2da   :  { %v299_v21 = vpop.f32.mrf.mxu2 }
 0x2df   :  { %v1341_v28 = vpop.eup %1340 }
 0x2e0   :  { %v327_v29 = vadd.f32 1.0, %v1341_v28 }
 0x2e2   :  { %1342 = vrcp.f32 %v327_v29  ;;  %v339_v40 = vand.u32 2147483648, %v327_v29  ;;  %vm333_vm11 = vweird.f32 %v327_v29  ;;  %v337_v41 = vand.u32 2147483647, %v327_v29 }
 0x2e4   :  { %v340_v43 = vor.u32 1.1754944e-38, %v339_v40  ;;  %vm338_vm13 = vcmp.eq.f32.partialorder %v337_v41, 8.507059e+37 }
 0x2e8   :  { %v1343_v32 = vpop.eup %1342 }
 0x2e9   :  { %v329_v34 = vmul.f32 %v1343_v32, %v327_v29  ;;  %vm334_vm10 = vweird.f32 %v1343_v32 }
 0x2ea   :  { %vm335_vm12 = vmor %vm333_vm11, %vm334_vm10 }
 0x2eb   :  { %v330_v35 = vsub.f32 1.0, %v329_v34 }
 0x2ed   :  { %v331_v37 = vmul.f32 %v1343_v32, %v330_v35 }
 0x2ef   :  { %v332_v39 = vadd.f32 %v1343_v32, %v331_v37 }
 0x2f1   :  { %v336_v42 = vsel %vm335_vm12, %v1343_v32, %v332_v39 }
 0x2f2   :  { %v341_v44 = vsel %vm338_vm13, %v340_v43, %v336_v42 }
 0x2f3   :  { %v354_v5 = vsub.f32 1.0, %v341_v44  ;;  %v360_v10 = vmul.f32 %v341_v44, %v1601_v62 }
 0x302   :  { %v317_v22 = vpop.f32.mrf.mxu3 }
 0x303   :  { %v318_v23 = vadd.f32 %v1585_v13, %v317_v22 }
 0x305   :  { %383 = vrot.lane.b32.xlu2 %v318_v23, %s1479_s9  ;;  %v362_v31 = vadd.f32 %v322_v30, %v318_v23 }
 0x307   :  { %v1290_v33 = vmul.f32 -1.442695, %v362_v31 }
 0x309   :  { %1344 = vpow2.f32 %v1290_v33  ;;  %v457_v33 = vld [vmem:[%s1969_s0 + $0x4] sm:$0x3] }
 0x30a   :  { %v319_v24 = vpop.f32.mrf.mxu3 }
 0x30f   :  { %v1345_v36 = vpop.eup %1344 }
 0x310   :  { %v366_v38 = vadd.f32 1.0, %v1345_v36 }
 0x312   :  { %1346 = vrcp.f32 %v366_v38  ;;  %v378_v52 = vand.u32 2147483648, %v366_v38  ;;  %vm372_vm15 = vweird.f32 %v366_v38  ;;  %v376_v53 = vand.u32 2147483647, %v366_v38 }
 0x314   :  { %v379_v55 = vor.u32 1.1754944e-38, %v378_v52  ;;  %vm377_vm3 = vcmp.eq.f32.partialorder %v376_v53, 8.507059e+37 }
 0x318   :  { %v1347_v47 = vpop.eup %1346 }
 0x319   :  { %v368_v48 = vmul.f32 %v1347_v47, %v366_v38  ;;  %vm373_vm14 = vweird.f32 %v1347_v47  ;;  %v458_v38 = vld [vmem:[%s1970_s1 + $0xa] sm:$0x3] }
 0x31a   :  { %vm374_vm2 = vmor %vm372_vm15, %vm373_vm14 }
 0x31b   :  { %v369_v49 = vsub.f32 1.0, %v368_v48 }
 0x31d   :  { %v370_v50 = vmul.f32 %v1347_v47, %v369_v49 }
 0x31f   :  { %v371_v51 = vadd.f32 %v1347_v47, %v370_v50 }
 0x321   :  { %v375_v54 = vsel %vm374_vm2, %v1347_v47, %v371_v51 }
 0x322   :  { %v380_v57 = vsel %vm377_vm3, %v379_v55, %v375_v54 }
 0x323   :  { %v393_v19 = vsub.f32 1.0, %v380_v57  ;;  %v399_v21 = vmul.f32 %v380_v57, %v1609_v12 }
 0x347   :  { %v345_v45 = vpop.permute.xlu1 %344 }
 0x348   :  { %v347_v46 = vmul.f32 %v345_v45, %v341_v44 }
 0x34a   :  { %349 = vrot.lane.b32.xlu0 %v347_v46, %s1479_s9 }
 0x35f   :  { %v384_v56 = vpop.permute.xlu2 %383 }
 0x360   :  { %v386_v58 = vmul.f32 %v384_v56, %v380_v57 }
 0x362   :  { %388 = vrot.lane.b32.xlu1 %v386_v58, %s1479_s9 }
 0x3bc   :  { %v350_v59 = vpop.permute.xlu0 %349 }
 0x3bd   :  { %v352_v60 = vadd.f32 %v350_v59, %v321_v25 }
 0x3bf   :  { %1348 = vtanh.f32 %v352_v60 }
 0x3c5   :  { %v1349_v61 = vpop.eup %1348 }
 0x3c6   :  { %356 = vrot.lane.b32.xlu2 %v1349_v61, %s1484_s20 }
 0x3d4   :  { %v389_v0 = vpop.permute.xlu1 %388 }
 0x3d5   :  { %v391_v6 = vadd.f32 %v389_v0, %v322_v30 }
 0x3d7   :  { %1350 = vtanh.f32 %v391_v6 }
 0x3dd   :  { %v1351_v7 = vpop.eup %1350 }
 0x3de   :  { %395 = vrot.lane.b32.xlu0 %v1351_v7, %s1484_s20 }
 0x420   :  { %v357_v8 = vpop.permute.xlu2 %356 }
 0x421   :  { %v359_v11 = vmul.f32 %v357_v8, %v354_v5 }
 0x423   :  { %v1638_v15 = vadd.f32 %v360_v10, %v359_v11 }
 0x425   :  { %v1642_v16 = vpack.c.bf16 %v1638_v15, %v1638_v15 }
 0x427   :  { %v417_v17 = vunpack.c.l.b16 %v1642_v16 }
 0x429   :  { %v418_v18 = vpack.c.b16 %v417_v17, %v417_v17 }
 0x42b   :  { %419 = vrot.lane.b32.xlu1 %v418_v18, %s1484_s20 }
 0x450   :  { %v396_v20 = vpop.permute.xlu0 %395 }
 0x451   :  { %v398_v22 = vmul.f32 %v396_v20, %v393_v19 }
 0x453   :  { %v1647_v23 = vadd.f32 %v399_v21, %v398_v22 }
 0x455   :  { %v1651_v62 = vpack.c.bf16 %v1647_v23, %v1647_v23 }
 0x457   :  { %v437_v24 = vunpack.c.l.b16 %v1651_v62 }
 0x459   :  { %v438_v25 = vpack.c.b16 %v437_v24, %v437_v24 }
 0x45b   :  { %439 = vrot.lane.b32.xlu2 %v438_v25, %s1484_s20 }
 0x49d   :  { %v420_v26 = vpop.permute.xlu1 %419 }
 0x49e   :  { %1291 = vmatmul.msk.bf16.vlgmr.msrb.gmra.mxu0 %vm132_vm1, %v420_v26 }
 0x49f   :  { %964 = vmatpush.bf16.msrb.mxu0 %v1537_v1 }
 0x4a3   :  { %965 = vmatpush.bf16.msrb.mxu0 %v1541_v3 }
 0x4b5   :  { %v440_v12 = vpop.permute.xlu2 %439 }
 0x4b6   :  { %1292 = vmatmul.msk.bf16.vlgmr.msrb.gmra.mxu1 %vm132_vm1, %v440_v12 }
 0x4b7   :  { %984 = vmatpush.bf16.msrb.mxu1 %v1539_v2 }
 0x4bb   :  { %985 = vmatpush.bf16.msrb.mxu1 %v1543_v4 }
 0x51b   :  { %v433_v27 = vpop.f32.mrf.mxu0 }
 0x51c   :  { %v434_v28 = vadd.f32 %v1578_v9, %v433_v27 }
 0x51e   :  { %480 = vrot.lane.b32.xlu0 %v434_v28, %s1479_s9  ;;  %v459_v34 = vadd.f32 %v457_v33, %v434_v28 }
 0x520   :  { %v1293_v35 = vmul.f32 -1.442695, %v459_v34 }
 0x522   :  { %1352 = vpow2.f32 %v1293_v35 }
 0x523   :  { %v435_v29 = vpop.f32.mrf.mxu0 }
 0x528   :  { %v1353_v36 = vpop.eup %1352 }
 0x529   :  { %v463_v37 = vadd.f32 1.0, %v1353_v36 }
 0x52b   :  { %1354 = vrcp.f32 %v463_v37  ;;  %v475_v48 = vand.u32 2147483648, %v463_v37  ;;  %vm469_vm5 = vweird.f32 %v463_v37  ;;  %v473_v49 = vand.u32 2147483647, %v463_v37 }
 0x52d   :  { %v476_v51 = vor.u32 1.1754944e-38, %v475_v48  ;;  %vm474_vm7 = vcmp.eq.f32.partialorder %v473_v49, 8.507059e+37 }
 0x531   :  { %v1355_v40 = vpop.eup %1354 }
 0x532   :  { %v465_v42 = vmul.f32 %v1355_v40, %v463_v37  ;;  %vm470_vm4 = vweird.f32 %v1355_v40 }
 0x533   :  { %v453_v30 = vpop.f32.mrf.mxu1  ;;  %vm471_vm6 = vmor %vm469_vm5, %vm470_vm4 }
 0x534   :  { %v454_v31 = vadd.f32 %v1585_v13, %v453_v30  ;;  %v466_v43 = vsub.f32 1.0, %v465_v42 }
 0x536   :  { %519 = vrot.lane.b32.xlu1 %v454_v31, %s1479_s9  ;;  %v498_v39 = vadd.f32 %v458_v38, %v454_v31  ;;  %v467_v45 = vmul.f32 %v1355_v40, %v466_v43 }
 0x538   :  { %v1294_v41 = vmul.f32 -1.442695, %v498_v39  ;;  %v468_v47 = vadd.f32 %v1355_v40, %v467_v45 }
 0x53a   :  { %1356 = vpow2.f32 %v1294_v41  ;;  %v472_v50 = vsel %vm471_vm6, %v1355_v40, %v468_v47 }
 0x53b   :  { %v455_v32 = vpop.f32.mrf.mxu1  ;;  %v477_v53 = vsel %vm474_vm7, %v476_v51, %v472_v50  ;;  %v592_v51 = vld [vmem:[%s1970_s1 + $0x8] sm:$0x3] }
 0x53c   :  { %v490_v21 = vsub.f32 1.0, %v477_v53  ;;  %v496_v24 = vmul.f32 %v477_v53, %v1638_v15 }
 0x540   :  { %v1357_v44 = vpop.eup %1356 }
 0x541   :  { %v502_v46 = vadd.f32 1.0, %v1357_v44 }
 0x543   :  { %1358 = vrcp.f32 %v502_v46  ;;  %v514_v60 = vand.u32 2147483648, %v502_v46  ;;  %vm508_vm9 = vweird.f32 %v502_v46  ;;  %v512_v61 = vand.u32 2147483647, %v502_v46 }
 0x545   :  { %v515_v6 = vor.u32 1.1754944e-38, %v514_v60  ;;  %vm513_vm11 = vcmp.eq.f32.partialorder %v512_v61, 8.507059e+37 }
 0x549   :  { %v1359_v55 = vpop.eup %1358 }
 0x54a   :  { %v504_v56 = vmul.f32 %v1359_v55, %v502_v46  ;;  %vm509_vm8 = vweird.f32 %v1359_v55 }
 0x54b   :  { %vm510_vm10 = vmor %vm508_vm9, %vm509_vm8 }
 0x54c   :  { %v505_v57 = vsub.f32 1.0, %v504_v56 }
 0x54e   :  { %v506_v58 = vmul.f32 %v1359_v55, %v505_v57 }
 0x550   :  { %v507_v59 = vadd.f32 %v1359_v55, %v506_v58 }
 0x552   :  { %v511_v0 = vsel %vm510_vm10, %v1359_v55, %v507_v59 }
 0x553   :  { %v516_v7 = vsel %vm513_vm11, %v515_v6, %v511_v0 }
 0x554   :  { %v529_v29 = vsub.f32 1.0, %v516_v7  ;;  %v535_v31 = vmul.f32 %v516_v7, %v1647_v23 }
 0x590   :  { %v481_v52 = vpop.permute.xlu0 %480 }
 0x591   :  { %v483_v54 = vmul.f32 %v481_v52, %v477_v53 }
 0x593   :  { %485 = vrot.lane.b32.xlu2 %v483_v54, %s1479_s9 }
 0x5a8   :  { %v520_v5 = vpop.permute.xlu1 %519 }
 0x5a9   :  { %v522_v8 = vmul.f32 %v520_v5, %v516_v7 }
 0x5ab   :  { %524 = vrot.lane.b32.xlu0 %v522_v8, %s1479_s9 }
 0x5ed   :  { %v486_v10 = vpop.permute.xlu2 %485 }
 0x5ee   :  { %v488_v11 = vadd.f32 %v486_v10, %v457_v33 }
 0x5f0   :  { %1360 = vtanh.f32 %v488_v11 }
 0x5f6   :  { %v1361_v17 = vpop.eup %1360 }
 0x5f7   :  { %492 = vrot.lane.b32.xlu1 %v1361_v17, %s1484_s20 }
 0x61d   :  { %v525_v18 = vpop.permute.xlu0 %524 }
 0x61e   :  { %v527_v19 = vadd.f32 %v525_v18, %v458_v38 }
 0x620   :  { %1362 = vtanh.f32 %v527_v19 }
 0x626   :  { %v1363_v20 = vpop.eup %1362 }
 0x627   :  { %531 = vrot.lane.b32.xlu2 %v1363_v20, %s1484_s20 }
 0x669   :  { %v493_v22 = vpop.permute.xlu1 %492 }
 0x66a   :  { %v495_v25 = vmul.f32 %v493_v22, %v490_v21 }
 0x66c   :  { %v1676_v26 = vadd.f32 %v496_v24, %v495_v25 }
 0x66e   :  { %v1680_v12 = vpack.c.bf16 %v1676_v26, %v1676_v26 }
 0x670   :  { %v551_v27 = vunpack.c.l.b16 %v1680_v12 }
 0x672   :  { %v552_v28 = vpack.c.b16 %v551_v27, %v551_v27 }
 0x674   :  { %553 = vrot.lane.b32.xlu0 %v552_v28, %s1484_s20 }
 0x681   :  { %v532_v30 = vpop.permute.xlu2 %531 }
 0x682   :  { %v534_v32 = vmul.f32 %v532_v30, %v529_v29 }
 0x684   :  { %v1685_v33 = vadd.f32 %v535_v31, %v534_v32 }
 0x686   :  { %v1689_v15 = vpack.c.bf16 %v1685_v33, %v1685_v33 }
 0x688   :  { %v571_v34 = vunpack.c.l.b16 %v1689_v15 }
 0x68a   :  { %v572_v35 = vpack.c.b16 %v571_v34, %v571_v34 }
 0x68c   :  { %573 = vrot.lane.b32.xlu1 %v572_v35, %s1484_s20 }
 0x6e6   :  { %v554_v36 = vpop.permute.xlu0 %553 }
 0x6e7   :  { %1295 = vmatmul.msk.bf16.vlgmr.msrb.gmra.mxu2 %vm132_vm1, %v554_v36 }
 0x6e8   :  { %1098 = vmatpush.bf16.msrb.mxu2 %v1537_v1 }
 0x6ec   :  { %1099 = vmatpush.bf16.msrb.mxu2 %v1541_v3  ;;  %v591_v3 = vld [vmem:[%s1969_s0 + $0x6] sm:$0x3] }
 0x6fe   :  { %v574_v23 = vpop.permute.xlu1 %573 }
 0x6ff   :  { %1296 = vmatmul.msk.bf16.vlgmr.msrb.gmra.mxu3 %vm132_vm1, %v574_v23 }
 0x700   :  { %1118 = vmatpush.bf16.msrb.mxu3 %v1539_v2 }
 0x704   :  { %1119 = vmatpush.bf16.msrb.mxu3 %v1543_v4 }
 0x76a   :  { %v567_v37 = vpop.f32.mrf.mxu2 }
 0x76b   :  { %v568_v38 = vadd.f32 %v1578_v9, %v567_v37 }
 0x76d   :  { %614 = vrot.lane.b32.xlu2 %v568_v38, %s1479_s9  ;;  %v593_v42 = vadd.f32 %v591_v3, %v568_v38 }
 0x76f   :  { %v1297_v2 = vmul.f32 -1.442695, %v593_v42 }
 0x771   :  { %1364 = vpow2.f32 %v1297_v2 }
 0x772   :  { %v569_v39 = vpop.f32.mrf.mxu2 }
 0x777   :  { %v1365_v4 = vpop.eup %1364 }
 0x778   :  { %v597_v43 = vadd.f32 1.0, %v1365_v4 }
 0x77a   :  { %1366 = vrcp.f32 %v597_v43  ;;  %v609_v49 = vand.u32 2147483648, %v597_v43  ;;  %vm603_vm13 = vweird.f32 %v597_v43  ;;  %v607_v50 = vand.u32 2147483647, %v597_v43 }
 0x77c   :  { %v610_v53 = vor.u32 1.1754944e-38, %v609_v49  ;;  %vm608_vm15 = vcmp.eq.f32.partialorder %v607_v50, 8.507059e+37 }
 0x780   :  { %v1367_v44 = vpop.eup %1366 }
 0x781   :  { %v599_v45 = vmul.f32 %v1367_v44, %v597_v43  ;;  %vm604_vm12 = vweird.f32 %v1367_v44 }
 0x782   :  { %v587_v40 = vpop.f32.mrf.mxu3  ;;  %vm605_vm14 = vmor %vm603_vm13, %vm604_vm12 }
 0x783   :  { %v588_v41 = vadd.f32 %v1585_v13, %v587_v40  ;;  %v600_v46 = vsub.f32 1.0, %v599_v45 }
 0x785   :  { %653 = vrot.lane.b32.xlu0 %v588_v41, %s1479_s9  ;;  %v601_v47 = vmul.f32 %v1367_v44, %v600_v46  ;;  %v632_v54 = vadd.f32 %v592_v51, %v588_v41 }
 0x787   :  { %v602_v48 = vadd.f32 %v1367_v44, %v601_v47  ;;  %v1298_v58 = vmul.f32 -1.442695, %v632_v54  ;;  %v724_v47 = vld [vmem:[%s1969_s0 + $0x8] sm:$0x3] }
 0x789   :  { %v606_v52 = vsel %vm605_vm14, %v1367_v44, %v602_v48  ;;  %1368 = vpow2.f32 %v1298_v58 }
 0x78a   :  { %v589_v1 = vpop.f32.mrf.mxu3  ;;  %v611_v56 = vsel %vm608_vm15, %v610_v53, %v606_v52  ;;  %v725_v52 = vld [vmem:[%s1970_s1 + $0x6] sm:$0x3] }
 0x78b   :  { %v624_v29 = vsub.f32 1.0, %v611_v56  ;;  %v630_v31 = vmul.f32 %v611_v56, %v1676_v26 }
 0x78f   :  { %v1369_v59 = vpop.eup %1368 }
 0x790   :  { %v636_v60 = vadd.f32 1.0, %v1369_v59 }
 0x792   :  { %1370 = vrcp.f32 %v636_v60  ;;  %v648_v8 = vand.u32 2147483648, %v636_v60  ;;  %vm642_vm3 = vweird.f32 %v636_v60  ;;  %v646_v10 = vand.u32 2147483647, %v636_v60 }
 0x794   :  { %v649_v17 = vor.u32 1.1754944e-38, %v648_v8  ;;  %vm647_vm5 = vcmp.eq.f32.partialorder %v646_v10, 8.507059e+37 }
 0x798   :  { %v1371_v61 = vpop.eup %1370 }
 0x799   :  { %v638_v0 = vmul.f32 %v1371_v61, %v636_v60  ;;  %vm643_vm2 = vweird.f32 %v1371_v61 }
 0x79a   :  { %vm644_vm4 = vmor %vm642_vm3, %vm643_vm2 }
 0x79b   :  { %v639_v6 = vsub.f32 1.0, %v638_v0 }
 0x79d   :  { %v640_v7 = vmul.f32 %v1371_v61, %v639_v6 }
 0x79f   :  { %v641_v5 = vadd.f32 %v1371_v61, %v640_v7 }
 0x7a1   :  { %v645_v11 = vsel %vm644_vm4, %v1371_v61, %v641_v5 }
 0x7a2   :  { %v650_v19 = vsel %vm647_vm5, %v649_v17, %v645_v11 }
 0x7a3   :  { %v663_v37 = vsub.f32 1.0, %v650_v19  ;;  %v669_v39 = vmul.f32 %v650_v19, %v1685_v33 }
 0x7c7   :  { %v615_v55 = vpop.permute.xlu2 %614 }
 0x7c8   :  { %v617_v57 = vmul.f32 %v615_v55, %v611_v56 }
 0x7ca   :  { %619 = vrot.lane.b32.xlu1 %v617_v57, %s1479_s9 }
 0x7f7   :  { %v654_v18 = vpop.permute.xlu0 %653 }
 0x7f8   :  { %v656_v20 = vmul.f32 %v654_v18, %v650_v19 }
 0x7fa   :  { %658 = vrot.lane.b32.xlu2 %v656_v20, %s1479_s9 }
 0x83c   :  { %v620_v21 = vpop.permute.xlu1 %619 }
 0x83d   :  { %v622_v22 = vadd.f32 %v620_v21, %v591_v3 }
 0x83f   :  { %1372 = vtanh.f32 %v622_v22 }
 0x845   :  { %v1373_v24 = vpop.eup %1372 }
 0x846   :  { %626 = vrot.lane.b32.xlu0 %v1373_v24, %s1484_s20 }
 0x854   :  { %v659_v25 = vpop.permute.xlu2 %658 }
 0x855   :  { %v661_v27 = vadd.f32 %v659_v25, %v592_v51 }
 0x857   :  { %1374 = vtanh.f32 %v661_v27 }
 0x85d   :  { %v1375_v28 = vpop.eup %1374 }
 0x85e   :  { %665 = vrot.lane.b32.xlu1 %v1375_v28, %s1484_s20 }
 0x8b8   :  { %v627_v30 = vpop.permute.xlu0 %626 }
 0x8b9   :  { %v629_v32 = vmul.f32 %v627_v30, %v624_v29 }
 0x8bb   :  { %v1714_v34 = vadd.f32 %v630_v31, %v629_v32 }
 0x8bd   :  { %v1718_v35 = vpack.c.bf16 %v1714_v34, %v1714_v34 }
 0x8bf   :  { %v684_v36 = vunpack.c.l.b16 %v1718_v35 }
 0x8c1   :  { %v685_v23 = vpack.c.b16 %v684_v36, %v684_v36 }
 0x8c3   :  { %686 = vrot.lane.b32.xlu2 %v685_v23, %s1484_s20 }
 0x8d0   :  { %v666_v38 = vpop.permute.xlu1 %665 }
 0x8d1   :  { %v668_v40 = vmul.f32 %v666_v38, %v663_v37 }
 0x8d3   :  { %v1723_v41 = vadd.f32 %v669_v39, %v668_v40 }
 0x8d5   :  { %v1727_v26 = vpack.c.bf16 %v1723_v41, %v1723_v41 }
 0x8d7   :  { %v704_v1 = vunpack.c.l.b16 %v1727_v26 }
 0x8d9   :  { %v705_v3 = vpack.c.b16 %v704_v1, %v704_v1 }
 0x8db   :  { %706 = vrot.lane.b32.xlu0 %v705_v3, %s1484_s20 }
 0x91d   :  { %v687_v42 = vpop.permute.xlu2 %686 }
 0x91e   :  { %1299 = vmatmul.msk.bf16.vlgmr.msra.gmra.mxu0 %vm132_vm1, %v687_v42 }
 0x94d   :  { %v707_v2 = vpop.permute.xlu0 %706 }
 0x94e   :  { %1300 = vmatmul.msk.bf16.vlgmr.msra.gmra.mxu1 %vm132_vm1, %v707_v2 }
 0x99b   :  { %v700_v4 = vpop.f32.mrf.mxu0 }
 0x99c   :  { %v701_v33 = vadd.f32 %v1578_v9, %v700_v4 }
 0x99e   :  { %747 = vrot.lane.b32.xlu1 %v701_v33, %s1479_s9  ;;  %v726_v48 = vadd.f32 %v724_v47, %v701_v33 }
 0x9a0   :  { %v1301_v49 = vmul.f32 -1.442695, %v726_v48 }
 0x9a2   :  { %1376 = vpow2.f32 %v1301_v49 }
 0x9a3   :  { %v702_v43 = vpop.f32.mrf.mxu0 }
 0x9a8   :  { %v1377_v50 = vpop.eup %1376 }
 0x9a9   :  { %v730_v51 = vadd.f32 1.0, %v1377_v50 }
 0x9ab   :  { %1378 = vrcp.f32 %v730_v51  ;;  %v742_v0 = vand.u32 2147483648, %v730_v51  ;;  %vm736_vm7 = vweird.f32 %v730_v51  ;;  %v740_v6 = vand.u32 2147483647, %v730_v51 }
 0x9ad   :  { %v743_v5 = vor.u32 1.1754944e-38, %v742_v0  ;;  %vm741_vm9 = vcmp.eq.f32.partialorder %v740_v6, 8.507059e+37 }
 0x9b1   :  { %v1379_v54 = vpop.eup %1378 }
 0x9b2   :  { %v732_v56 = vmul.f32 %v1379_v54, %v730_v51  ;;  %vm737_vm6 = vweird.f32 %v1379_v54 }
 0x9b3   :  { %vm738_vm8 = vmor %vm736_vm7, %vm737_vm6 }
 0x9b4   :  { %v733_v57 = vsub.f32 1.0, %v732_v56 }
 0x9b6   :  { %v734_v59 = vmul.f32 %v1379_v54, %v733_v57  ;;  %v857_v57 = vld [vmem:[%s1969_s0 + $0xa] sm:$0x3] }
 0x9b8   :  { %v735_v61 = vadd.f32 %v1379_v54, %v734_v59 }
 0x9ba   :  { %v739_v7 = vsel %vm738_vm8, %v1379_v54, %v735_v61 }
 0x9bb   :  { %v744_v8 = vsel %vm741_vm9, %v743_v5, %v739_v7 }
 0x9bc   :  { %v757_v39 = vsub.f32 1.0, %v744_v8  ;;  %v763_v1 = vmul.f32 %v744_v8, %v1714_v34 }
 0x9cb   :  { %v720_v44 = vpop.f32.mrf.mxu1 }
 0x9cc   :  { %v721_v45 = vadd.f32 %v1585_v13, %v720_v44 }
 0x9ce   :  { %786 = vrot.lane.b32.xlu2 %v721_v45, %s1479_s9  ;;  %v765_v53 = vadd.f32 %v725_v52, %v721_v45 }
 0x9d0   :  { %v1302_v55 = vmul.f32 -1.442695, %v765_v53 }
 0x9d2   :  { %1380 = vpow2.f32 %v1302_v55 }
 0x9d3   :  { %v722_v46 = vpop.f32.mrf.mxu1 }
 0x9d8   :  { %v1381_v58 = vpop.eup %1380 }
 0x9d9   :  { %v769_v60 = vadd.f32 1.0, %v1381_v58 }
 0x9db   :  { %1382 = vrcp.f32 %v769_v60  ;;  %v781_v22 = vand.u32 2147483648, %v769_v60  ;;  %vm775_vm11 = vweird.f32 %v769_v60  ;;  %v779_v24 = vand.u32 2147483647, %v769_v60 }
 0x9dd   :  { %v782_v27 = vor.u32 1.1754944e-38, %v781_v22  ;;  %vm780_vm13 = vcmp.eq.f32.partialorder %v779_v24, 8.507059e+37 }
 0x9e1   :  { %v1383_v17 = vpop.eup %1382 }
 0x9e2   :  { %v771_v18 = vmul.f32 %v1383_v17, %v769_v60  ;;  %vm776_vm10 = vweird.f32 %v1383_v17 }
 0x9e3   :  { %vm777_vm12 = vmor %vm775_vm11, %vm776_vm10 }
 0x9e4   :  { %v772_v19 = vsub.f32 1.0, %v771_v18 }
 0x9e6   :  { %v773_v20 = vmul.f32 %v1383_v17, %v772_v19 }
 0x9e8   :  { %v774_v21 = vadd.f32 %v1383_v17, %v773_v20 }
 0x9ea   :  { %v778_v25 = vsel %vm777_vm12, %v1383_v17, %v774_v21 }
 0x9eb   :  { %v783_v29 = vsel %vm780_vm13, %v782_v27, %v778_v25 }
 0x9ec   :  { %v796_v43 = vsub.f32 1.0, %v783_v29  ;;  %v802_v45 = vmul.f32 %v783_v29, %v1723_v41 }
 0xa10   :  { %v748_v10 = vpop.permute.xlu1 %747 }
 0xa11   :  { %v750_v11 = vmul.f32 %v748_v10, %v744_v8 }
 0xa13   :  { %752 = vrot.lane.b32.xlu0 %v750_v11, %s1479_s9 }
 0xa28   :  { %v787_v28 = vpop.permute.xlu2 %786 }
 0xa29   :  { %v789_v30 = vmul.f32 %v787_v28, %v783_v29 }
 0xa2b   :  { %791 = vrot.lane.b32.xlu1 %v789_v30, %s1479_s9 }
 0xa85   :  { %v753_v31 = vpop.permute.xlu0 %752 }
 0xa86   :  { %v755_v32 = vadd.f32 %v753_v31, %v724_v47 }
 0xa88   :  { %1384 = vtanh.f32 %v755_v32 }
 0xa8e   :  { %v1385_v36 = vpop.eup %1384 }
 0xa8f   :  { %759 = vrot.lane.b32.xlu2 %v1385_v36, %s1484_s20 }
 0xa9d   :  { %v792_v23 = vpop.permute.xlu1 %791 }
 0xa9e   :  { %v794_v37 = vadd.f32 %v792_v23, %v725_v52 }
 0xaa0   :  { %1386 = vtanh.f32 %v794_v37 }
 0xaa6   :  { %v1387_v38 = vpop.eup %1386 }
 0xaa7   :  { %798 = vrot.lane.b32.xlu0 %v1387_v38, %s1484_s20 }
 0xae9   :  { %v760_v40 = vpop.permute.xlu2 %759 }
 0xaea   :  { %v762_v3 = vmul.f32 %v760_v40, %v757_v39 }
 0xaec   :  { %v1748_v42 = vadd.f32 %v763_v1, %v762_v3 }
 0xaee   :  { %v1752_v2 = vpack.c.bf16 %v1748_v42, %v1748_v42 }
 0xaf0   :  { %v817_v4 = vunpack.c.l.b16 %v1752_v2 }
 0xaf2   :  { %v818_v33 = vpack.c.b16 %v817_v4, %v817_v4 }
 0xaf4   :  { %819 = vrot.lane.b32.xlu1 %v818_v33, %s1484_s20 }
 0xb19   :  { %v799_v44 = vpop.permute.xlu0 %798 }
 0xb1a   :  { %v801_v46 = vmul.f32 %v799_v44, %v796_v43 }
 0xb1c   :  { %v1757_v47 = vadd.f32 %v802_v45, %v801_v46 }
 0xb1e   :  { %v1761_v34 = vpack.c.bf16 %v1757_v47, %v1757_v47 }
 0xb20   :  { %v837_v48 = vunpack.c.l.b16 %v1761_v34 }
 0xb22   :  { %v838_v49 = vpack.c.b16 %v837_v48, %v837_v48 }
 0xb24   :  { %839 = vrot.lane.b32.xlu2 %v838_v49, %s1484_s20 }
 0xb66   :  { %v820_v50 = vpop.permute.xlu1 %819 }
 0xb67   :  { %1303 = vmatmul.msk.bf16.vlgmr.msra.gmra.mxu2 %vm132_vm1, %v820_v50 }
 0xb7e   :  { %v840_v51 = vpop.permute.xlu2 %839 }
 0xb7f   :  { %1304 = vmatmul.msk.bf16.vlgmr.msra.gmra.mxu3 %vm132_vm1, %v840_v51 }
 0xbea   :  { %v833_v52 = vpop.f32.mrf.mxu2 }
 0xbeb   :  { %v834_v41 = vadd.f32 %v1578_v9, %v833_v52  ;;  %v858_v9 = vld [vmem:[%s1970_s1 + $0x4] sm:$0x3] }
 0xbed   :  { %880 = vrot.lane.b32.xlu0 %v834_v41, %s1479_s9  ;;  %v859_v58 = vadd.f32 %v857_v57, %v834_v41 }
 0xbef   :  { %v1305_v59 = vmul.f32 -1.442695, %v859_v58 }
 0xbf1   :  { %1388 = vpow2.f32 %v1305_v59 }
 0xbf2   :  { %v835_v53 = vpop.f32.mrf.mxu2 }
 0xbf7   :  { %v1389_v60 = vpop.eup %1388 }
 0xbf8   :  { %v863_v61 = vadd.f32 1.0, %v1389_v60 }
 0xbfa   :  { %1390 = vrcp.f32 %v863_v61  ;;  %v875_v18 = vand.u32 2147483648, %v863_v61  ;;  %vm869_vm15 = vweird.f32 %v863_v61  ;;  %v873_v19 = vand.u32 2147483647, %v863_v61 }
 0xbfc   :  { %v876_v21 = vor.u32 1.1754944e-38, %v875_v18  ;;  %vm874_vm3 = vcmp.eq.f32.partialorder %v873_v19, 8.507059e+37 }
 0xc00   :  { %v1391_v6 = vpop.eup %1390 }
 0xc01   :  { %v865_v7 = vmul.f32 %v1391_v6, %v863_v61  ;;  %vm870_vm14 = vweird.f32 %v1391_v6 }
 0xc02   :  { %v853_v54 = vpop.f32.mrf.mxu3  ;;  %vm871_vm2 = vmor %vm869_vm15, %vm870_vm14 }
 0xc03   :  { %v854_v55 = vadd.f32 %v1585_v13, %v853_v54  ;;  %v866_v5 = vsub.f32 1.0, %v865_v7  ;;  %v1811_v7 = vld [vmem:[%s1974_s5] ss:$0 sm:$0xff] }
 0xc05   :  { %919 = vrot.lane.b32.xlu1 %v854_v55, %s1479_s9  ;;  %v898_v0 = vadd.f32 %v858_v9, %v854_v55  ;;  %v867_v10 = vmul.f32 %v1391_v6, %v866_v5 }
 0xc07   :  { %v1306_v13 = vmul.f32 -1.442695, %v898_v0  ;;  %v868_v17 = vadd.f32 %v1391_v6, %v867_v10  ;;  %v991_v10 = vld [vmem:[%s1969_s0 + $0xc] sm:$0x3] }
 0xc09   :  { %1392 = vpow2.f32 %v1306_v13  ;;  %v872_v20 = vsel %vm871_vm2, %v1391_v6, %v868_v17 }
 0xc0a   :  { %v855_v56 = vpop.f32.mrf.mxu3  ;;  %v877_v24 = vsel %vm874_vm3, %v876_v21, %v872_v20 }
 0xc0b   :  { %v890_v45 = vsub.f32 1.0, %v877_v24  ;;  %v896_v48 = vmul.f32 %v877_v24, %v1748_v42 }
 0xc0f   :  { %v1393_v8 = vpop.eup %1392 }
 0xc10   :  { %v902_v11 = vadd.f32 1.0, %v1393_v8 }
 0xc12   :  { %1394 = vrcp.f32 %v902_v11  ;;  %v914_v32 = vand.u32 2147483648, %v902_v11  ;;  %vm908_vm5 = vweird.f32 %v902_v11  ;;  %v912_v36 = vand.u32 2147483647, %v902_v11 }
 0xc14   :  { %v915_v37 = vor.u32 1.1754944e-38, %v914_v32  ;;  %vm913_vm7 = vcmp.eq.f32.partialorder %v912_v36, 8.507059e+37 }
 0xc18   :  { %v1395_v27 = vpop.eup %1394 }
 0xc19   :  { %v904_v28 = vmul.f32 %v1395_v27, %v902_v11  ;;  %vm909_vm4 = vweird.f32 %v1395_v27 }
 0xc1a   :  { %vm910_vm6 = vmor %vm908_vm5, %vm909_vm4 }
 0xc1b   :  { %v905_v29 = vsub.f32 1.0, %v904_v28 }
 0xc1d   :  { %v906_v30 = vmul.f32 %v1395_v27, %v905_v29  ;;  %v992_v29 = vld [vmem:[%s1970_s1 + $0x2] sm:$0x3] }
 0xc1f   :  { %v907_v31 = vadd.f32 %v1395_v27, %v906_v30 }
 0xc21   :  { %v911_v23 = vsel %vm910_vm6, %v1395_v27, %v907_v31 }
 0xc22   :  { %v916_v38 = vsel %vm913_vm7, %v915_v37, %v911_v23 }
 0xc23   :  { %v929_v53 = vsub.f32 1.0, %v916_v38  ;;  %v935_v55 = vmul.f32 %v916_v38, %v1757_v47  ;;  %v1804_v47 = vld [vmem:[%s1973_s4] ss:$0 sm:$0xff] }
 0xc5f   :  { %v881_v22 = vpop.permute.xlu0 %880 }
 0xc60   :  { %v883_v25 = vmul.f32 %v881_v22, %v877_v24 }
 0xc62   :  { %885 = vrot.lane.b32.xlu2 %v883_v25, %s1479_s9 }
 0xc77   :  { %v920_v39 = vpop.permute.xlu1 %919 }
 0xc78   :  { %v922_v40 = vmul.f32 %v920_v39, %v916_v38 }
 0xc7a   :  { %924 = vrot.lane.b32.xlu0 %v922_v40, %s1479_s9 }
 0xcbc   :  { %v886_v1 = vpop.permute.xlu2 %885 }
 0xcbd   :  { %v888_v3 = vadd.f32 %v886_v1, %v857_v57 }
 0xcbf   :  { %1396 = vtanh.f32 %v888_v3 }
 0xcc5   :  { %v1397_v4 = vpop.eup %1396 }
 0xcc6   :  { %892 = vrot.lane.b32.xlu1 %v1397_v4, %s1484_s20 }
 0xcec   :  { %v925_v33 = vpop.permute.xlu0 %924 }
 0xced   :  { %v927_v43 = vadd.f32 %v925_v33, %v858_v9 }
 0xcef   :  { %1398 = vtanh.f32 %v927_v43 }
 0xcf5   :  { %v1399_v44 = vpop.eup %1398 }
 0xcf6   :  { %931 = vrot.lane.b32.xlu2 %v1399_v44, %s1484_s20 }
 0xd38   :  { %v893_v46 = vpop.permute.xlu1 %892 }
 0xd39   :  { %v895_v49 = vmul.f32 %v893_v46, %v890_v45 }
 0xd3b   :  { %v1782_v50 = vadd.f32 %v896_v48, %v895_v49 }
 0xd3d   :  { %v1786_v51 = vpack.c.bf16 %v1782_v50, %v1782_v50 }
 0xd3f   :  { %v951_v52 = vunpack.c.l.b16 %v1786_v51 }
 0xd41   :  { %v952_v41 = vpack.c.b16 %v951_v52, %v951_v52 }
 0xd43   :  { %953 = vrot.lane.b32.xlu0 %v952_v41, %s1484_s20 }
 0xd50   :  { %v932_v54 = vpop.permute.xlu2 %931 }
 0xd51   :  { %v934_v56 = vmul.f32 %v932_v54, %v929_v53 }
 0xd53   :  { %v1791_v57 = vadd.f32 %v935_v55, %v934_v56 }
 0xd55   :  { %v1795_v42 = vpack.c.bf16 %v1791_v57, %v1791_v57 }
 0xd57   :  { %v971_v58 = vunpack.c.l.b16 %v1795_v42 }
 0xd59   :  { %v972_v59 = vpack.c.b16 %v971_v58, %v971_v58 }
 0xd5b   :  { %973 = vrot.lane.b32.xlu1 %v972_v59, %s1484_s20 }
 0xdb5   :  { %v954_v60 = vpop.permute.xlu0 %953 }
 0xdb6   :  { %1307 = vmatmul.msk.bf16.vlgmr.msrb.gmra.mxu0 %vm132_vm1, %v954_v60 }
 0xdcd   :  { %v974_v61 = vpop.permute.xlu1 %973 }
 0xdce   :  { %1308 = vmatmul.msk.bf16.vlgmr.msrb.gmra.mxu1 %vm132_vm1, %v974_v61 }
 0xe33   :  { %v967_v9 = vpop.f32.mrf.mxu0 }
 0xe34   :  { %v968_v0 = vadd.f32 %v1804_v47, %v967_v9 }
 0xe36   :  { %1014 = vrot.lane.b32.xlu2 %v968_v0, %s1479_s9  ;;  %v993_v11 = vadd.f32 %v991_v10, %v968_v0 }
 0xe38   :  { %v1309_v17 = vmul.f32 -1.442695, %v993_v11 }
 0xe3a   :  { %1400 = vpow2.f32 %v1309_v17 }
 0xe3b   :  { %v969_v6 = vpop.f32.mrf.mxu0 }
 0xe40   :  { %v1401_v18 = vpop.eup %1400 }
 0xe41   :  { %v997_v19 = vadd.f32 1.0, %v1401_v18 }
 0xe43   :  { %1402 = vrcp.f32 %v997_v19  ;;  %v1009_v27 = vand.u32 2147483648, %v997_v19  ;;  %vm1003_vm9 = vweird.f32 %v997_v19  ;;  %v1007_v28 = vand.u32 2147483647, %v997_v19 }
 0xe45   :  { %v1010_v31 = vor.u32 1.1754944e-38, %v1009_v27  ;;  %vm1008_vm11 = vcmp.eq.f32.partialorder %v1007_v28, 8.507059e+37 }
 0xe49   :  { %v1403_v20 = vpop.eup %1402 }
 0xe4a   :  { %v999_v21 = vmul.f32 %v1403_v20, %v997_v19  ;;  %vm1004_vm8 = vweird.f32 %v1403_v20 }
 0xe4b   :  { %v987_v13 = vpop.f32.mrf.mxu1  ;;  %vm1005_vm10 = vmor %vm1003_vm9, %vm1004_vm8  ;;  %vm271_vm9 = vcmask 253952  }
 0xe4c   :  { %v988_v5 = vadd.f32 %v1811_v7, %v987_v13  ;;  %v1000_v22 = vsub.f32 1.0, %v999_v21 }
 0xe4e   :  { %1053 = vrot.lane.b32.xlu0 %v988_v5, %s1479_s9  ;;  %v1001_v24 = vmul.f32 %v1403_v20, %v1000_v22  ;;  %v1032_v32 = vadd.f32 %v992_v29, %v988_v5 }
 0xe50   :  { %v1002_v25 = vadd.f32 %v1403_v20, %v1001_v24  ;;  %v1310_v38 = vmul.f32 -1.442695, %v1032_v32 }
 0xe52   :  { %v1006_v30 = vsel %vm1005_vm10, %v1403_v20, %v1002_v25  ;;  %1404 = vpow2.f32 %v1310_v38  ;;  %vm415_vm10 = vcmask 256002  }
 0xe53   :  { %v989_v8 = vpop.f32.mrf.mxu1  ;;  %v1011_v23 = vsel %vm1008_vm11, %v1010_v31, %v1006_v30  ;;  %v1125_v31 = vld [vmem:[%s1969_s0 + $0xe] sm:$0x3]  ;;  %vm279_vm11 = vcmask 257027  }
 0xe54   :  { %v1024_v60 = vsub.f32 1.0, %v1011_v23  ;;  %v1030_v9 = vmul.f32 %v1011_v23, %v1782_v50 }
 0xe58   :  { %v1405_v39 = vpop.eup %1404 }
 0xe59   :  { %v1036_v40 = vadd.f32 1.0, %v1405_v39 }
 0xe5b   :  { %1406 = vrcp.f32 %v1036_v40  ;;  %v1048_v44 = vand.u32 2147483648, %v1036_v40  ;;  %vm1042_vm13 = vweird.f32 %v1036_v40  ;;  %v1046_v45 = vand.u32 2147483647, %v1036_v40 }
 0xe5d   :  { %v1049_v48 = vor.u32 1.1754944e-38, %v1048_v44  ;;  %vm1047_vm15 = vcmp.eq.f32.partialorder %v1046_v45, 8.507059e+37 }
 0xe61   :  { %v1407_v1 = vpop.eup %1406 }
 0xe62   :  { %v1038_v3 = vmul.f32 %v1407_v1, %v1036_v40  ;;  %vm1043_vm12 = vweird.f32 %v1407_v1 }
 0xe63   :  { %vm1044_vm14 = vmor %vm1042_vm13, %vm1043_vm12  ;;  %vm407_vm12 = vcmask 254977  }
 0xe64   :  { %v1039_v4 = vsub.f32 1.0, %v1038_v3 }
 0xe66   :  { %v1040_v33 = vmul.f32 %v1407_v1, %v1039_v4 }
 0xe68   :  { %v1041_v43 = vadd.f32 %v1407_v1, %v1040_v33 }
 0xe6a   :  { %v1045_v46 = vsel %vm1044_vm14, %v1407_v1, %v1041_v43 }
 0xe6b   :  { %v1050_v52 = vsel %vm1047_vm15, %v1049_v48, %v1045_v46 }
 0xe6c   :  { %v1069_v17 = vmul.f32 %v1050_v52, %v1791_v57 }
 0xe90   :  { %v1015_v36 = vpop.permute.xlu2 %1014 }
 0xe91   :  { %v1017_v37 = vmul.f32 %v1015_v36, %v1011_v23 }
 0xe93   :  { %1019 = vrot.lane.b32.xlu1 %v1017_v37, %s1479_s9 }
 0xec0   :  { %v1054_v49 = vpop.permute.xlu0 %1053 }
 0xec1   :  { %v1056_v41 = vmul.f32 %v1054_v49, %v1050_v52 }
 0xec3   :  { %1058 = vrot.lane.b32.xlu2 %v1056_v41, %s1479_s9 }
 0xf05   :  { %v1020_v53 = vpop.permute.xlu1 %1019 }
 0xf06   :  { %v1022_v54 = vadd.f32 %v1020_v53, %v991_v10  ;;  %v1063_v10 = vsub.f32 1.0, %v1050_v52 }
 0xf08   :  { %1408 = vtanh.f32 %v1022_v54 }
 0xf0e   :  { %v1409_v55 = vpop.eup %1408 }
 0xf0f   :  { %1026 = vrot.lane.b32.xlu0 %v1409_v55, %s1484_s20 }
 0xf1d   :  { %v1059_v56 = vpop.permute.xlu2 %1058 }
 0xf1e   :  { %v1061_v58 = vadd.f32 %v1059_v56, %v992_v29 }
 0xf20   :  { %1410 = vtanh.f32 %v1061_v58 }
 0xf26   :  { %v1411_v59 = vpop.eup %1410 }
 0xf27   :  { %1065 = vrot.lane.b32.xlu1 %v1411_v59, %s1484_s20 }
 0xf81   :  { %v1027_v61 = vpop.permute.xlu0 %1026 }
 0xf82   :  { %v1029_v0 = vmul.f32 %v1027_v61, %v1024_v60 }
 0xf84   :  { %v1826_v6 = vadd.f32 %v1030_v9, %v1029_v0 }
 0xf86   :  { %v1830_v13 = vpack.c.bf16 %v1826_v6, %v1826_v6 }
 0xf88   :  { %v1085_v5 = vunpack.c.l.b16 %v1830_v13 }
 0xf8a   :  { %v1086_v8 = vpack.c.b16 %v1085_v5, %v1085_v5 }
 0xf8c   :  { %1087 = vrot.lane.b32.xlu2 %v1086_v8, %s1484_s20 }
 0xf99   :  { %v1066_v11 = vpop.permute.xlu1 %1065 }
 0xf9a   :  { %v1068_v18 = vmul.f32 %v1066_v11, %v1063_v10  ;;  %v411_v10 = vrot.slane %v1651_v62, 6  ;;  %v673_v11 = vrot.slane %v1718_v35, 5  ;;  %v275_v62 = vrot.slane %v1613_v14, 5 }
 0xf9c   :  { %v1835_v19 = vadd.f32 %v1069_v17, %v1068_v18  ;;  %v812_v17 = vrot.slane %v1761_v34, 5  ;;  %v1073_v18 = vrot.slane %v1830_v13, 6 }
 0xf9e   :  { %v1839_v50 = vpack.c.bf16 %v1835_v19, %v1835_v19 }
 0xfa0   :  { %v1105_v20 = vunpack.c.l.b16 %v1839_v50 }
 0xfa2   :  { %v1106_v21 = vpack.c.b16 %v1105_v20, %v1105_v20 }
 0xfa4   :  { %1107 = vrot.lane.b32.xlu0 %v1106_v21, %s1484_s20 }
 0xfe6   :  { %v1088_v22 = vpop.permute.xlu2 %1087 }
 0xfe7   :  { %1311 = vmatmul.msk.bf16.vlgmr.msrb.gmra.mxu2 %vm132_vm1, %v1088_v22  ;;  %v539_v22 = vrot.slane %v1680_v12, 6  ;;  %v939_v12 = vrot.slane %v1786_v51, 7 }
0x1016   :  { %v1108_v24 = vpop.permute.xlu0 %1107 }
0x1017   :  { %1312 = vmatmul.msk.bf16.vlgmr.msrb.gmra.mxu3 %vm132_vm1, %v1108_v24 }
0x106a   :  { %v1101_v25 = vpop.f32.mrf.mxu2 }
0x106b   :  { %v1102_v57 = vadd.f32 %v1804_v47, %v1101_v25  ;;  %v1126_v47 = vld [vmem:[%s1970_s1] sm:$0x3]  ;;  %v403_v25 = vrot.slane %v1642_v16, 7 }
0x106d   :  { %1148 = vrot.lane.b32.xlu1 %v1102_v57, %s1479_s9  ;;  %v1127_v32 = vadd.f32 %v1125_v31, %v1102_v57 }
0x106f   :  { %v1313_v36 = vmul.f32 -1.442695, %v1127_v32 }
0x1071   :  { %1412 = vpow2.f32 %v1313_v36 }
0x1072   :  { %v1103_v27 = vpop.f32.mrf.mxu2 }
0x1073   :  { %v546_v27 = vrot.slane %v1689_v15, 7  ;;  %v946_v15 = vrot.slane %v1795_v42, 6 }
0x1077   :  { %v1413_v23 = vpop.eup %1412 }
0x1078   :  { %v1131_v37 = vadd.f32 1.0, %v1413_v23 }
0x107a   :  { %1414 = vrcp.f32 %v1131_v37  ;;  %v1143_v44 = vand.u32 2147483648, %v1131_v37  ;;  %vm1137_vm2 = vweird.f32 %v1131_v37  ;;  %v1141_v45 = vand.u32 2147483647, %v1131_v37 }
0x107c   :  { %v1144_v48 = vor.u32 1.1754944e-38, %v1143_v44  ;;  %vm1142_vm4 = vcmp.eq.f32.partialorder %v1141_v45, 8.507059e+37 }
0x1080   :  { %v1415_v39 = vpop.eup %1414 }
0x1081   :  { %v1133_v40 = vmul.f32 %v1415_v39, %v1131_v37  ;;  %vm1138_vm1 = vweird.f32 %v1415_v39 }
0x1082   :  { %vm1139_vm3 = vmor %vm1137_vm2, %vm1138_vm1 }
0x1083   :  { %v1134_v1 = vsub.f32 1.0, %v1133_v40 }
0x1085   :  { %v1135_v4 = vmul.f32 %v1415_v39, %v1134_v1 }
0x1087   :  { %v1136_v43 = vadd.f32 %v1415_v39, %v1135_v4 }
0x1089   :  { %v1140_v46 = vsel %vm1139_vm3, %v1415_v39, %v1136_v43 }
0x108a   :  { %v1855_v49 = vsel %vm1142_vm4, %v1144_v48, %v1140_v46 }
0x109a   :  { %v1121_v28 = vpop.f32.mrf.mxu3 }
0x109b   :  { %v1122_v29 = vadd.f32 %v1811_v7, %v1121_v28 }
0x109d   :  { %1187 = vrot.lane.b32.xlu2 %v1122_v29, %s1479_s9  ;;  %v1166_v38 = vadd.f32 %v1126_v47, %v1122_v29  ;;  %v1164_v29 = vmul.f32 %v1855_v49, %v1826_v6 }
0x109f   :  { %v1314_v7 = vmul.f32 -1.442695, %v1166_v38 }
0x10a1   :  { %1416 = vpow2.f32 %v1314_v7 }
0x10a2   :  { %v1123_v30 = vpop.f32.mrf.mxu3 }
0x10a7   :  { %v1417_v3 = vpop.eup %1416 }
0x10a8   :  { %v1170_v33 = vadd.f32 1.0, %v1417_v3 }
0x10aa   :  { %1418 = vrcp.f32 %v1170_v33  ;;  %v1182_v59 = vand.u32 2147483648, %v1170_v33  ;;  %vm1176_vm6 = vweird.f32 %v1170_v33  ;;  %v1180_v60 = vand.u32 2147483647, %v1170_v33 }
0x10ac   :  { %v1183_v9 = vor.u32 1.1754944e-38, %v1182_v59  ;;  %vm1181_vm8 = vcmp.eq.f32.partialorder %v1180_v60, 8.507059e+37 }
0x10b0   :  { %v1419_v53 = vpop.eup %1418 }
0x10b1   :  { %v1172_v54 = vmul.f32 %v1419_v53, %v1170_v33  ;;  %vm1177_vm5 = vweird.f32 %v1419_v53 }
0x10b2   :  { %vm1178_vm7 = vmor %vm1176_vm6, %vm1177_vm5 }
0x10b3   :  { %v1173_v55 = vsub.f32 1.0, %v1172_v54 }
0x10b5   :  { %v1174_v56 = vmul.f32 %v1419_v53, %v1173_v55 }
0x10b7   :  { %v1175_v58 = vadd.f32 %v1419_v53, %v1174_v56 }
0x10b9   :  { %v1179_v61 = vsel %vm1178_vm7, %v1419_v53, %v1175_v58 }
0x10ba   :  { %v1859_v5 = vsel %vm1181_vm8, %v1183_v9, %v1179_v61 }
0x10bb   :  { %v1203_v39 = vmul.f32 %v1859_v5, %v1835_v19 }
0x10df   :  { %v1149_v52 = vpop.permute.xlu1 %1148 }
0x10e0   :  { %v1151_v41 = vmul.f32 %v1149_v52, %v1855_v49 }
0x10e2   :  { %1153 = vrot.lane.b32.xlu0 %v1151_v41, %s1479_s9 }
0x10f7   :  { %v1188_v0 = vpop.permute.xlu2 %1187 }
0x10f8   :  { %v1190_v8 = vmul.f32 %v1188_v0, %v1859_v5 }
0x10fa   :  { %1192 = vrot.lane.b32.xlu1 %v1190_v8, %s1479_s9 }
0x1102   :  { %268 = vrot.lane.b32.xlu1 %v1605_v63, %s1484_s20 }
0x110a   :  { %412 = vrot.lane.b32.xlu1 %v411_v10, %s1484_s20 }
0x1112   :  { %674 = vrot.lane.b32.xlu1 %v673_v11, %s1484_s20 }
0x111a   :  { %813 = vrot.lane.b32.xlu1 %v812_v17, %s1484_s20 }
0x1122   :  { %1074 = vrot.lane.b32.xlu1 %v1073_v18, %s1484_s20 }
0x1154   :  { %v1154_v20 = vpop.permute.xlu0 %1153 }
0x1155   :  { %v1156_v21 = vadd.f32 %v1154_v20, %v1125_v31 }
0x1157   :  { %1420 = vtanh.f32 %v1156_v21 }
0x115d   :  { %v1421_v63 = vpop.eup %1420 }
0x115e   :  { %1160 = vrot.lane.b32.xlu2 %v1421_v63, %s1484_s20 }
0x1166   :  { %276 = vrot.lane.b32.xlu2 %v275_v62, %s1484_s20 }
0x116c   :  { %v1193_v35 = vpop.permute.xlu1 %1192 }
0x116d   :  { %v1195_v34 = vadd.f32 %v1193_v35, %v1126_v47  ;;  %v1197_v47 = vsub.f32 1.0, %v1859_v5 }
0x116e   :  { %540 = vrot.lane.b32.xlu2 %v539_v22, %s1484_s20 }
0x116f   :  { %1422 = vtanh.f32 %v1195_v34 }
0x1174   :  { %v269_v13 = vpop.permute.xlu1 %268 }
0x1175   :  { %v1423_v24 = vpop.eup %1422  ;;  %272 = vst.msk [vmem:[%s1975_s6] sm:$0x1] %vm271_vm9, %v269_v13 }
0x1176   :  { %680 = vrot.lane.b32.xlu2 %v1727_v26, %s1484_s20  ;;  %1199 = vrot.lane.b32.xlu0 %v1423_v24, %s1484_s20  ;;  %v1080_v26 = vrot.slane %v1839_v50, 7  ;;  %v1158_v50 = vsub.f32 1.0, %v1855_v49 }
0x117c   :  { %v413_v14 = vpop.permute.xlu1 %412 }
0x117d   :  { %416 = vst.msk [vmem:[%s1976_s7 + $0x4] sm:$0x4] %vm415_vm10, %v413_v14 }
0x117e   :  { %940 = vrot.lane.b32.xlu2 %v939_v12, %s1484_s20  ;;  %404 = vrot.lane.b32.xlu0 %v403_v25, %s1484_s20 }
0x1184   :  { %v675_v57 = vpop.permute.xlu1 %674 }
0x1185   :  { %677 = vst.msk [vmem:[%s1975_s6] sm:$0x8] %vm279_vm11, %v675_v57 }
0x1186   :  { %1081 = vrot.lane.b32.xlu2 %v1080_v26, %s1484_s20  ;;  %547 = vrot.lane.b32.xlu0 %v546_v27, %s1484_s20 }
0x118c   :  { %v814_v16 = vpop.permute.xlu1 %813 }
0x118d   :  { %816 = vst.msk [vmem:[%s1976_s7] sm:$0x8] %vm279_vm11, %v814_v16 }
0x118e   :  { %806 = vrot.lane.b32.xlu0 %v1752_v2, %s1484_s20 }
0x1194   :  { %v1075_v51 = vpop.permute.xlu1 %1074 }
0x1195   :  { %1077 = vst.msk [vmem:[%s1975_s6 + $0x4] sm:$0x4] %vm415_vm10, %v1075_v51 }
0x1196   :  { %947 = vrot.lane.b32.xlu0 %v946_v15, %s1484_s20 }
0x11b8   :  { %v1161_v28 = vpop.permute.xlu2 %1160 }
0x11b9   :  { %v1163_v30 = vmul.f32 %v1161_v28, %v1158_v50 }
0x11bb   :  { %v1165_v31 = vadd.f32 %v1164_v29, %v1163_v30 }
0x11bd   :  { %1219 = vrot.lane.b32.xlu2 %v1165_v31, %s1484_s20  ;;  %v1205_v2 = vpack.c.bf16 %v1165_v31, %v1165_v31 }
0x11bf   :  { %v1207_v32 = vrot.slane %v1205_v2, 5 }
0x11c0   :  { %v277_v42 = vpop.permute.xlu2 %276 }
0x11c1   :  { %280 = vst.msk [vmem:[%s1976_s7 + $0x4] sm:$0x8] %vm279_vm11, %v277_v42  ;;  %1208 = vrot.lane.b32.xlu0 %v1207_v32, %s1484_s20 }
0x11c8   :  { %v541_v36 = vpop.permute.xlu2 %540 }
0x11c9   :  { %543 = vst.msk [vmem:[%s1975_s6] sm:$0x4] %vm415_vm10, %v541_v36 }
0x11d0   :  { %v681_v6 = vpop.permute.xlu2 %680 }
0x11d1   :  { %683 = vst.msk [vmem:[%s1976_s7 + $0x4] sm:$0x1] %vm271_vm9, %v681_v6 }
0x11d8   :  { %v941_v23 = vpop.permute.xlu2 %940 }
0x11d9   :  { %943 = vst.msk [vmem:[%s1975_s6 + $0x4] sm:$0x2] %vm407_vm12, %v941_v23 }
0x11e0   :  { %v1082_v37 = vpop.permute.xlu2 %1081 }
0x11e1   :  { %1084 = vst.msk [vmem:[%s1976_s7] sm:$0x2] %vm407_vm12, %v1082_v37 }
0x11e8   :  { %v1200_v38 = vpop.permute.xlu0 %1199 }
0x11e9   :  { %v1202_v7 = vmul.f32 %v1200_v38, %v1197_v47 }
0x11eb   :  { %v1204_v40 = vadd.f32 %v1203_v39, %v1202_v7 }
0x11ed   :  { %1225 = vrot.lane.b32.xlu0 %v1204_v40, %s1484_s20  ;;  %v1212_v1 = vpack.c.bf16 %v1204_v40, %v1204_v40 }
0x11ef   :  { %1214 = vrot.lane.b32.xlu1 %v1212_v1, %s1484_s20 }
0x11f0   :  { %v405_v3 = vpop.permute.xlu0 %404 }
0x11f1   :  { %408 = vst.msk [vmem:[%s1975_s6] sm:$0x2] %vm407_vm12, %v405_v3 }
0x11f8   :  { %v548_v4 = vpop.permute.xlu0 %547 }
0x11f9   :  { %550 = vst.msk [vmem:[%s1976_s7 + $0x4] sm:$0x2] %vm407_vm12, %v548_v4 }
0x1200   :  { %v807_v19 = vpop.permute.xlu0 %806 }
0x1201   :  { %809 = vst.msk [vmem:[%s1975_s6 + $0x4] sm:$0x1] %vm271_vm9, %v807_v19 }
0x1208   :  { %v948_v33 = vpop.permute.xlu0 %947 }
0x1209   :  { %950 = vst.msk [vmem:[%s1976_s7] sm:$0x4] %vm415_vm10, %v948_v33 }
0x1217   :  { %v1220_v43 = vpop.permute.xlu2 %1219 }
0x1218   :  { %1223 = vst.msk [vmem:[#allocation2] sm:$0x3] %vm98_vm0, %v1220_v43 }
0x1233   :  { %v1209_v44 = vpop.permute.xlu0 %1208 }
0x1234   :  { %1211 = vst.msk [vmem:[%s1975_s6 + $0x4] sm:$0x8] %vm279_vm11, %v1209_v44 }
0x125f   :  { %v1226_v45 = vpop.permute.xlu0 %1225 }
0x1260   :  { %1228 = vst.msk [vmem:[#allocation3] sm:$0x3] %vm98_vm0, %v1226_v45 }
0x1261   :  { %v1215_v46 = vpop.permute.xlu1 %1214 }
0x1262   :  { %1217 = vst.msk [vmem:[%s1976_s7] sm:$0x1] %vm271_vm9, %v1215_v46 }
0x1263   :  { %1251 = vsyncpa [#allocation5], 1 }
0x1264   :  { %1252 = vsyncpa [#allocation7], 1 }

// kernel: a_call__.8
= control target key start
LH: loop header
LB: loop body
LE: loop exit
PB: predicated region body
PF: predicated region fallthrough
CT: control target
= control target key end

     0   :  { %vm66_vm0 = vcmask 254976   ;;  %v1389_v2 = vmov 0.0   ;;  %vm100_vm1 = vcmask 261120   ;;  %s1390_s9 = smov 64   ;;  %s1391_s16 = smov 32   ;;  %s1879_s2 = inlined_call_operand.vmem [shape: bf16[32,96], index: 2, kind: input, shape index: {}]   ;;  %s1880_s3 = inlined_call_operand.vmem [shape: bf16[32,96], index: 3, kind: input, shape index: {}]   ;;  %s1881_s4 = inlined_call_operand.vmem [shape: f32[1,96], index: 4, kind: input, shape index: {}]   ;;  %s1882_s5 = inlined_call_operand.vmem [shape: f32[1,96], index: 5, kind: input, shape index: {}]   ;;  %s1883_s0 = inlined_call_operand.vmem [shape: f32[16,96], index: 0, kind: input, shape index: {}]   ;;  %s1884_s1 = inlined_call_operand.vmem [shape: f32[16,96], index: 1, kind: input, shape index: {}]   ;;  %s1885_s6 = inlined_call_operand.vmem [shape: bf16[16,32], index: 6, kind: output, shape index: {0}]   ;;  %s1886_s7 = inlined_call_operand.vmem [shape: bf16[16,32], index: 7, kind: output, shape index: {1}]  }
   0x1   :  { %v1436_v0 = vld [vmem:[%s1879_s2 + $0x8] sm:$0xff]  ;;  %67 = vst.msk [vmem:[#allocation2] sm:$0x3] %vm66_vm0, %v1389_v2  ;;  %v1450_v3 = vld [vmem:[%s1879_s2] sm:$0xff]  ;;  %s1392_s17 = smov 96  }
   0x2   :  { %v1441_v1 = vld [vmem:[%s1880_s3 + $0x8] sm:$0xff]  ;;  %68 = vst.msk [vmem:[#allocation3] sm:$0x3] %vm66_vm0, %v1389_v2  ;;  %110 = vmatpush.bf16.msra.mxu0 %v1436_v0  ;;  %v1455_v4 = vld [vmem:[%s1880_s3] sm:$0xff]  ;;  %262 = vmatpush.bf16.msra.mxu2 %v1436_v0 }
   0x3   :  { %139 = vmatpush.bf16.msra.mxu1 %v1441_v1  ;;  %282 = vmatpush.bf16.msra.mxu3 %v1441_v1  ;;  %v1488_v9 = vld [vmem:[%s1881_s4] ss:$0 sm:$0xff]  ;;  %v147_v20 = vld [vmem:[%s1884_s1 + $0xe] sm:$0x3] }
   0x4   :  { %v1495_v13 = vld [vmem:[%s1882_s5] ss:$0 sm:$0xff] }
   0x5   :  { %v146_v17 = vld [vmem:[%s1883_s0] sm:$0x3] }
   0x6   :  { %111 = vmatpush.bf16.msra.mxu0 %v1450_v3  ;;  %263 = vmatpush.bf16.msra.mxu2 %v1450_v3 }
   0x7   :  { %140 = vmatpush.bf16.msra.mxu1 %v1455_v4  ;;  %283 = vmatpush.bf16.msra.mxu3 %v1455_v4 }
   0x8   :  { %v1461_v5 = vld [vmem:[#allocation2] sm:$0x3] }
   0x9   :  { %v87_v6 = vpack.c.bf16 %v1461_v5, %v1461_v5  ;;  %v1467_v7 = vld [vmem:[#allocation3] sm:$0x3] }
   0xa   :  { %398 = vmatpush.bf16.msrb.mxu0 %v1436_v0  ;;  %v117_v8 = vpack.c.bf16 %v1467_v7, %v1467_v7  ;;  %532 = vmatpush.bf16.msrb.mxu2 %v1436_v0 }
   0xb   :  { %418 = vmatpush.bf16.msrb.mxu1 %v1441_v1  ;;  %552 = vmatpush.bf16.msrb.mxu3 %v1441_v1 }
   0xc   :  { %1241 = vmatmul.msk.bf16.vlgmr.msra.gmra.mxu0 %vm100_vm1, %v87_v6  ;;  %1250 = vmatmul.msk.bf16.vlgmr.msra.gmra.mxu1 %vm100_vm1, %v117_v8 }
   0xe   :  { %399 = vmatpush.bf16.msrb.mxu0 %v1450_v3  ;;  %533 = vmatpush.bf16.msrb.mxu2 %v1450_v3 }
   0xf   :  { %419 = vmatpush.bf16.msrb.mxu1 %v1455_v4  ;;  %553 = vmatpush.bf16.msrb.mxu3 %v1455_v4 }
  0x12   :  { %665 = vmatpush.bf16.msra.mxu0 %v1436_v0 }
  0x13   :  { %685 = vmatpush.bf16.msra.mxu1 %v1441_v1 }
  0x16   :  { %666 = vmatpush.bf16.msra.mxu0 %v1450_v3 }
  0x17   :  { %686 = vmatpush.bf16.msra.mxu1 %v1455_v4 }
  0x89   :  { %v113_v10 = vpop.f32.mrf.mxu0  ;;  %v142_v12 = vpop.f32.mrf.mxu1 }
  0x8a   :  { %v114_v11 = vadd.f32 %v1488_v9, %v113_v10  ;;  %v143_v15 = vadd.f32 %v1495_v13, %v142_v12 }
  0x8c   :  { %169 = vrot.lane.b32.xlu0 %v114_v11, %s1390_s9  ;;  %v148_v18 = vadd.f32 %v146_v17, %v114_v11  ;;  %v191_v21 = vadd.f32 %v147_v20, %v143_v15 }
  0x8e   :  { %v1251_v19 = vmul.f32 -1.442695, %v148_v18  ;;  %v1252_v22 = vmul.f32 -1.442695, %v191_v21 }
  0x90   :  { %1291 = vpow2.f32 %v1251_v19 }
  0x91   :  { %v115_v14 = vpop.f32.mrf.mxu0  ;;  %v144_v16 = vpop.f32.mrf.mxu1  ;;  %1293 = vpow2.f32 %v1252_v22 }
  0x94   :  { %212 = vrot.lane.b32.xlu0 %v143_v15, %s1390_s9 }
  0x96   :  { %v1292_v23 = vpop.eup %1291 }
  0x97   :  { %v152_v24 = vadd.f32 1.0, %v1292_v23  ;;  %v1294_v25 = vpop.eup %1293 }
  0x98   :  { %v195_v26 = vadd.f32 1.0, %v1294_v25  ;;  %v289_v25 = vld [vmem:[%s1883_s0 + $0x2] sm:$0x3] }
  0x99   :  { %1295 = vrcp.f32 %v152_v24  ;;  %v164_v35 = vand.u32 2147483648, %v152_v24  ;;  %vm158_vm3 = vweird.f32 %v152_v24  ;;  %v162_v36 = vand.u32 2147483647, %v152_v24 }
  0x9a   :  { %1297 = vrcp.f32 %v195_v26  ;;  %vm201_vm6 = vweird.f32 %v195_v26  ;;  %v207_v44 = vand.u32 2147483648, %v195_v26  ;;  %v205_v45 = vand.u32 2147483647, %v195_v26 }
  0x9b   :  { %v165_v39 = vor.u32 1.1754944e-38, %v164_v35  ;;  %vm163_vm5 = vcmp.eq.f32.partialorder %v162_v36, 8.507059e+37 }
  0x9c   :  { %v208_v47 = vor.u32 1.1754944e-38, %v207_v44  ;;  %vm206_vm9 = vcmp.eq.f32.partialorder %v205_v45, 8.507059e+37 }
  0x9f   :  { %v1296_v27 = vpop.eup %1295 }
  0xa0   :  { %v154_v28 = vmul.f32 %v1296_v27, %v152_v24  ;;  %v1298_v30 = vpop.eup %1297  ;;  %vm159_vm2 = vweird.f32 %v1296_v27 }
  0xa1   :  { %v197_v32 = vmul.f32 %v1298_v30, %v195_v26  ;;  %vm160_vm4 = vmor %vm158_vm3, %vm159_vm2  ;;  %vm202_vm7 = vweird.f32 %v1298_v30 }
  0xa2   :  { %v155_v29 = vsub.f32 1.0, %v154_v28  ;;  %vm203_vm8 = vmor %vm201_vm6, %vm202_vm7 }
  0xa3   :  { %v198_v34 = vsub.f32 1.0, %v197_v32 }
  0xa4   :  { %v156_v31 = vmul.f32 %v1296_v27, %v155_v29 }
  0xa5   :  { %v199_v38 = vmul.f32 %v1298_v30, %v198_v34 }
  0xa6   :  { %v157_v33 = vadd.f32 %v1296_v27, %v156_v31 }
  0xa7   :  { %v200_v43 = vadd.f32 %v1298_v30, %v199_v38 }
  0xa8   :  { %v161_v37 = vsel %vm160_vm4, %v1296_v27, %v157_v33 }
  0xa9   :  { %v166_v41 = vsel %vm163_vm5, %v165_v39, %v161_v37  ;;  %v204_v46 = vsel %vm203_vm8, %v1298_v30, %v200_v43  ;;  %v290_v30 = vld [vmem:[%s1884_s1 + $0xc] sm:$0x3] }
  0xaa   :  { %v209_v49 = vsel %vm206_vm9, %v208_v47, %v204_v46  ;;  %v179_v58 = vsub.f32 1.0, %v166_v41 }
  0xfe   :  { %v170_v40 = vpop.permute.xlu0 %169 }
  0xff   :  { %v172_v42 = vmul.f32 %v170_v40, %v166_v41 }
 0x101   :  { %174 = vrot.lane.b32.xlu1 %v172_v42, %s1390_s9 }
 0x106   :  { %v213_v48 = vpop.permute.xlu0 %212 }
 0x107   :  { %v215_v50 = vmul.f32 %v213_v48, %v209_v49 }
 0x109   :  { %217 = vrot.lane.b32.xlu1 %v215_v50, %s1390_s9 }
 0x111   :  { %229 = vrot.lane.b32.xlu1 %v1467_v7, %s1391_s16 }
 0x173   :  { %v175_v51 = vpop.permute.xlu1 %174 }
 0x174   :  { %v177_v52 = vadd.f32 %v175_v51, %v146_v17 }
 0x176   :  { %1299 = vtanh.f32 %v177_v52 }
 0x17b   :  { %v218_v53 = vpop.permute.xlu1 %217 }
 0x17c   :  { %v1300_v54 = vpop.eup %1299  ;;  %v220_v55 = vadd.f32 %v218_v53, %v147_v20 }
 0x17d   :  { %181 = vrot.lane.b32.xlu2 %v1300_v54, %s1392_s17 }
 0x17e   :  { %1301 = vtanh.f32 %v220_v55 }
 0x183   :  { %v230_v7 = vpop.permute.xlu1 %229 }
 0x184   :  { %v1302_v56 = vpop.eup %1301  ;;  %v232_v10 = vmul.f32 %v230_v7, %v209_v49 }
 0x185   :  { %186 = vrot.lane.b32.xlu2 %v1461_v5, %s1391_s16  ;;  %224 = vrot.lane.b32.xlu0 %v1302_v56, %s1392_s17  ;;  %v222_v5 = vsub.f32 1.0, %v209_v49 }
 0x1d7   :  { %v182_v57 = vpop.permute.xlu2 %181 }
 0x1d8   :  { %v184_v60 = vmul.f32 %v182_v57, %v179_v58 }
 0x1df   :  { %v187_v59 = vpop.permute.xlu2 %186 }
 0x1e0   :  { %v189_v61 = vmul.f32 %v187_v59, %v166_v41 }
 0x1e2   :  { %v1511_v62 = vadd.f32 %v189_v61, %v184_v60 }
 0x1e4   :  { %v1515_v63 = vpack.c.bf16 %v1511_v62, %v1511_v62 }
 0x1e6   :  { %v249_v2 = vunpack.c.l.b16 %v1515_v63 }
 0x1e8   :  { %v250_v6 = vpack.c.b16 %v249_v2, %v249_v2 }
 0x1ea   :  { %251 = vrot.lane.b32.xlu2 %v250_v6, %s1392_s17 }
 0x1f7   :  { %v225_v8 = vpop.permute.xlu0 %224 }
 0x1f8   :  { %v227_v11 = vmul.f32 %v225_v8, %v222_v5 }
 0x1fa   :  { %v1519_v12 = vadd.f32 %v232_v10, %v227_v11 }
 0x1fc   :  { %v1523_v14 = vpack.c.bf16 %v1519_v12, %v1519_v12 }
 0x1fe   :  { %v269_v15 = vunpack.c.l.b16 %v1523_v14 }
 0x200   :  { %v270_v16 = vpack.c.b16 %v269_v15, %v269_v15 }
 0x202   :  { %271 = vrot.lane.b32.xlu0 %v270_v16, %s1392_s17 }
 0x244   :  { %v252_v17 = vpop.permute.xlu2 %251 }
 0x245   :  { %1253 = vmatmul.msk.bf16.vlgmr.msra.gmra.mxu2 %vm100_vm1, %v252_v17 }
 0x246   :  { %798 = vmatpush.bf16.msra.mxu2 %v1436_v0 }
 0x24a   :  { %799 = vmatpush.bf16.msra.mxu2 %v1450_v3 }
 0x274   :  { %v272_v18 = vpop.permute.xlu0 %271 }
 0x275   :  { %1254 = vmatmul.msk.bf16.vlgmr.msra.gmra.mxu3 %vm100_vm1, %v272_v18 }
 0x276   :  { %818 = vmatpush.bf16.msra.mxu3 %v1441_v1 }
 0x27a   :  { %819 = vmatpush.bf16.msra.mxu3 %v1455_v4 }
 0x2c8   :  { %v265_v19 = vpop.f32.mrf.mxu2 }
 0x2c9   :  { %v266_v20 = vadd.f32 %v1488_v9, %v265_v19 }
 0x2cb   :  { %312 = vrot.lane.b32.xlu1 %v266_v20, %s1390_s9  ;;  %v291_v26 = vadd.f32 %v289_v25, %v266_v20 }
 0x2cd   :  { %v1255_v27 = vmul.f32 -1.442695, %v291_v26 }
 0x2cf   :  { %1303 = vpow2.f32 %v1255_v27 }
 0x2d0   :  { %v267_v21 = vpop.f32.mrf.mxu2 }
 0x2d5   :  { %v1304_v28 = vpop.eup %1303 }
 0x2d6   :  { %v295_v29 = vadd.f32 1.0, %v1304_v28 }
 0x2d8   :  { %1305 = vrcp.f32 %v295_v29  ;;  %v307_v40 = vand.u32 2147483648, %v295_v29  ;;  %vm301_vm11 = vweird.f32 %v295_v29  ;;  %v305_v41 = vand.u32 2147483647, %v295_v29 }
 0x2da   :  { %v308_v43 = vor.u32 1.1754944e-38, %v307_v40  ;;  %vm306_vm13 = vcmp.eq.f32.partialorder %v305_v41, 8.507059e+37 }
 0x2de   :  { %v1306_v32 = vpop.eup %1305 }
 0x2df   :  { %v297_v34 = vmul.f32 %v1306_v32, %v295_v29  ;;  %vm302_vm10 = vweird.f32 %v1306_v32 }
 0x2e0   :  { %vm303_vm12 = vmor %vm301_vm11, %vm302_vm10 }
 0x2e1   :  { %v298_v35 = vsub.f32 1.0, %v297_v34 }
 0x2e3   :  { %v299_v37 = vmul.f32 %v1306_v32, %v298_v35 }
 0x2e5   :  { %v300_v39 = vadd.f32 %v1306_v32, %v299_v37 }
 0x2e7   :  { %v304_v42 = vsel %vm303_vm12, %v1306_v32, %v300_v39 }
 0x2e8   :  { %v309_v44 = vsel %vm306_vm13, %v308_v43, %v304_v42 }
 0x2e9   :  { %v322_v5 = vsub.f32 1.0, %v309_v44  ;;  %v328_v10 = vmul.f32 %v309_v44, %v1511_v62 }
 0x2f8   :  { %v285_v22 = vpop.f32.mrf.mxu3 }
 0x2f9   :  { %v286_v23 = vadd.f32 %v1495_v13, %v285_v22 }
 0x2fb   :  { %351 = vrot.lane.b32.xlu2 %v286_v23, %s1390_s9  ;;  %v330_v31 = vadd.f32 %v290_v30, %v286_v23 }
 0x2fd   :  { %v1256_v33 = vmul.f32 -1.442695, %v330_v31 }
 0x2ff   :  { %1307 = vpow2.f32 %v1256_v33  ;;  %v425_v33 = vld [vmem:[%s1883_s0 + $0x4] sm:$0x3] }
 0x300   :  { %v287_v24 = vpop.f32.mrf.mxu3 }
 0x305   :  { %v1308_v36 = vpop.eup %1307 }
 0x306   :  { %v334_v38 = vadd.f32 1.0, %v1308_v36 }
 0x308   :  { %1309 = vrcp.f32 %v334_v38  ;;  %v346_v52 = vand.u32 2147483648, %v334_v38  ;;  %vm340_vm15 = vweird.f32 %v334_v38  ;;  %v344_v53 = vand.u32 2147483647, %v334_v38 }
 0x30a   :  { %v347_v55 = vor.u32 1.1754944e-38, %v346_v52  ;;  %vm345_vm3 = vcmp.eq.f32.partialorder %v344_v53, 8.507059e+37 }
 0x30e   :  { %v1310_v47 = vpop.eup %1309 }
 0x30f   :  { %v336_v48 = vmul.f32 %v1310_v47, %v334_v38  ;;  %vm341_vm14 = vweird.f32 %v1310_v47  ;;  %v426_v38 = vld [vmem:[%s1884_s1 + $0xa] sm:$0x3] }
 0x310   :  { %vm342_vm2 = vmor %vm340_vm15, %vm341_vm14 }
 0x311   :  { %v337_v49 = vsub.f32 1.0, %v336_v48 }
 0x313   :  { %v338_v50 = vmul.f32 %v1310_v47, %v337_v49 }
 0x315   :  { %v339_v51 = vadd.f32 %v1310_v47, %v338_v50 }
 0x317   :  { %v343_v54 = vsel %vm342_vm2, %v1310_v47, %v339_v51 }
 0x318   :  { %v348_v57 = vsel %vm345_vm3, %v347_v55, %v343_v54 }
 0x319   :  { %v361_v19 = vsub.f32 1.0, %v348_v57  ;;  %v367_v21 = vmul.f32 %v348_v57, %v1519_v12 }
 0x33d   :  { %v313_v45 = vpop.permute.xlu1 %312 }
 0x33e   :  { %v315_v46 = vmul.f32 %v313_v45, %v309_v44 }
 0x340   :  { %317 = vrot.lane.b32.xlu0 %v315_v46, %s1390_s9 }
 0x355   :  { %v352_v56 = vpop.permute.xlu2 %351 }
 0x356   :  { %v354_v58 = vmul.f32 %v352_v56, %v348_v57 }
 0x358   :  { %356 = vrot.lane.b32.xlu1 %v354_v58, %s1390_s9 }
 0x3b2   :  { %v318_v59 = vpop.permute.xlu0 %317 }
 0x3b3   :  { %v320_v60 = vadd.f32 %v318_v59, %v289_v25 }
 0x3b5   :  { %1311 = vtanh.f32 %v320_v60 }
 0x3bb   :  { %v1312_v61 = vpop.eup %1311 }
 0x3bc   :  { %324 = vrot.lane.b32.xlu2 %v1312_v61, %s1392_s17 }
 0x3ca   :  { %v357_v2 = vpop.permute.xlu1 %356 }
 0x3cb   :  { %v359_v6 = vadd.f32 %v357_v2, %v290_v30 }
 0x3cd   :  { %1313 = vtanh.f32 %v359_v6 }
 0x3d3   :  { %v1314_v7 = vpop.eup %1313 }
 0x3d4   :  { %363 = vrot.lane.b32.xlu0 %v1314_v7, %s1392_s17 }
 0x416   :  { %v325_v8 = vpop.permute.xlu2 %324 }
 0x417   :  { %v327_v11 = vmul.f32 %v325_v8, %v322_v5 }
 0x419   :  { %v1548_v15 = vadd.f32 %v328_v10, %v327_v11 }
 0x41b   :  { %v1552_v16 = vpack.c.bf16 %v1548_v15, %v1548_v15 }
 0x41d   :  { %v385_v17 = vunpack.c.l.b16 %v1552_v16 }
 0x41f   :  { %v386_v18 = vpack.c.b16 %v385_v17, %v385_v17 }
 0x421   :  { %387 = vrot.lane.b32.xlu1 %v386_v18, %s1392_s17 }
 0x446   :  { %v364_v20 = vpop.permute.xlu0 %363 }
 0x447   :  { %v366_v22 = vmul.f32 %v364_v20, %v361_v19 }
 0x449   :  { %v1557_v23 = vadd.f32 %v367_v21, %v366_v22 }
 0x44b   :  { %v1561_v62 = vpack.c.bf16 %v1557_v23, %v1557_v23 }
 0x44d   :  { %v405_v24 = vunpack.c.l.b16 %v1561_v62 }
 0x44f   :  { %v406_v25 = vpack.c.b16 %v405_v24, %v405_v24 }
 0x451   :  { %407 = vrot.lane.b32.xlu2 %v406_v25, %s1392_s17 }
 0x493   :  { %v388_v26 = vpop.permute.xlu1 %387 }
 0x494   :  { %1257 = vmatmul.msk.bf16.vlgmr.msrb.gmra.mxu0 %vm100_vm1, %v388_v26 }
 0x495   :  { %932 = vmatpush.bf16.msrb.mxu0 %v1436_v0 }
 0x499   :  { %933 = vmatpush.bf16.msrb.mxu0 %v1450_v3 }
 0x4ab   :  { %v408_v12 = vpop.permute.xlu2 %407 }
 0x4ac   :  { %1258 = vmatmul.msk.bf16.vlgmr.msrb.gmra.mxu1 %vm100_vm1, %v408_v12 }
 0x4ad   :  { %952 = vmatpush.bf16.msrb.mxu1 %v1441_v1 }
 0x4b1   :  { %953 = vmatpush.bf16.msrb.mxu1 %v1455_v4 }
 0x511   :  { %v401_v27 = vpop.f32.mrf.mxu0 }
 0x512   :  { %v402_v28 = vadd.f32 %v1488_v9, %v401_v27 }
 0x514   :  { %448 = vrot.lane.b32.xlu0 %v402_v28, %s1390_s9  ;;  %v427_v34 = vadd.f32 %v425_v33, %v402_v28 }
 0x516   :  { %v1259_v35 = vmul.f32 -1.442695, %v427_v34 }
 0x518   :  { %1315 = vpow2.f32 %v1259_v35 }
 0x519   :  { %v403_v29 = vpop.f32.mrf.mxu0 }
 0x51e   :  { %v1316_v36 = vpop.eup %1315 }
 0x51f   :  { %v431_v37 = vadd.f32 1.0, %v1316_v36 }
 0x521   :  { %1317 = vrcp.f32 %v431_v37  ;;  %v443_v48 = vand.u32 2147483648, %v431_v37  ;;  %vm437_vm5 = vweird.f32 %v431_v37  ;;  %v441_v49 = vand.u32 2147483647, %v431_v37 }
 0x523   :  { %v444_v51 = vor.u32 1.1754944e-38, %v443_v48  ;;  %vm442_vm7 = vcmp.eq.f32.partialorder %v441_v49, 8.507059e+37 }
 0x527   :  { %v1318_v40 = vpop.eup %1317 }
 0x528   :  { %v433_v42 = vmul.f32 %v1318_v40, %v431_v37  ;;  %vm438_vm4 = vweird.f32 %v1318_v40 }
 0x529   :  { %v421_v30 = vpop.f32.mrf.mxu1  ;;  %vm439_vm6 = vmor %vm437_vm5, %vm438_vm4 }
 0x52a   :  { %v422_v31 = vadd.f32 %v1495_v13, %v421_v30  ;;  %v434_v43 = vsub.f32 1.0, %v433_v42 }
 0x52c   :  { %487 = vrot.lane.b32.xlu1 %v422_v31, %s1390_s9  ;;  %v466_v39 = vadd.f32 %v426_v38, %v422_v31  ;;  %v435_v45 = vmul.f32 %v1318_v40, %v434_v43 }
 0x52e   :  { %v1260_v41 = vmul.f32 -1.442695, %v466_v39  ;;  %v436_v47 = vadd.f32 %v1318_v40, %v435_v45 }
 0x530   :  { %1319 = vpow2.f32 %v1260_v41  ;;  %v440_v50 = vsel %vm439_vm6, %v1318_v40, %v436_v47 }
 0x531   :  { %v423_v32 = vpop.f32.mrf.mxu1  ;;  %v445_v53 = vsel %vm442_vm7, %v444_v51, %v440_v50  ;;  %v560_v51 = vld [vmem:[%s1884_s1 + $0x8] sm:$0x3] }
 0x532   :  { %v458_v21 = vsub.f32 1.0, %v445_v53  ;;  %v464_v24 = vmul.f32 %v445_v53, %v1548_v15 }
 0x536   :  { %v1320_v44 = vpop.eup %1319 }
 0x537   :  { %v470_v46 = vadd.f32 1.0, %v1320_v44 }
 0x539   :  { %1321 = vrcp.f32 %v470_v46  ;;  %v482_v60 = vand.u32 2147483648, %v470_v46  ;;  %vm476_vm9 = vweird.f32 %v470_v46  ;;  %v480_v61 = vand.u32 2147483647, %v470_v46 }
 0x53b   :  { %v483_v6 = vor.u32 1.1754944e-38, %v482_v60  ;;  %vm481_vm11 = vcmp.eq.f32.partialorder %v480_v61, 8.507059e+37 }
 0x53f   :  { %v1322_v55 = vpop.eup %1321 }
 0x540   :  { %v472_v56 = vmul.f32 %v1322_v55, %v470_v46  ;;  %vm477_vm8 = vweird.f32 %v1322_v55 }
 0x541   :  { %vm478_vm10 = vmor %vm476_vm9, %vm477_vm8 }
 0x542   :  { %v473_v57 = vsub.f32 1.0, %v472_v56 }
 0x544   :  { %v474_v58 = vmul.f32 %v1322_v55, %v473_v57 }
 0x546   :  { %v475_v59 = vadd.f32 %v1322_v55, %v474_v58 }
 0x548   :  { %v479_v2 = vsel %vm478_vm10, %v1322_v55, %v475_v59 }
 0x549   :  { %v484_v7 = vsel %vm481_vm11, %v483_v6, %v479_v2 }
 0x54a   :  { %v497_v29 = vsub.f32 1.0, %v484_v7  ;;  %v503_v31 = vmul.f32 %v484_v7, %v1557_v23 }
 0x586   :  { %v449_v52 = vpop.permute.xlu0 %448 }
 0x587   :  { %v451_v54 = vmul.f32 %v449_v52, %v445_v53 }
 0x589   :  { %453 = vrot.lane.b32.xlu2 %v451_v54, %s1390_s9 }
 0x59e   :  { %v488_v5 = vpop.permute.xlu1 %487 }
 0x59f   :  { %v490_v8 = vmul.f32 %v488_v5, %v484_v7 }
 0x5a1   :  { %492 = vrot.lane.b32.xlu0 %v490_v8, %s1390_s9 }
 0x5e3   :  { %v454_v10 = vpop.permute.xlu2 %453 }
 0x5e4   :  { %v456_v11 = vadd.f32 %v454_v10, %v425_v33 }
 0x5e6   :  { %1323 = vtanh.f32 %v456_v11 }
 0x5ec   :  { %v1324_v17 = vpop.eup %1323 }
 0x5ed   :  { %460 = vrot.lane.b32.xlu1 %v1324_v17, %s1392_s17 }
 0x613   :  { %v493_v18 = vpop.permute.xlu0 %492 }
 0x614   :  { %v495_v19 = vadd.f32 %v493_v18, %v426_v38 }
 0x616   :  { %1325 = vtanh.f32 %v495_v19 }
 0x61c   :  { %v1326_v20 = vpop.eup %1325 }
 0x61d   :  { %499 = vrot.lane.b32.xlu2 %v1326_v20, %s1392_s17 }
 0x65f   :  { %v461_v22 = vpop.permute.xlu1 %460 }
 0x660   :  { %v463_v25 = vmul.f32 %v461_v22, %v458_v21 }
 0x662   :  { %v1586_v26 = vadd.f32 %v464_v24, %v463_v25 }
 0x664   :  { %v1590_v12 = vpack.c.bf16 %v1586_v26, %v1586_v26 }
 0x666   :  { %v519_v27 = vunpack.c.l.b16 %v1590_v12 }
 0x668   :  { %v520_v28 = vpack.c.b16 %v519_v27, %v519_v27 }
 0x66a   :  { %521 = vrot.lane.b32.xlu0 %v520_v28, %s1392_s17 }
 0x677   :  { %v500_v30 = vpop.permute.xlu2 %499 }
 0x678   :  { %v502_v32 = vmul.f32 %v500_v30, %v497_v29 }
 0x67a   :  { %v1595_v33 = vadd.f32 %v503_v31, %v502_v32 }
 0x67c   :  { %v1599_v15 = vpack.c.bf16 %v1595_v33, %v1595_v33 }
 0x67e   :  { %v539_v34 = vunpack.c.l.b16 %v1599_v15 }
 0x680   :  { %v540_v35 = vpack.c.b16 %v539_v34, %v539_v34 }
 0x682   :  { %541 = vrot.lane.b32.xlu1 %v540_v35, %s1392_s17 }
 0x6dc   :  { %v522_v36 = vpop.permute.xlu0 %521 }
 0x6dd   :  { %1261 = vmatmul.msk.bf16.vlgmr.msrb.gmra.mxu2 %vm100_vm1, %v522_v36 }
 0x6de   :  { %1066 = vmatpush.bf16.msrb.mxu2 %v1436_v0 }
 0x6e2   :  { %1067 = vmatpush.bf16.msrb.mxu2 %v1450_v3  ;;  %v559_v3 = vld [vmem:[%s1883_s0 + $0x6] sm:$0x3] }
 0x6f4   :  { %v542_v23 = vpop.permute.xlu1 %541 }
 0x6f5   :  { %1262 = vmatmul.msk.bf16.vlgmr.msrb.gmra.mxu3 %vm100_vm1, %v542_v23 }
 0x6f6   :  { %1086 = vmatpush.bf16.msrb.mxu3 %v1441_v1 }
 0x6fa   :  { %1087 = vmatpush.bf16.msrb.mxu3 %v1455_v4 }
 0x760   :  { %v535_v37 = vpop.f32.mrf.mxu2 }
 0x761   :  { %v536_v38 = vadd.f32 %v1488_v9, %v535_v37 }
 0x763   :  { %582 = vrot.lane.b32.xlu2 %v536_v38, %s1390_s9  ;;  %v561_v42 = vadd.f32 %v559_v3, %v536_v38 }
 0x765   :  { %v1263_v1 = vmul.f32 -1.442695, %v561_v42 }
 0x767   :  { %1327 = vpow2.f32 %v1263_v1 }
 0x768   :  { %v537_v39 = vpop.f32.mrf.mxu2 }
 0x76d   :  { %v1328_v4 = vpop.eup %1327 }
 0x76e   :  { %v565_v43 = vadd.f32 1.0, %v1328_v4 }
 0x770   :  { %1329 = vrcp.f32 %v565_v43  ;;  %v577_v49 = vand.u32 2147483648, %v565_v43  ;;  %vm571_vm13 = vweird.f32 %v565_v43  ;;  %v575_v50 = vand.u32 2147483647, %v565_v43 }
 0x772   :  { %v578_v53 = vor.u32 1.1754944e-38, %v577_v49  ;;  %vm576_vm15 = vcmp.eq.f32.partialorder %v575_v50, 8.507059e+37 }
 0x776   :  { %v1330_v44 = vpop.eup %1329 }
 0x777   :  { %v567_v45 = vmul.f32 %v1330_v44, %v565_v43  ;;  %vm572_vm12 = vweird.f32 %v1330_v44 }
 0x778   :  { %v555_v40 = vpop.f32.mrf.mxu3  ;;  %vm573_vm14 = vmor %vm571_vm13, %vm572_vm12 }
 0x779   :  { %v556_v41 = vadd.f32 %v1495_v13, %v555_v40  ;;  %v568_v46 = vsub.f32 1.0, %v567_v45 }
 0x77b   :  { %621 = vrot.lane.b32.xlu0 %v556_v41, %s1390_s9  ;;  %v569_v47 = vmul.f32 %v1330_v44, %v568_v46  ;;  %v600_v54 = vadd.f32 %v560_v51, %v556_v41 }
 0x77d   :  { %v570_v48 = vadd.f32 %v1330_v44, %v569_v47  ;;  %v1264_v58 = vmul.f32 -1.442695, %v600_v54  ;;  %v692_v47 = vld [vmem:[%s1883_s0 + $0x8] sm:$0x3] }
 0x77f   :  { %v574_v52 = vsel %vm573_vm14, %v1330_v44, %v570_v48  ;;  %1331 = vpow2.f32 %v1264_v58 }
 0x780   :  { %v557_v0 = vpop.f32.mrf.mxu3  ;;  %v579_v56 = vsel %vm576_vm15, %v578_v53, %v574_v52  ;;  %v693_v52 = vld [vmem:[%s1884_s1 + $0x6] sm:$0x3] }
 0x781   :  { %v592_v29 = vsub.f32 1.0, %v579_v56  ;;  %v598_v31 = vmul.f32 %v579_v56, %v1586_v26 }
 0x785   :  { %v1332_v59 = vpop.eup %1331 }
 0x786   :  { %v604_v60 = vadd.f32 1.0, %v1332_v59 }
 0x788   :  { %1333 = vrcp.f32 %v604_v60  ;;  %v616_v8 = vand.u32 2147483648, %v604_v60  ;;  %vm610_vm3 = vweird.f32 %v604_v60  ;;  %v614_v10 = vand.u32 2147483647, %v604_v60 }
 0x78a   :  { %v617_v17 = vor.u32 1.1754944e-38, %v616_v8  ;;  %vm615_vm5 = vcmp.eq.f32.partialorder %v614_v10, 8.507059e+37 }
 0x78e   :  { %v1334_v61 = vpop.eup %1333 }
 0x78f   :  { %v606_v2 = vmul.f32 %v1334_v61, %v604_v60  ;;  %vm611_vm2 = vweird.f32 %v1334_v61 }
 0x790   :  { %vm612_vm4 = vmor %vm610_vm3, %vm611_vm2 }
 0x791   :  { %v607_v6 = vsub.f32 1.0, %v606_v2 }
 0x793   :  { %v608_v7 = vmul.f32 %v1334_v61, %v607_v6 }
 0x795   :  { %v609_v5 = vadd.f32 %v1334_v61, %v608_v7 }
 0x797   :  { %v613_v11 = vsel %vm612_vm4, %v1334_v61, %v609_v5 }
 0x798   :  { %v618_v19 = vsel %vm615_vm5, %v617_v17, %v613_v11 }
 0x799   :  { %v631_v37 = vsub.f32 1.0, %v618_v19  ;;  %v637_v39 = vmul.f32 %v618_v19, %v1595_v33 }
 0x7bd   :  { %v583_v55 = vpop.permute.xlu2 %582 }
 0x7be   :  { %v585_v57 = vmul.f32 %v583_v55, %v579_v56 }
 0x7c0   :  { %587 = vrot.lane.b32.xlu1 %v585_v57, %s1390_s9 }
 0x7ed   :  { %v622_v18 = vpop.permute.xlu0 %621 }
 0x7ee   :  { %v624_v20 = vmul.f32 %v622_v18, %v618_v19 }
 0x7f0   :  { %626 = vrot.lane.b32.xlu2 %v624_v20, %s1390_s9 }
 0x832   :  { %v588_v21 = vpop.permute.xlu1 %587 }
 0x833   :  { %v590_v22 = vadd.f32 %v588_v21, %v559_v3 }
 0x835   :  { %1335 = vtanh.f32 %v590_v22 }
 0x83b   :  { %v1336_v24 = vpop.eup %1335 }
 0x83c   :  { %594 = vrot.lane.b32.xlu0 %v1336_v24, %s1392_s17 }
 0x84a   :  { %v627_v25 = vpop.permute.xlu2 %626 }
 0x84b   :  { %v629_v27 = vadd.f32 %v627_v25, %v560_v51 }
 0x84d   :  { %1337 = vtanh.f32 %v629_v27 }
 0x853   :  { %v1338_v28 = vpop.eup %1337 }
 0x854   :  { %633 = vrot.lane.b32.xlu1 %v1338_v28, %s1392_s17 }
 0x8ae   :  { %v595_v30 = vpop.permute.xlu0 %594 }
 0x8af   :  { %v597_v32 = vmul.f32 %v595_v30, %v592_v29 }
 0x8b1   :  { %v1624_v34 = vadd.f32 %v598_v31, %v597_v32 }
 0x8b3   :  { %v1628_v35 = vpack.c.bf16 %v1624_v34, %v1624_v34 }
 0x8b5   :  { %v652_v36 = vunpack.c.l.b16 %v1628_v35 }
 0x8b7   :  { %v653_v23 = vpack.c.b16 %v652_v36, %v652_v36 }
 0x8b9   :  { %654 = vrot.lane.b32.xlu2 %v653_v23, %s1392_s17 }
 0x8c6   :  { %v634_v38 = vpop.permute.xlu1 %633 }
 0x8c7   :  { %v636_v40 = vmul.f32 %v634_v38, %v631_v37 }
 0x8c9   :  { %v1633_v41 = vadd.f32 %v637_v39, %v636_v40 }
 0x8cb   :  { %v1637_v26 = vpack.c.bf16 %v1633_v41, %v1633_v41 }
 0x8cd   :  { %v672_v0 = vunpack.c.l.b16 %v1637_v26 }
 0x8cf   :  { %v673_v3 = vpack.c.b16 %v672_v0, %v672_v0 }
 0x8d1   :  { %674 = vrot.lane.b32.xlu0 %v673_v3, %s1392_s17 }
 0x913   :  { %v655_v42 = vpop.permute.xlu2 %654 }
 0x914   :  { %1265 = vmatmul.msk.bf16.vlgmr.msra.gmra.mxu0 %vm100_vm1, %v655_v42 }
 0x943   :  { %v675_v1 = vpop.permute.xlu0 %674 }
 0x944   :  { %1266 = vmatmul.msk.bf16.vlgmr.msra.gmra.mxu1 %vm100_vm1, %v675_v1 }
 0x991   :  { %v668_v4 = vpop.f32.mrf.mxu0 }
 0x992   :  { %v669_v33 = vadd.f32 %v1488_v9, %v668_v4 }
 0x994   :  { %715 = vrot.lane.b32.xlu1 %v669_v33, %s1390_s9  ;;  %v694_v48 = vadd.f32 %v692_v47, %v669_v33 }
 0x996   :  { %v1267_v49 = vmul.f32 -1.442695, %v694_v48 }
 0x998   :  { %1339 = vpow2.f32 %v1267_v49 }
 0x999   :  { %v670_v43 = vpop.f32.mrf.mxu0 }
 0x99e   :  { %v1340_v50 = vpop.eup %1339 }
 0x99f   :  { %v698_v51 = vadd.f32 1.0, %v1340_v50 }
 0x9a1   :  { %1341 = vrcp.f32 %v698_v51  ;;  %v710_v2 = vand.u32 2147483648, %v698_v51  ;;  %vm704_vm7 = vweird.f32 %v698_v51  ;;  %v708_v6 = vand.u32 2147483647, %v698_v51 }
 0x9a3   :  { %v711_v5 = vor.u32 1.1754944e-38, %v710_v2  ;;  %vm709_vm9 = vcmp.eq.f32.partialorder %v708_v6, 8.507059e+37 }
 0x9a7   :  { %v1342_v54 = vpop.eup %1341 }
 0x9a8   :  { %v700_v56 = vmul.f32 %v1342_v54, %v698_v51  ;;  %vm705_vm6 = vweird.f32 %v1342_v54 }
 0x9a9   :  { %vm706_vm8 = vmor %vm704_vm7, %vm705_vm6 }
 0x9aa   :  { %v701_v57 = vsub.f32 1.0, %v700_v56 }
 0x9ac   :  { %v702_v59 = vmul.f32 %v1342_v54, %v701_v57  ;;  %v825_v57 = vld [vmem:[%s1883_s0 + $0xa] sm:$0x3] }
 0x9ae   :  { %v703_v61 = vadd.f32 %v1342_v54, %v702_v59 }
 0x9b0   :  { %v707_v7 = vsel %vm706_vm8, %v1342_v54, %v703_v61 }
 0x9b1   :  { %v712_v8 = vsel %vm709_vm9, %v711_v5, %v707_v7 }
 0x9b2   :  { %v725_v39 = vsub.f32 1.0, %v712_v8  ;;  %v731_v0 = vmul.f32 %v712_v8, %v1624_v34 }
 0x9c1   :  { %v688_v44 = vpop.f32.mrf.mxu1 }
 0x9c2   :  { %v689_v45 = vadd.f32 %v1495_v13, %v688_v44 }
 0x9c4   :  { %754 = vrot.lane.b32.xlu2 %v689_v45, %s1390_s9  ;;  %v733_v53 = vadd.f32 %v693_v52, %v689_v45 }
 0x9c6   :  { %v1268_v55 = vmul.f32 -1.442695, %v733_v53 }
 0x9c8   :  { %1343 = vpow2.f32 %v1268_v55 }
 0x9c9   :  { %v690_v46 = vpop.f32.mrf.mxu1 }
 0x9ce   :  { %v1344_v58 = vpop.eup %1343 }
 0x9cf   :  { %v737_v60 = vadd.f32 1.0, %v1344_v58 }
 0x9d1   :  { %1345 = vrcp.f32 %v737_v60  ;;  %v749_v22 = vand.u32 2147483648, %v737_v60  ;;  %vm743_vm11 = vweird.f32 %v737_v60  ;;  %v747_v24 = vand.u32 2147483647, %v737_v60 }
 0x9d3   :  { %v750_v27 = vor.u32 1.1754944e-38, %v749_v22  ;;  %vm748_vm13 = vcmp.eq.f32.partialorder %v747_v24, 8.507059e+37 }
 0x9d7   :  { %v1346_v17 = vpop.eup %1345 }
 0x9d8   :  { %v739_v18 = vmul.f32 %v1346_v17, %v737_v60  ;;  %vm744_vm10 = vweird.f32 %v1346_v17 }
 0x9d9   :  { %vm745_vm12 = vmor %vm743_vm11, %vm744_vm10 }
 0x9da   :  { %v740_v19 = vsub.f32 1.0, %v739_v18 }
 0x9dc   :  { %v741_v20 = vmul.f32 %v1346_v17, %v740_v19 }
 0x9de   :  { %v742_v21 = vadd.f32 %v1346_v17, %v741_v20 }
 0x9e0   :  { %v746_v25 = vsel %vm745_vm12, %v1346_v17, %v742_v21 }
 0x9e1   :  { %v751_v29 = vsel %vm748_vm13, %v750_v27, %v746_v25 }
 0x9e2   :  { %v764_v43 = vsub.f32 1.0, %v751_v29  ;;  %v770_v45 = vmul.f32 %v751_v29, %v1633_v41 }
 0xa06   :  { %v716_v10 = vpop.permute.xlu1 %715 }
 0xa07   :  { %v718_v11 = vmul.f32 %v716_v10, %v712_v8 }
 0xa09   :  { %720 = vrot.lane.b32.xlu0 %v718_v11, %s1390_s9 }
 0xa1e   :  { %v755_v28 = vpop.permute.xlu2 %754 }
 0xa1f   :  { %v757_v30 = vmul.f32 %v755_v28, %v751_v29 }
 0xa21   :  { %759 = vrot.lane.b32.xlu1 %v757_v30, %s1390_s9 }
 0xa7b   :  { %v721_v31 = vpop.permute.xlu0 %720 }
 0xa7c   :  { %v723_v32 = vadd.f32 %v721_v31, %v692_v47 }
 0xa7e   :  { %1347 = vtanh.f32 %v723_v32 }
 0xa84   :  { %v1348_v36 = vpop.eup %1347 }
 0xa85   :  { %727 = vrot.lane.b32.xlu2 %v1348_v36, %s1392_s17 }
 0xa93   :  { %v760_v23 = vpop.permute.xlu1 %759 }
 0xa94   :  { %v762_v37 = vadd.f32 %v760_v23, %v693_v52 }
 0xa96   :  { %1349 = vtanh.f32 %v762_v37 }
 0xa9c   :  { %v1350_v38 = vpop.eup %1349 }
 0xa9d   :  { %766 = vrot.lane.b32.xlu0 %v1350_v38, %s1392_s17 }
 0xadf   :  { %v728_v40 = vpop.permute.xlu2 %727 }
 0xae0   :  { %v730_v3 = vmul.f32 %v728_v40, %v725_v39 }
 0xae2   :  { %v1658_v42 = vadd.f32 %v731_v0, %v730_v3 }
 0xae4   :  { %v1662_v1 = vpack.c.bf16 %v1658_v42, %v1658_v42 }
 0xae6   :  { %v785_v4 = vunpack.c.l.b16 %v1662_v1 }
 0xae8   :  { %v786_v33 = vpack.c.b16 %v785_v4, %v785_v4 }
 0xaea   :  { %787 = vrot.lane.b32.xlu1 %v786_v33, %s1392_s17 }
 0xb0f   :  { %v767_v44 = vpop.permute.xlu0 %766 }
 0xb10   :  { %v769_v46 = vmul.f32 %v767_v44, %v764_v43 }
 0xb12   :  { %v1667_v47 = vadd.f32 %v770_v45, %v769_v46 }
 0xb14   :  { %v1671_v34 = vpack.c.bf16 %v1667_v47, %v1667_v47 }
 0xb16   :  { %v805_v48 = vunpack.c.l.b16 %v1671_v34 }
 0xb18   :  { %v806_v49 = vpack.c.b16 %v805_v48, %v805_v48 }
 0xb1a   :  { %807 = vrot.lane.b32.xlu2 %v806_v49, %s1392_s17 }
 0xb5c   :  { %v788_v50 = vpop.permute.xlu1 %787 }
 0xb5d   :  { %1269 = vmatmul.msk.bf16.vlgmr.msra.gmra.mxu2 %vm100_vm1, %v788_v50 }
 0xb74   :  { %v808_v51 = vpop.permute.xlu2 %807 }
 0xb75   :  { %1270 = vmatmul.msk.bf16.vlgmr.msra.gmra.mxu3 %vm100_vm1, %v808_v51 }
 0xbe0   :  { %v801_v52 = vpop.f32.mrf.mxu2 }
 0xbe1   :  { %v802_v41 = vadd.f32 %v1488_v9, %v801_v52  ;;  %v826_v9 = vld [vmem:[%s1884_s1 + $0x4] sm:$0x3] }
 0xbe3   :  { %848 = vrot.lane.b32.xlu0 %v802_v41, %s1390_s9  ;;  %v827_v58 = vadd.f32 %v825_v57, %v802_v41 }
 0xbe5   :  { %v1271_v59 = vmul.f32 -1.442695, %v827_v58 }
 0xbe7   :  { %1351 = vpow2.f32 %v1271_v59 }
 0xbe8   :  { %v803_v53 = vpop.f32.mrf.mxu2 }
 0xbed   :  { %v1352_v60 = vpop.eup %1351 }
 0xbee   :  { %v831_v61 = vadd.f32 1.0, %v1352_v60 }
 0xbf0   :  { %1353 = vrcp.f32 %v831_v61  ;;  %v843_v18 = vand.u32 2147483648, %v831_v61  ;;  %vm837_vm15 = vweird.f32 %v831_v61  ;;  %v841_v19 = vand.u32 2147483647, %v831_v61 }
 0xbf2   :  { %v844_v21 = vor.u32 1.1754944e-38, %v843_v18  ;;  %vm842_vm3 = vcmp.eq.f32.partialorder %v841_v19, 8.507059e+37 }
 0xbf6   :  { %v1354_v6 = vpop.eup %1353 }
 0xbf7   :  { %v833_v7 = vmul.f32 %v1354_v6, %v831_v61  ;;  %vm838_vm14 = vweird.f32 %v1354_v6 }
 0xbf8   :  { %v821_v54 = vpop.f32.mrf.mxu3  ;;  %vm839_vm2 = vmor %vm837_vm15, %vm838_vm14 }
 0xbf9   :  { %v822_v55 = vadd.f32 %v1495_v13, %v821_v54  ;;  %v834_v5 = vsub.f32 1.0, %v833_v7  ;;  %v1721_v7 = vld [vmem:[%s1882_s5] ss:$0 sm:$0xff] }
 0xbfb   :  { %887 = vrot.lane.b32.xlu1 %v822_v55, %s1390_s9  ;;  %v866_v2 = vadd.f32 %v826_v9, %v822_v55  ;;  %v835_v10 = vmul.f32 %v1354_v6, %v834_v5 }
 0xbfd   :  { %v1272_v13 = vmul.f32 -1.442695, %v866_v2  ;;  %v836_v17 = vadd.f32 %v1354_v6, %v835_v10  ;;  %v959_v10 = vld [vmem:[%s1883_s0 + $0xc] sm:$0x3] }
 0xbff   :  { %1355 = vpow2.f32 %v1272_v13  ;;  %v840_v20 = vsel %vm839_vm2, %v1354_v6, %v836_v17 }
 0xc00   :  { %v823_v56 = vpop.f32.mrf.mxu3  ;;  %v845_v24 = vsel %vm842_vm3, %v844_v21, %v840_v20 }
 0xc01   :  { %v858_v45 = vsub.f32 1.0, %v845_v24  ;;  %v864_v48 = vmul.f32 %v845_v24, %v1658_v42 }
 0xc05   :  { %v1356_v8 = vpop.eup %1355 }
 0xc06   :  { %v870_v11 = vadd.f32 1.0, %v1356_v8 }
 0xc08   :  { %1357 = vrcp.f32 %v870_v11  ;;  %v882_v32 = vand.u32 2147483648, %v870_v11  ;;  %vm876_vm5 = vweird.f32 %v870_v11  ;;  %v880_v36 = vand.u32 2147483647, %v870_v11 }
 0xc0a   :  { %v883_v37 = vor.u32 1.1754944e-38, %v882_v32  ;;  %vm881_vm7 = vcmp.eq.f32.partialorder %v880_v36, 8.507059e+37 }
 0xc0e   :  { %v1358_v27 = vpop.eup %1357 }
 0xc0f   :  { %v872_v28 = vmul.f32 %v1358_v27, %v870_v11  ;;  %vm877_vm4 = vweird.f32 %v1358_v27 }
 0xc10   :  { %vm878_vm6 = vmor %vm876_vm5, %vm877_vm4 }
 0xc11   :  { %v873_v29 = vsub.f32 1.0, %v872_v28 }
 0xc13   :  { %v874_v30 = vmul.f32 %v1358_v27, %v873_v29  ;;  %v960_v29 = vld [vmem:[%s1884_s1 + $0x2] sm:$0x3] }
 0xc15   :  { %v875_v31 = vadd.f32 %v1358_v27, %v874_v30 }
 0xc17   :  { %v879_v23 = vsel %vm878_vm6, %v1358_v27, %v875_v31 }
 0xc18   :  { %v884_v38 = vsel %vm881_vm7, %v883_v37, %v879_v23 }
 0xc19   :  { %v897_v53 = vsub.f32 1.0, %v884_v38  ;;  %v903_v55 = vmul.f32 %v884_v38, %v1667_v47  ;;  %v1714_v47 = vld [vmem:[%s1881_s4] ss:$0 sm:$0xff] }
 0xc55   :  { %v849_v22 = vpop.permute.xlu0 %848 }
 0xc56   :  { %v851_v25 = vmul.f32 %v849_v22, %v845_v24 }
 0xc58   :  { %853 = vrot.lane.b32.xlu2 %v851_v25, %s1390_s9 }
 0xc6d   :  { %v888_v39 = vpop.permute.xlu1 %887 }
 0xc6e   :  { %v890_v40 = vmul.f32 %v888_v39, %v884_v38 }
 0xc70   :  { %892 = vrot.lane.b32.xlu0 %v890_v40, %s1390_s9 }
 0xcb2   :  { %v854_v0 = vpop.permute.xlu2 %853 }
 0xcb3   :  { %v856_v3 = vadd.f32 %v854_v0, %v825_v57 }
 0xcb5   :  { %1359 = vtanh.f32 %v856_v3 }
 0xcbb   :  { %v1360_v4 = vpop.eup %1359 }
 0xcbc   :  { %860 = vrot.lane.b32.xlu1 %v1360_v4, %s1392_s17 }
 0xce2   :  { %v893_v33 = vpop.permute.xlu0 %892 }
 0xce3   :  { %v895_v43 = vadd.f32 %v893_v33, %v826_v9 }
 0xce5   :  { %1361 = vtanh.f32 %v895_v43 }
 0xceb   :  { %v1362_v44 = vpop.eup %1361 }
 0xcec   :  { %899 = vrot.lane.b32.xlu2 %v1362_v44, %s1392_s17 }
 0xd2e   :  { %v861_v46 = vpop.permute.xlu1 %860 }
 0xd2f   :  { %v863_v49 = vmul.f32 %v861_v46, %v858_v45 }
 0xd31   :  { %v1692_v50 = vadd.f32 %v864_v48, %v863_v49 }
 0xd33   :  { %v1696_v51 = vpack.c.bf16 %v1692_v50, %v1692_v50 }
 0xd35   :  { %v919_v52 = vunpack.c.l.b16 %v1696_v51 }
 0xd37   :  { %v920_v41 = vpack.c.b16 %v919_v52, %v919_v52 }
 0xd39   :  { %921 = vrot.lane.b32.xlu0 %v920_v41, %s1392_s17 }
 0xd46   :  { %v900_v54 = vpop.permute.xlu2 %899 }
 0xd47   :  { %v902_v56 = vmul.f32 %v900_v54, %v897_v53 }
 0xd49   :  { %v1701_v57 = vadd.f32 %v903_v55, %v902_v56 }
 0xd4b   :  { %v1705_v42 = vpack.c.bf16 %v1701_v57, %v1701_v57 }
 0xd4d   :  { %v939_v58 = vunpack.c.l.b16 %v1705_v42 }
 0xd4f   :  { %v940_v59 = vpack.c.b16 %v939_v58, %v939_v58 }
 0xd51   :  { %941 = vrot.lane.b32.xlu1 %v940_v59, %s1392_s17 }
 0xdab   :  { %v922_v60 = vpop.permute.xlu0 %921 }
 0xdac   :  { %1273 = vmatmul.msk.bf16.vlgmr.msrb.gmra.mxu0 %vm100_vm1, %v922_v60 }
 0xdc3   :  { %v942_v61 = vpop.permute.xlu1 %941 }
 0xdc4   :  { %1274 = vmatmul.msk.bf16.vlgmr.msrb.gmra.mxu1 %vm100_vm1, %v942_v61 }
 0xe29   :  { %v935_v9 = vpop.f32.mrf.mxu0 }
 0xe2a   :  { %v936_v2 = vadd.f32 %v1714_v47, %v935_v9 }
 0xe2c   :  { %982 = vrot.lane.b32.xlu2 %v936_v2, %s1390_s9  ;;  %v961_v11 = vadd.f32 %v959_v10, %v936_v2 }
 0xe2e   :  { %v1275_v17 = vmul.f32 -1.442695, %v961_v11 }
 0xe30   :  { %1363 = vpow2.f32 %v1275_v17 }
 0xe31   :  { %v937_v6 = vpop.f32.mrf.mxu0 }
 0xe36   :  { %v1364_v18 = vpop.eup %1363 }
 0xe37   :  { %v965_v19 = vadd.f32 1.0, %v1364_v18 }
 0xe39   :  { %1365 = vrcp.f32 %v965_v19  ;;  %v977_v27 = vand.u32 2147483648, %v965_v19  ;;  %vm971_vm9 = vweird.f32 %v965_v19  ;;  %v975_v28 = vand.u32 2147483647, %v965_v19 }
 0xe3b   :  { %v978_v31 = vor.u32 1.1754944e-38, %v977_v27  ;;  %vm976_vm11 = vcmp.eq.f32.partialorder %v975_v28, 8.507059e+37 }
 0xe3f   :  { %v1366_v20 = vpop.eup %1365 }
 0xe40   :  { %v967_v21 = vmul.f32 %v1366_v20, %v965_v19  ;;  %vm972_vm8 = vweird.f32 %v1366_v20 }
 0xe41   :  { %v955_v13 = vpop.f32.mrf.mxu1  ;;  %vm973_vm10 = vmor %vm971_vm9, %vm972_vm8  ;;  %vm239_vm9 = vcmask 253952  }
 0xe42   :  { %v956_v5 = vadd.f32 %v1721_v7, %v955_v13  ;;  %v968_v22 = vsub.f32 1.0, %v967_v21 }
 0xe44   :  { %1021 = vrot.lane.b32.xlu0 %v956_v5, %s1390_s9  ;;  %v969_v24 = vmul.f32 %v1366_v20, %v968_v22  ;;  %v1000_v32 = vadd.f32 %v960_v29, %v956_v5 }
 0xe46   :  { %v970_v25 = vadd.f32 %v1366_v20, %v969_v24  ;;  %v1276_v38 = vmul.f32 -1.442695, %v1000_v32 }
 0xe48   :  { %v974_v30 = vsel %vm973_vm10, %v1366_v20, %v970_v25  ;;  %1367 = vpow2.f32 %v1276_v38  ;;  %vm383_vm10 = vcmask 256002  }
 0xe49   :  { %v957_v8 = vpop.f32.mrf.mxu1  ;;  %v979_v23 = vsel %vm976_vm11, %v978_v31, %v974_v30  ;;  %v1093_v31 = vld [vmem:[%s1883_s0 + $0xe] sm:$0x3]  ;;  %vm247_vm11 = vcmask 257027  }
 0xe4a   :  { %v992_v60 = vsub.f32 1.0, %v979_v23  ;;  %v998_v9 = vmul.f32 %v979_v23, %v1692_v50 }
 0xe4e   :  { %v1368_v39 = vpop.eup %1367 }
 0xe4f   :  { %v1004_v40 = vadd.f32 1.0, %v1368_v39 }
 0xe51   :  { %1369 = vrcp.f32 %v1004_v40  ;;  %v1016_v44 = vand.u32 2147483648, %v1004_v40  ;;  %vm1010_vm13 = vweird.f32 %v1004_v40  ;;  %v1014_v45 = vand.u32 2147483647, %v1004_v40 }
 0xe53   :  { %v1017_v48 = vor.u32 1.1754944e-38, %v1016_v44  ;;  %vm1015_vm15 = vcmp.eq.f32.partialorder %v1014_v45, 8.507059e+37 }
 0xe57   :  { %v1370_v0 = vpop.eup %1369 }
 0xe58   :  { %v1006_v3 = vmul.f32 %v1370_v0, %v1004_v40  ;;  %vm1011_vm12 = vweird.f32 %v1370_v0 }
 0xe59   :  { %vm1012_vm14 = vmor %vm1010_vm13, %vm1011_vm12  ;;  %vm375_vm12 = vcmask 254977  }
 0xe5a   :  { %v1007_v4 = vsub.f32 1.0, %v1006_v3 }
 0xe5c   :  { %v1008_v33 = vmul.f32 %v1370_v0, %v1007_v4 }
 0xe5e   :  { %v1009_v43 = vadd.f32 %v1370_v0, %v1008_v33 }
 0xe60   :  { %v1013_v46 = vsel %vm1012_vm14, %v1370_v0, %v1009_v43 }
 0xe61   :  { %v1018_v52 = vsel %vm1015_vm15, %v1017_v48, %v1013_v46 }
 0xe62   :  { %v1037_v17 = vmul.f32 %v1018_v52, %v1701_v57 }
 0xe86   :  { %v983_v36 = vpop.permute.xlu2 %982 }
 0xe87   :  { %v985_v37 = vmul.f32 %v983_v36, %v979_v23 }
 0xe89   :  { %987 = vrot.lane.b32.xlu1 %v985_v37, %s1390_s9 }
 0xeb6   :  { %v1022_v49 = vpop.permute.xlu0 %1021 }
 0xeb7   :  { %v1024_v41 = vmul.f32 %v1022_v49, %v1018_v52 }
 0xeb9   :  { %1026 = vrot.lane.b32.xlu2 %v1024_v41, %s1390_s9 }
 0xefb   :  { %v988_v53 = vpop.permute.xlu1 %987 }
 0xefc   :  { %v990_v54 = vadd.f32 %v988_v53, %v959_v10  ;;  %v1031_v10 = vsub.f32 1.0, %v1018_v52 }
 0xefe   :  { %1371 = vtanh.f32 %v990_v54 }
 0xf04   :  { %v1372_v55 = vpop.eup %1371 }
 0xf05   :  { %994 = vrot.lane.b32.xlu0 %v1372_v55, %s1392_s17 }
 0xf13   :  { %v1027_v56 = vpop.permute.xlu2 %1026 }
 0xf14   :  { %v1029_v58 = vadd.f32 %v1027_v56, %v960_v29 }
 0xf16   :  { %1373 = vtanh.f32 %v1029_v58 }
 0xf1c   :  { %v1374_v59 = vpop.eup %1373 }
 0xf1d   :  { %1033 = vrot.lane.b32.xlu1 %v1374_v59, %s1392_s17 }
 0xf77   :  { %v995_v61 = vpop.permute.xlu0 %994 }
 0xf78   :  { %v997_v2 = vmul.f32 %v995_v61, %v992_v60 }
 0xf7a   :  { %v1736_v6 = vadd.f32 %v998_v9, %v997_v2 }
 0xf7c   :  { %v1740_v13 = vpack.c.bf16 %v1736_v6, %v1736_v6 }
 0xf7e   :  { %v1053_v5 = vunpack.c.l.b16 %v1740_v13 }
 0xf80   :  { %v1054_v8 = vpack.c.b16 %v1053_v5, %v1053_v5 }
 0xf82   :  { %1055 = vrot.lane.b32.xlu2 %v1054_v8, %s1392_s17 }
 0xf8f   :  { %v1034_v11 = vpop.permute.xlu1 %1033 }
 0xf90   :  { %v1036_v18 = vmul.f32 %v1034_v11, %v1031_v10  ;;  %v379_v10 = vrot.slane %v1561_v62, 6  ;;  %v641_v11 = vrot.slane %v1628_v35, 5  ;;  %v243_v62 = vrot.slane %v1523_v14, 5 }
 0xf92   :  { %v1745_v19 = vadd.f32 %v1037_v17, %v1036_v18  ;;  %v780_v17 = vrot.slane %v1671_v34, 5  ;;  %v1041_v18 = vrot.slane %v1740_v13, 6 }
 0xf94   :  { %v1749_v50 = vpack.c.bf16 %v1745_v19, %v1745_v19 }
 0xf96   :  { %v1073_v20 = vunpack.c.l.b16 %v1749_v50 }
 0xf98   :  { %v1074_v21 = vpack.c.b16 %v1073_v20, %v1073_v20 }
 0xf9a   :  { %1075 = vrot.lane.b32.xlu0 %v1074_v21, %s1392_s17 }
 0xfdc   :  { %v1056_v22 = vpop.permute.xlu2 %1055 }
 0xfdd   :  { %1277 = vmatmul.msk.bf16.vlgmr.msrb.gmra.mxu2 %vm100_vm1, %v1056_v22  ;;  %v507_v22 = vrot.slane %v1590_v12, 6  ;;  %v907_v12 = vrot.slane %v1696_v51, 7 }
0x100c   :  { %v1076_v24 = vpop.permute.xlu0 %1075 }
0x100d   :  { %1278 = vmatmul.msk.bf16.vlgmr.msrb.gmra.mxu3 %vm100_vm1, %v1076_v24 }
0x1060   :  { %v1069_v25 = vpop.f32.mrf.mxu2 }
0x1061   :  { %v1070_v57 = vadd.f32 %v1714_v47, %v1069_v25  ;;  %v1094_v47 = vld [vmem:[%s1884_s1] sm:$0x3]  ;;  %v371_v25 = vrot.slane %v1552_v16, 7 }
0x1063   :  { %1116 = vrot.lane.b32.xlu1 %v1070_v57, %s1390_s9  ;;  %v1095_v32 = vadd.f32 %v1093_v31, %v1070_v57 }
0x1065   :  { %v1279_v36 = vmul.f32 -1.442695, %v1095_v32 }
0x1067   :  { %1375 = vpow2.f32 %v1279_v36 }
0x1068   :  { %v1071_v27 = vpop.f32.mrf.mxu2 }
0x1069   :  { %v514_v27 = vrot.slane %v1599_v15, 7  ;;  %v914_v15 = vrot.slane %v1705_v42, 6 }
0x106d   :  { %v1376_v23 = vpop.eup %1375 }
0x106e   :  { %v1099_v37 = vadd.f32 1.0, %v1376_v23 }
0x1070   :  { %1377 = vrcp.f32 %v1099_v37  ;;  %v1111_v44 = vand.u32 2147483648, %v1099_v37  ;;  %vm1105_vm2 = vweird.f32 %v1099_v37  ;;  %v1109_v45 = vand.u32 2147483647, %v1099_v37 }
0x1072   :  { %v1112_v48 = vor.u32 1.1754944e-38, %v1111_v44  ;;  %vm1110_vm4 = vcmp.eq.f32.partialorder %v1109_v45, 8.507059e+37 }
0x1076   :  { %v1378_v39 = vpop.eup %1377 }
0x1077   :  { %v1101_v40 = vmul.f32 %v1378_v39, %v1099_v37  ;;  %vm1106_vm1 = vweird.f32 %v1378_v39 }
0x1078   :  { %vm1107_vm3 = vmor %vm1105_vm2, %vm1106_vm1 }
0x1079   :  { %v1102_v0 = vsub.f32 1.0, %v1101_v40 }
0x107b   :  { %v1103_v4 = vmul.f32 %v1378_v39, %v1102_v0 }
0x107d   :  { %v1104_v43 = vadd.f32 %v1378_v39, %v1103_v4 }
0x107f   :  { %v1108_v46 = vsel %vm1107_vm3, %v1378_v39, %v1104_v43 }
0x1080   :  { %v1765_v49 = vsel %vm1110_vm4, %v1112_v48, %v1108_v46 }
0x1090   :  { %v1089_v28 = vpop.f32.mrf.mxu3 }
0x1091   :  { %v1090_v29 = vadd.f32 %v1721_v7, %v1089_v28 }
0x1093   :  { %1155 = vrot.lane.b32.xlu2 %v1090_v29, %s1390_s9  ;;  %v1134_v38 = vadd.f32 %v1094_v47, %v1090_v29  ;;  %v1132_v29 = vmul.f32 %v1765_v49, %v1736_v6 }
0x1095   :  { %v1280_v7 = vmul.f32 -1.442695, %v1134_v38 }
0x1097   :  { %1379 = vpow2.f32 %v1280_v7 }
0x1098   :  { %v1091_v30 = vpop.f32.mrf.mxu3 }
0x109d   :  { %v1380_v3 = vpop.eup %1379 }
0x109e   :  { %v1138_v33 = vadd.f32 1.0, %v1380_v3 }
0x10a0   :  { %1381 = vrcp.f32 %v1138_v33  ;;  %v1150_v59 = vand.u32 2147483648, %v1138_v33  ;;  %vm1144_vm6 = vweird.f32 %v1138_v33  ;;  %v1148_v60 = vand.u32 2147483647, %v1138_v33 }
0x10a2   :  { %v1151_v9 = vor.u32 1.1754944e-38, %v1150_v59  ;;  %vm1149_vm8 = vcmp.eq.f32.partialorder %v1148_v60, 8.507059e+37 }
0x10a6   :  { %v1382_v53 = vpop.eup %1381 }
0x10a7   :  { %v1140_v54 = vmul.f32 %v1382_v53, %v1138_v33  ;;  %vm1145_vm5 = vweird.f32 %v1382_v53 }
0x10a8   :  { %vm1146_vm7 = vmor %vm1144_vm6, %vm1145_vm5 }
0x10a9   :  { %v1141_v55 = vsub.f32 1.0, %v1140_v54 }
0x10ab   :  { %v1142_v56 = vmul.f32 %v1382_v53, %v1141_v55 }
0x10ad   :  { %v1143_v58 = vadd.f32 %v1382_v53, %v1142_v56 }
0x10af   :  { %v1147_v61 = vsel %vm1146_vm7, %v1382_v53, %v1143_v58 }
0x10b0   :  { %v1769_v5 = vsel %vm1149_vm8, %v1151_v9, %v1147_v61 }
0x10b1   :  { %v1171_v39 = vmul.f32 %v1769_v5, %v1745_v19 }
0x10d5   :  { %v1117_v52 = vpop.permute.xlu1 %1116 }
0x10d6   :  { %v1119_v41 = vmul.f32 %v1117_v52, %v1765_v49 }
0x10d8   :  { %1121 = vrot.lane.b32.xlu0 %v1119_v41, %s1390_s9 }
0x10ed   :  { %v1156_v2 = vpop.permute.xlu2 %1155 }
0x10ee   :  { %v1158_v8 = vmul.f32 %v1156_v2, %v1769_v5 }
0x10f0   :  { %1160 = vrot.lane.b32.xlu1 %v1158_v8, %s1390_s9 }
0x10f8   :  { %236 = vrot.lane.b32.xlu1 %v1515_v63, %s1392_s17 }
0x1100   :  { %380 = vrot.lane.b32.xlu1 %v379_v10, %s1392_s17 }
0x1108   :  { %642 = vrot.lane.b32.xlu1 %v641_v11, %s1392_s17 }
0x1110   :  { %781 = vrot.lane.b32.xlu1 %v780_v17, %s1392_s17 }
0x1118   :  { %1042 = vrot.lane.b32.xlu1 %v1041_v18, %s1392_s17 }
0x114a   :  { %v1122_v20 = vpop.permute.xlu0 %1121 }
0x114b   :  { %v1124_v21 = vadd.f32 %v1122_v20, %v1093_v31 }
0x114d   :  { %1383 = vtanh.f32 %v1124_v21 }
0x1153   :  { %v1384_v63 = vpop.eup %1383 }
0x1154   :  { %1128 = vrot.lane.b32.xlu2 %v1384_v63, %s1392_s17 }
0x115c   :  { %244 = vrot.lane.b32.xlu2 %v243_v62, %s1392_s17 }
0x1162   :  { %v1161_v35 = vpop.permute.xlu1 %1160 }
0x1163   :  { %v1163_v34 = vadd.f32 %v1161_v35, %v1094_v47  ;;  %v1165_v47 = vsub.f32 1.0, %v1769_v5 }
0x1164   :  { %508 = vrot.lane.b32.xlu2 %v507_v22, %s1392_s17 }
0x1165   :  { %1385 = vtanh.f32 %v1163_v34 }
0x116a   :  { %v237_v13 = vpop.permute.xlu1 %236 }
0x116b   :  { %v1386_v24 = vpop.eup %1385  ;;  %240 = vst.msk [vmem:[%s1885_s6] sm:$0x1] %vm239_vm9, %v237_v13 }
0x116c   :  { %648 = vrot.lane.b32.xlu2 %v1637_v26, %s1392_s17  ;;  %1167 = vrot.lane.b32.xlu0 %v1386_v24, %s1392_s17  ;;  %v1048_v26 = vrot.slane %v1749_v50, 7  ;;  %v1126_v50 = vsub.f32 1.0, %v1765_v49 }
0x1172   :  { %v381_v14 = vpop.permute.xlu1 %380 }
0x1173   :  { %384 = vst.msk [vmem:[%s1886_s7 + $0x4] sm:$0x4] %vm383_vm10, %v381_v14 }
0x1174   :  { %908 = vrot.lane.b32.xlu2 %v907_v12, %s1392_s17  ;;  %372 = vrot.lane.b32.xlu0 %v371_v25, %s1392_s17 }
0x117a   :  { %v643_v57 = vpop.permute.xlu1 %642 }
0x117b   :  { %645 = vst.msk [vmem:[%s1885_s6] sm:$0x8] %vm247_vm11, %v643_v57 }
0x117c   :  { %1049 = vrot.lane.b32.xlu2 %v1048_v26, %s1392_s17  ;;  %515 = vrot.lane.b32.xlu0 %v514_v27, %s1392_s17 }
0x1182   :  { %v782_v16 = vpop.permute.xlu1 %781 }
0x1183   :  { %784 = vst.msk [vmem:[%s1886_s7] sm:$0x8] %vm247_vm11, %v782_v16 }
0x1184   :  { %774 = vrot.lane.b32.xlu0 %v1662_v1, %s1392_s17 }
0x118a   :  { %v1043_v51 = vpop.permute.xlu1 %1042 }
0x118b   :  { %1045 = vst.msk [vmem:[%s1885_s6 + $0x4] sm:$0x4] %vm383_vm10, %v1043_v51 }
0x118c   :  { %915 = vrot.lane.b32.xlu0 %v914_v15, %s1392_s17 }
0x11ae   :  { %v1129_v28 = vpop.permute.xlu2 %1128 }
0x11af   :  { %v1131_v30 = vmul.f32 %v1129_v28, %v1126_v50 }
0x11b1   :  { %v1133_v31 = vadd.f32 %v1132_v29, %v1131_v30 }
0x11b3   :  { %1187 = vrot.lane.b32.xlu2 %v1133_v31, %s1392_s17  ;;  %v1173_v1 = vpack.c.bf16 %v1133_v31, %v1133_v31 }
0x11b5   :  { %v1175_v32 = vrot.slane %v1173_v1, 5 }
0x11b6   :  { %v245_v42 = vpop.permute.xlu2 %244 }
0x11b7   :  { %248 = vst.msk [vmem:[%s1886_s7 + $0x4] sm:$0x8] %vm247_vm11, %v245_v42  ;;  %1176 = vrot.lane.b32.xlu0 %v1175_v32, %s1392_s17 }
0x11be   :  { %v509_v36 = vpop.permute.xlu2 %508 }
0x11bf   :  { %511 = vst.msk [vmem:[%s1885_s6] sm:$0x4] %vm383_vm10, %v509_v36 }
0x11c6   :  { %v649_v6 = vpop.permute.xlu2 %648 }
0x11c7   :  { %651 = vst.msk [vmem:[%s1886_s7 + $0x4] sm:$0x1] %vm239_vm9, %v649_v6 }
0x11ce   :  { %v909_v23 = vpop.permute.xlu2 %908 }
0x11cf   :  { %911 = vst.msk [vmem:[%s1885_s6 + $0x4] sm:$0x2] %vm375_vm12, %v909_v23 }
0x11d6   :  { %v1050_v37 = vpop.permute.xlu2 %1049 }
0x11d7   :  { %1052 = vst.msk [vmem:[%s1886_s7] sm:$0x2] %vm375_vm12, %v1050_v37 }
0x11de   :  { %v1168_v38 = vpop.permute.xlu0 %1167 }
0x11df   :  { %v1170_v7 = vmul.f32 %v1168_v38, %v1165_v47 }
0x11e1   :  { %v1172_v40 = vadd.f32 %v1171_v39, %v1170_v7 }
0x11e3   :  { %1193 = vrot.lane.b32.xlu0 %v1172_v40, %s1392_s17  ;;  %v1180_v0 = vpack.c.bf16 %v1172_v40, %v1172_v40 }
0x11e5   :  { %1182 = vrot.lane.b32.xlu1 %v1180_v0, %s1392_s17 }
0x11e6   :  { %v373_v3 = vpop.permute.xlu0 %372 }
0x11e7   :  { %376 = vst.msk [vmem:[%s1885_s6] sm:$0x2] %vm375_vm12, %v373_v3 }
0x11ee   :  { %v516_v4 = vpop.permute.xlu0 %515 }
0x11ef   :  { %518 = vst.msk [vmem:[%s1886_s7 + $0x4] sm:$0x2] %vm375_vm12, %v516_v4 }
0x11f6   :  { %v775_v19 = vpop.permute.xlu0 %774 }
0x11f7   :  { %777 = vst.msk [vmem:[%s1885_s6 + $0x4] sm:$0x1] %vm239_vm9, %v775_v19 }
0x11fe   :  { %v916_v33 = vpop.permute.xlu0 %915 }
0x11ff   :  { %918 = vst.msk [vmem:[%s1886_s7] sm:$0x4] %vm383_vm10, %v916_v33 }
0x120d   :  { %v1188_v43 = vpop.permute.xlu2 %1187 }
0x120e   :  { %1191 = vst.msk [vmem:[#allocation2] sm:$0x3] %vm66_vm0, %v1188_v43 }
0x1229   :  { %v1177_v44 = vpop.permute.xlu0 %1176 }
0x122a   :  { %1179 = vst.msk [vmem:[%s1885_s6 + $0x4] sm:$0x8] %vm247_vm11, %v1177_v44 }
0x1255   :  { %v1194_v45 = vpop.permute.xlu0 %1193 }
0x1256   :  { %1196 = vst.msk [vmem:[#allocation3] sm:$0x3] %vm66_vm0, %v1194_v45 }
0x1257   :  { %v1183_v46 = vpop.permute.xlu1 %1182 }
0x1258   :  { %1185 = vst.msk [vmem:[%s1886_s7] sm:$0x1] %vm239_vm9, %v1183_v46 }

// kernel: a_call__.9
= control target key start
LH: loop header
LB: loop body
LE: loop exit
PB: predicated region body
PF: predicated region fallthrough
CT: control target
= control target key end

     0   :  { %vm50_vm0 = vcmask 261120   ;;  %vm108_vm1 = vcmask 64512   ;;  %s205_s3 = inlined_call_operand.vmem [shape: bf16[32,8], index: 3, kind: input, shape index: {}]   ;;  %s206_s2 = inlined_call_operand.vmem [shape: bf16[32,8], index: 2, kind: input, shape index: {}]   ;;  %s207_s1 = inlined_call_operand.vmem [shape: bf16[16,32], index: 1, kind: input, shape index: {}]   ;;  %s208_s0 = inlined_call_operand.vmem [shape: bf16[16,32], index: 0, kind: input, shape index: {}]   ;;  %s209_s4 = inlined_call_operand.vmem [shape: f32[1,8], index: 4, kind: input, shape index: {}]   ;;  %s210_s5 = inlined_call_operand.vmem [shape: f32[16,8], index: 5, kind: output, shape index: {}]  }
   0x1   :  { %v146_v0 = vld [vmem:[%s205_s3 + $0x8] sm:$0xff]  ;;  %v145_v2 = vld [vmem:[%s205_s3] sm:$0xff] }
   0x2   :  { %v144_v1 = vld [vmem:[%s206_s2 + $0x8] sm:$0xff]  ;;  %60 = vmatpush.bf16.msra.mxu0 %v146_v0  ;;  %v143_v3 = vld [vmem:[%s206_s2] sm:$0xff] }
   0x3   :  { %94 = vmatpush.bf16.msra.mxu1 %v144_v1  ;;  %v142_v4 = vld [vmem:[%s207_s1] sm:$0xff] }
   0x4   :  { %v141_v5 = vld [vmem:[%s208_s0] sm:$0xff] }
   0x5   :  { %v147_v6 = vld [vmem:[%s209_s4] ss:$0 sm:$0xff] }
   0x6   :  { %61 = vmatpush.bf16.msra.mxu0 %v145_v2 }
   0x7   :  { %95 = vmatpush.bf16.msra.mxu1 %v143_v3 }
   0x9   :  { %127 = vmatmul.msk.bf16.vlgmr.msra.gmra.mxu0 %vm50_vm0, %v142_v4 }
   0xa   :  { %140 = vmatmul.msk.bf16.vlgmr.msra.gmra.mxu1 %vm50_vm0, %v141_v5 }
  0x86   :  { %v63_v7 = vpop.f32.mrf.mxu0 }
  0x87   :  { %v97_v8 = vpop.f32.mrf.mxu1 }
  0x88   :  { %v98_v9 = vadd.f32 %v97_v8, %v63_v7 }
  0x8a   :  { %v106_v10 = vadd.f32 %v147_v6, %v98_v9 }
  0x8c   :  { %109 = vst.msk [vmem:[%s210_s5] sm:$0xff] %vm108_vm1, %v106_v10 }
  0x8e   :  { %v65_v11 = vpop.f32.mrf.mxu0 }
  0x8f   :  { %v99_v12 = vpop.f32.mrf.mxu1 }
  0x90   :  { %v100_v13 = vadd.f32 %v99_v12, %v65_v11 }
  0x92   :  { %v107_v14 = vadd.f32 %v147_v6, %v100_v13 }
  0x94   :  { %110 = vst.msk [vmem:[%s210_s5 + $0x8] sm:$0xff] %vm108_vm1, %v107_v14 }

</bundles_post_ra>
